<compile_context>
chip_gen: v5e
topology: v5e:2x2
jax: 0.10.0
libtpu: 0.0.40
codegen_flags: <defaults>
</compile_context>

<pallas_src>
from functools import partial

import jax
import jax.numpy as jnp
from jax import lax
from jax.experimental import pallas as pl
from jax.experimental.pallas import tpu as pltpu

# ----------------------------- configuration -----------------------------
NUM_FEATURES = 4        # sparse features
VOCAB        = 10
EMBED_DIM    = 8
INPUT_DIM    = NUM_FEATURES * EMBED_DIM         # 32
FCN_DIMS     = [64, 64, 64, 32]                 # fcn_dim_full = [32,64,64,64,32]
DOMAIN_NUM   = 3
TASK_NUM     = 2
EXPERT_NUM   = 2
SIGMA_W      = 0.1                               # only used in training mode

FCN_FULL   = [INPUT_DIM] + FCN_DIMS
STAR_DIM   = FCN_FULL[:3]                        # [32, 64, 64]
MI_FCN_DIM = FCN_FULL[3:]                        # [64, 32]
D0, D1, D2 = STAR_DIM[0], STAR_DIM[1], STAR_DIM[2]
DH         = MI_FCN_DIM[-1]                      # 32
N_ALL_EXP  = EXPERT_NUM + DOMAIN_NUM + TASK_NUM  # 7 -> [shared0, shared1, dom0..2, task0..1]
N_TOWER    = DOMAIN_NUM * TASK_NUM               # 6
EW         = N_ALL_EXP * DH                      # 224
TW         = N_TOWER * DH                        # 192

# packed emb-side matmul layout (128-lane aligned block starts)
COV_OFF  = 256
GATE_OFF = 512
MCG_W    = 640

N_KL_SEG = 6                                     # dom0..2 (shared||dom), task0..1 (shared||task), push(task0||task1)
KL_LANES = 16                                    # per-tile KL partial output lanes

LN_EPS = 1e-5
BN_EPS = 1e-5

WEIGHT_KEYS = [
    "star_w", "star_b",
    "skip_w", "skip_b", "skip_g", "skip_bt",
    "mlp_w", "mlp_b", "mlp_g", "mlp_bt",
    "mcg_w", "mcg_b",
    "mean_g", "mean_bt", "cov_g", "cov_bt",
    "p_avg", "p_ones",
    "w1", "b1", "bn_s", "bn_b", "w2", "b2",
    "blk6", "ind_kl",
]


# ----------------------------- in-kernel helpers -----------------------------
def _layernorm_relu(x, gamma, beta):
    mu = jnp.mean(x, axis=-1, keepdims=True)
    var = jnp.mean((x - mu) ** 2, axis=-1, keepdims=True)
    return jnp.maximum((x - mu) * lax.rsqrt(var + LN_EPS) * gamma + beta, 0.0)


def _softplus(v):
    # stable softplus with only exp/log (EUP-friendly)
    return jnp.maximum(v, 0.0) + jnp.log(1.0 + jnp.exp(-jnp.abs(v)))


# ----------------------------- the fused kernel (one batch tile per grid step) -----------------------------
def fused_forward_kernel(
        x_ref, dom_ref,
        star_w_ref, star_b_ref,
        skip_w_ref, skip_b_ref, skip_g_ref, skip_bt_ref,
        mlp_w_ref, mlp_b_ref, mlp_g_ref, mlp_bt_ref,
        mcg_w_ref, mcg_b_ref,
        mean_g_ref, mean_bt_ref, cov_g_ref, cov_bt_ref,
        p_avg_ref, p_ones_ref,
        w1_ref, b1_ref, bn_s_ref, bn_b_ref, w2_ref, b2_ref,
        blk6_ref, ind_kl_ref,
        result_ref, kl_ref):
    f32, bf16 = jnp.float32, jnp.bfloat16
    x = x_ref[...]                                           # (TB, 32) f32
    tb = x.shape[0]
    dom = dom_ref[...]                                       # (TB, 1) int32 (-1 = padded row)
    dmask = (dom == lax.broadcasted_iota(jnp.int32, (tb, DOMAIN_NUM), 1)).astype(f32)
    valid = (dom >= 0).astype(f32)                           # (TB, 1)

    # ---- STAR domain layer: one wide matmul (32 -> 3*64), then one-hot select ----
    x_bf = x.astype(bf16)
    star_all = jnp.dot(x_bf, star_w_ref[...], preferred_element_type=f32) + star_b_ref[...]
    star = jnp.zeros((tb, D1), f32)
    for d in range(DOMAIN_NUM):                              # static, exactly-one-of-three select
        star = star + dmask[:, d:d + 1] * star_all[:, d * D1:(d + 1) * D1]

    # ---- skip_conn and star_mlp (Linear + LayerNorm + ReLU), residual add ----
    skip = _layernorm_relu(
        jnp.dot(x_bf, skip_w_ref[...], preferred_element_type=f32) + skip_b_ref[...],
        skip_g_ref[...], skip_bt_ref[...])
    h = _layernorm_relu(
        jnp.dot(star.astype(bf16), mlp_w_ref[...], preferred_element_type=f32) + mlp_b_ref[...],
        mlp_g_ref[...], mlp_bt_ref[...])
    emb = h + skip                                           # (TB, 64)

    # ---- all 7 mean experts + 7 cov experts + gate head in ONE packed matmul ----
    big = jnp.dot(emb.astype(bf16), mcg_w_ref[...], preferred_element_type=f32) + mcg_b_ref[...]
    mean_raw = big[:, 0:EW]                                  # (TB, 224)
    cov_raw = big[:, COV_OFF:COV_OFF + EW]                   # (TB, 224)
    logits = big[:, GATE_OFF:GATE_OFF + EXPERT_NUM]          # (TB, 2)

    # ---- segmented LayerNorm (per 32-lane expert), stats via factored averaging matmul ----
    stack = jnp.concatenate([mean_raw, cov_raw, mean_raw * mean_raw, cov_raw * cov_raw], axis=0)
    seg = jnp.dot(jnp.dot(stack, p_avg_ref[...], preferred_element_type=f32),
                  p_ones_ref[...], preferred_element_type=f32)          # (4*TB, 224)
    mu_m, mu_c = seg[0:tb], seg[tb:2 * tb]
    m2_m, m2_c = seg[2 * tb:3 * tb], seg[3 * tb:4 * tb]
    var_m = jnp.maximum(m2_m - mu_m * mu_m, 0.0)
    var_c = jnp.maximum(m2_c - mu_c * mu_c, 0.0)
    mean_all = jnp.maximum((mean_raw - mu_m) * lax.rsqrt(var_m + LN_EPS) * mean_g_ref[...]
                           + mean_bt_ref[...], 0.0)                     # (TB, 224)
    cov_all = jnp.maximum((cov_raw - mu_c) * lax.rsqrt(var_c + LN_EPS) * cov_g_ref[...]
                          + cov_bt_ref[...], 0.0)                       # (TB, 224)

    # ---- gate: reference only ever uses head `task_num-1` (leaked loop variable); exact softmax ----
    logits = logits - jnp.max(logits, axis=-1, keepdims=True)
    ex = jnp.exp(logits)
    gate = ex / jnp.sum(ex, axis=-1, keepdims=True)                     # (TB, 2)

    # ---- mix shared experts; eval mode: MI_Expert forward output == output_mean ----
    shared_mean = gate[:, 0:1] * mean_all[:, 0:DH] + gate[:, 1:2] * mean_all[:, DH:2 * DH]
    shared_cov = gate[:, 0:1] * cov_all[:, 0:DH] + gate[:, 1:2] * cov_all[:, DH:2 * DH]
    shared_fea = shared_mean
    # TODO(synk): training-mode reparameterization noise (sigma_w * randn * exp(sigma)) and the
    #             per-expert kld_loss-vs-N(0,1) attribute are not reproduced (eval forward only).

    # ---- towers: single fused matmul; tower i consumes [shared | domain_mean[i%3] | task_mean[i%2]] ----
    others_m = mean_all[:, 2 * DH:]                          # (TB, 160): dom0..2, task0, task1
    lhs_t = jnp.concatenate([shared_fea, others_m], axis=1).astype(bf16)   # (TB, 192)
    hidden = jnp.dot(lhs_t, w1_ref[...], preferred_element_type=f32) + b1_ref[...]
    # TODO(synk): BatchNorm1d is eval-mode (running stats); training-mode batch statistics not reproduced.
    hidden = jnp.maximum(hidden * bn_s_ref[...] + bn_b_ref[...], 0.0)
    probs = jax.nn.sigmoid(
        jnp.dot(hidden.astype(bf16), w2_ref[...], preferred_element_type=f32) + b2_ref[...])  # (TB, 6)

    # ---- final per-domain / per-task select: result[:, t] = probs[:, t*3 + domain_id] ----
    cols = [jnp.sum(probs[:, t * DOMAIN_NUM:(t + 1) * DOMAIN_NUM] * dmask, axis=-1, keepdims=True)
            for t in range(TASK_NUM)]
    result_ref[...] = jnp.concatenate(cols, axis=-1)

    # ---- KL side-losses, vectorized over one (TB, 192) slab of 6 segments ----
    # segments: [shared||dom0, shared||dom1, shared||dom2, shared||task0, shared||task1, task0||task1]
    others_c = cov_all[:, 2 * DH:]                           # (TB, 160)
    a_sh = 0.1 + 0.9 * _softplus(shared_cov)                 # (TB, 32)   log sigma (shared)
    a_ot = 0.1 + 0.9 * _softplus(others_c)                   # (TB, 160)  log sigma (dom0..2, task0..1)
    e2a_sh = jnp.exp(2.0 * a_sh)
    en2a_ot = jnp.exp(-2.0 * a_ot)
    a_t0 = a_ot[:, 3 * DH:4 * DH]
    e2a_t0 = jnp.exp(2.0 * a_t0)

    mu1 = jnp.concatenate([shared_mean] * 5 + [others_m[:, 3 * DH:4 * DH]], axis=1)   # (TB, 192)
    a1 = jnp.concatenate([a_sh] * 5 + [a_t0], axis=1)
    e2a1 = jnp.concatenate([e2a_sh] * 5 + [e2a_t0], axis=1)
    mu2 = jnp.concatenate([others_m, others_m[:, 4 * DH:5 * DH]], axis=1)
    a2 = jnp.concatenate([a_ot, a_ot[:, 4 * DH:5 * DH]], axis=1)
    en2a2 = jnp.concatenate([en2a_ot, en2a_ot[:, 4 * DH:5 * DH]], axis=1)
    kl = (a2 - a1) + (e2a1 + (mu1 - mu2) ** 2) * (0.5 * en2a2) - 0.5                  # (TB, 192)

    # per-lane weights: domain segments use the domain mask, task/push segments use row validity
    w_lhs = jnp.concatenate([dmask, valid, valid, valid], axis=1).astype(bf16)        # (TB, 6)
    w_slab = jnp.dot(w_lhs, blk6_ref[...], preferred_element_type=f32)                # (TB, 192)
    colsum = jnp.sum(kl * w_slab, axis=0, keepdims=True)                              # (1, 192)
    seg_sums = jnp.dot(colsum, ind_kl_ref[...], preferred_element_type=f32)           # (1, 16): lanes 0..5
    counts = jnp.sum(dmask, axis=0, keepdims=True)                                    # (1, 3)
    partial = seg_sums + jnp.concatenate(
        [jnp.zeros((1, N_KL_SEG), f32), counts, jnp.zeros((1, KL_LANES - N_KL_SEG - DOMAIN_NUM), f32)],
        axis=1)                                                                       # (1, 16)
    kl_ref[...] = jnp.broadcast_to(partial[None, :, :], (1, 8, KL_LANES))


# ----------------------------- forward (JAX glue + gridded pallas_call) -----------------------------
@partial(jax.jit, static_argnames=("tb",))
def forward(x, kp, tb=128):
    domain_id = x[-1, :].astype(jnp.int32)                   # (B,)
    feat_idx = x[:NUM_FEATURES, :]                           # (F, B)
    # embedding lookup + concat (squeeze_dim=True semantics) -> (B, INPUT_DIM)
    embs = [kp["emb_tables"][f][feat_idx[f]] for f in range(NUM_FEATURES)]
    input_emb = jnp.concatenate(embs, axis=-1).astype(jnp.float32)
    B = input_emb.shape[0]

    # batch tile: multiple of 8 sublanes, capped at requested tb; pad batch to a whole tile count
    tb_eff = min(int(tb), ((B + 7) // 8) * 8)
    tb_eff = max(8, (tb_eff // 8) * 8)
    num_tiles = -(-B // tb_eff)
    B_pad = num_tiles * tb_eff
    pad = B_pad - B
    x_p = jnp.pad(input_emb, ((0, pad), (0, 0)))
    dom_p = jnp.pad(domain_id[:, None], ((0, pad), (0, 0)), constant_values=-1)   # -1 marks padded rows

    weights = [kp[k] for k in WEIGHT_KEYS]
    in_specs = ([pl.BlockSpec((tb_eff, INPUT_DIM), lambda i: (i, 0)),
                 pl.BlockSpec((tb_eff, 1), lambda i: (i, 0))]
                + [pl.BlockSpec(w.shape, lambda i: (0, 0)) for w in weights])   # weights stay resident
    out_specs = [pl.BlockSpec((tb_eff, TASK_NUM), lambda i: (i, 0)),
                 pl.BlockSpec((1, 8, KL_LANES), lambda i: (i, 0, 0))]

    result_p, kl_partials = pl.pallas_call(
        fused_forward_kernel,
        grid=(num_tiles,),
        in_specs=in_specs,
        out_specs=out_specs,
        out_shape=(jax.ShapeDtypeStruct((B_pad, TASK_NUM), jnp.float32),
                   jax.ShapeDtypeStruct((num_tiles, 8, KL_LANES), jnp.float32)),
        compiler_params=pltpu.CompilerParams(
            dimension_semantics=("parallel",),
            vmem_limit_bytes=32 * 1024 * 1024),
    )(x_p, dom_p, *weights)

    result = result_p[:B]
    # finalize the KL side-losses from the per-tile partial sums (tiny, done in plain JAX)
    sums = jnp.sum(kl_partials[:, 0, :], axis=0)             # (16,)
    # TODO(synk): reference yields NaN when a domain has zero samples; guarded with max(count,1).
    kdl_sd = jnp.sum(sums[0:DOMAIN_NUM] / jnp.maximum(sums[N_KL_SEG:N_KL_SEG + DOMAIN_NUM], 1.0))
    kdl_st = (sums[3] + sums[4]) * (1.0 / B)
    kdl_push = sums[5] * (1.0 / B)
    return result, kdl_sd + kdl_st, kdl_push


# ----------------------------- parameter init (deterministic, kernel-ready packing) -----------------------------
def init_all(key):
    ks = jax.random.split(key, 10)
    f32, bf16 = jnp.float32, jnp.bfloat16

    def w(k, shape, scale=0.1):
        return jax.random.normal(k, shape, f32) * scale

    emb_tables = w(ks[0], (NUM_FEATURES, VOCAB, EMBED_DIM))

    # --- STAR: fold slot_w[d]*shared_w into one wide matrix at init ---
    shared_w = w(ks[1], (D0, D1))
    slot_w = w(ks[2], (DOMAIN_NUM, D0, D1))
    star_w = jnp.concatenate([slot_w[d] * shared_w for d in range(DOMAIN_NUM)], axis=1)   # (32, 192)
    star_b = jnp.zeros((1, DOMAIN_NUM * D1), f32)

    skip_w = w(ks[3], (D0, D2))
    mlp_w = w(ks[4], (D1, D2))
    # NOTE: only gate head index task_num-1 influences the output (leaked loop var in the reference).
    gate_w = w(ks[5], (D2, EXPERT_NUM))

    # --- MI experts + gate lane-packed into one (64, 640) RHS, 128-lane-aligned block starts ---
    mean_w_all = w(ks[6], (N_ALL_EXP, D2, DH))
    cov_w_all = w(ks[7], (N_ALL_EXP, D2, DH))
    mcg = jnp.zeros((D2, MCG_W), f32)
    mcg = mcg.at[:, 0:EW].set(jnp.concatenate([mean_w_all[e] for e in range(N_ALL_EXP)], axis=1))
    mcg = mcg.at[:, COV_OFF:COV_OFF + EW].set(
        jnp.concatenate([cov_w_all[e] for e in range(N_ALL_EXP)], axis=1))
    mcg = mcg.at[:, GATE_OFF:GATE_OFF + EXPERT_NUM].set(gate_w)
    mcg_b = jnp.zeros((1, MCG_W), f32)

    # factored per-expert (32-lane segment) averaging matrices for the segmented LayerNorm
    p_avg = jnp.zeros((EW, N_ALL_EXP), f32)
    p_ones = jnp.zeros((N_ALL_EXP, EW), f32)
    for e in range(N_ALL_EXP):
        p_avg = p_avg.at[e * DH:(e + 1) * DH, e].set(1.0 / DH)
        p_ones = p_ones.at[e, e * DH:(e + 1) * DH].set(1.0)

    # --- towers: pack the 6 towers' W1 (shared/domain/task row blocks) into one (192,192) weight ---
    w1_all = w(ks[8], (N_TOWER, 3 * DH, DH))
    w2_all = w(ks[9], (N_TOWER, DH))                         # Linear(DH -> 1) per tower
    w1_pack = jnp.zeros((TW, TW), f32)
    w2_blk = jnp.zeros((TW, N_TOWER), f32)
    for i in range(N_TOWER):
        d = i % DOMAIN_NUM
        t = i % TASK_NUM
        c0 = i * DH
        w1_pack = w1_pack.at[0:DH, c0:c0 + DH].set(w1_all[i, 0:DH, :])
        w1_pack = w1_pack.at[DH + d * DH:DH + (d + 1) * DH, c0:c0 + DH].set(w1_all[i, DH:2 * DH, :])
        w1_pack = w1_pack.at[DH + DOMAIN_NUM * DH + t * DH:DH + DOMAIN_NUM * DH + (t + 1) * DH,
                             c0:c0 + DH].set(w1_all[i, 2 * DH:3 * DH, :])
        w2_blk = w2_blk.at[c0:c0 + DH, i].set(w2_all[i])

    # eval-mode BatchNorm1d with default params (gamma=1, beta=0, running mean=0, var=1)
    bn_scale = jnp.full((1, TW), (1.0 + BN_EPS) ** -0.5, f32)

    # KL-slab helpers: 6-segment lane-weight expander and 6-segment column-sum indicator
    blk6 = jnp.zeros((N_KL_SEG, TW), f32)
    ind_kl = jnp.zeros((TW, KL_LANES), f32)
    for s in range(N_KL_SEG):
        blk6 = blk6.at[s, s * DH:(s + 1) * DH].set(1.0)
        ind_kl = ind_kl.at[s * DH:(s + 1) * DH, s].set(1.0)

    return dict(
        emb_tables=emb_tables,
        star_w=star_w.astype(bf16), star_b=star_b,
        skip_w=skip_w.astype(bf16), skip_b=jnp.zeros((1, D2), f32),
        skip_g=jnp.ones((1, D2), f32), skip_bt=jnp.zeros((1, D2), f32),
        mlp_w=mlp_w.astype(bf16), mlp_b=jnp.zeros((1, D2), f32),
        mlp_g=jnp.ones((1, D2), f32), mlp_bt=jnp.zeros((1, D2), f32),
        mcg_w=mcg.astype(bf16), mcg_b=mcg_b,
        mean_g=jnp.ones((1, EW), f32), mean_bt=jnp.zeros((1, EW), f32),
        cov_g=jnp.ones((1, EW), f32), cov_bt=jnp.zeros((1, EW), f32),
        p_avg=p_avg, p_ones=p_ones,
        w1=w1_pack.astype(bf16), b1=jnp.zeros((1, TW), f32),
        bn_s=bn_scale, bn_b=jnp.zeros((1, TW), f32),
        w2=w2_blk.astype(bf16), b2=jnp.zeros((1, N_TOWER), f32),
        blk6=blk6.astype(bf16), ind_kl=ind_kl,
    )


# ----------------------------- main -----------------------------
if __name__ == "__main__":
    key = jax.random.PRNGKey(0)
    k_p, k_x, k_d = jax.random.split(key, 3)
    params = init_all(k_p)

    B = 48
    feat = jax.random.randint(k_x, (NUM_FEATURES, B), 0, VOCAB, dtype=jnp.int32)
    dom = jax.random.randint(k_d, (1, B), 0, DOMAIN_NUM, dtype=jnp.int32)
    x = jnp.concatenate([feat, dom], axis=0)                 # (NUM_FEATURES + 1, B)

    # tb=16 -> 3 grid steps: exercises the batch-tiled pipeline + VMEM-resident weights
    result, kdl_sd_st, kdl_push_t = forward(x, params, tb=16)
    jax.block_until_ready((result, kdl_sd_st, kdl_push_t))
    assert result.shape == (B, TASK_NUM)
    assert bool(jnp.all(jnp.isfinite(result)))
    assert bool(jnp.isfinite(kdl_sd_st)) and bool(jnp.isfinite(kdl_push_t))
    print("KERNEL_OK")
</pallas_src>

<mosaic_0001>
module attributes {stable_mosaic.version = 11 : i64} {
  func.func @fused_forward_kernel(%arg0: i32, %arg1: memref<16x32xf32, #tpu.memory_space<vmem>>, %arg2: memref<16x1xi32, #tpu.memory_space<vmem>>, %arg3: memref<32x192xbf16, #tpu.memory_space<vmem>>, %arg4: memref<1x192xf32, #tpu.memory_space<vmem>>, %arg5: memref<32x64xbf16, #tpu.memory_space<vmem>>, %arg6: memref<1x64xf32, #tpu.memory_space<vmem>>, %arg7: memref<1x64xf32, #tpu.memory_space<vmem>>, %arg8: memref<1x64xf32, #tpu.memory_space<vmem>>, %arg9: memref<64x64xbf16, #tpu.memory_space<vmem>>, %arg10: memref<1x64xf32, #tpu.memory_space<vmem>>, %arg11: memref<1x64xf32, #tpu.memory_space<vmem>>, %arg12: memref<1x64xf32, #tpu.memory_space<vmem>>, %arg13: memref<64x640xbf16, #tpu.memory_space<vmem>>, %arg14: memref<1x640xf32, #tpu.memory_space<vmem>>, %arg15: memref<1x224xf32, #tpu.memory_space<vmem>>, %arg16: memref<1x224xf32, #tpu.memory_space<vmem>>, %arg17: memref<1x224xf32, #tpu.memory_space<vmem>>, %arg18: memref<1x224xf32, #tpu.memory_space<vmem>>, %arg19: memref<224x7xf32, #tpu.memory_space<vmem>>, %arg20: memref<7x224xf32, #tpu.memory_space<vmem>>, %arg21: memref<192x192xbf16, #tpu.memory_space<vmem>>, %arg22: memref<1x192xf32, #tpu.memory_space<vmem>>, %arg23: memref<1x192xf32, #tpu.memory_space<vmem>>, %arg24: memref<1x192xf32, #tpu.memory_space<vmem>>, %arg25: memref<192x6xbf16, #tpu.memory_space<vmem>>, %arg26: memref<1x6xf32, #tpu.memory_space<vmem>>, %arg27: memref<6x192xbf16, #tpu.memory_space<vmem>>, %arg28: memref<192x16xf32, #tpu.memory_space<vmem>>, %arg29: memref<16x2xf32, #tpu.memory_space<vmem>>, %arg30: memref<1x8x16xf32, #tpu.memory_space<vmem>>) attributes {dimension_semantics = [#tpu.dimension_semantics<parallel>], iteration_bounds = array<i64: 3>, scalar_prefetch = 0 : i64, scratch_operands = 0 : i64, tpu.core_type = #tpu.core_type<tc>, window_params = [{transform_indices = @transform_0, window_bounds = array<i64: 16, 32>}, {transform_indices = @transform_1, window_bounds = array<i64: 16, 1>}, {pipeline_mode = #tpu.pipeline_mode<synchronous>, transform_indices = @transform_2, window_bounds = array<i64: 32, 192>}, {pipeline_mode = #tpu.pipeline_mode<synchronous>, transform_indices = @transform_3, window_bounds = array<i64: 1, 192>}, {pipeline_mode = #tpu.pipeline_mode<synchronous>, transform_indices = @transform_4, window_bounds = array<i64: 32, 64>}, {pipeline_mode = #tpu.pipeline_mode<synchronous>, transform_indices = @transform_5, window_bounds = array<i64: 1, 64>}, {pipeline_mode = #tpu.pipeline_mode<synchronous>, transform_indices = @transform_6, window_bounds = array<i64: 1, 64>}, {pipeline_mode = #tpu.pipeline_mode<synchronous>, transform_indices = @transform_7, window_bounds = array<i64: 1, 64>}, {pipeline_mode = #tpu.pipeline_mode<synchronous>, transform_indices = @transform_8, window_bounds = array<i64: 64, 64>}, {pipeline_mode = #tpu.pipeline_mode<synchronous>, transform_indices = @transform_9, window_bounds = array<i64: 1, 64>}, {pipeline_mode = #tpu.pipeline_mode<synchronous>, transform_indices = @transform_10, window_bounds = array<i64: 1, 64>}, {pipeline_mode = #tpu.pipeline_mode<synchronous>, transform_indices = @transform_11, window_bounds = array<i64: 1, 64>}, {pipeline_mode = #tpu.pipeline_mode<synchronous>, transform_indices = @transform_12, window_bounds = array<i64: 64, 640>}, {pipeline_mode = #tpu.pipeline_mode<synchronous>, transform_indices = @transform_13, window_bounds = array<i64: 1, 640>}, {pipeline_mode = #tpu.pipeline_mode<synchronous>, transform_indices = @transform_14, window_bounds = array<i64: 1, 224>}, {pipeline_mode = #tpu.pipeline_mode<synchronous>, transform_indices = @transform_15, window_bounds = array<i64: 1, 224>}, {pipeline_mode = #tpu.pipeline_mode<synchronous>, transform_indices = @transform_16, window_bounds = array<i64: 1, 224>}, {pipeline_mode = #tpu.pipeline_mode<synchronous>, transform_indices = @transform_17, window_bounds = array<i64: 1, 224>}, {pipeline_mode = #tpu.pipeline_mode<synchronous>, transform_indices = @transform_18, window_bounds = array<i64: 224, 7>}, {pipeline_mode = #tpu.pipeline_mode<synchronous>, transform_indices = @transform_19, window_bounds = array<i64: 7, 224>}, {pipeline_mode = #tpu.pipeline_mode<synchronous>, transform_indices = @transform_20, window_bounds = array<i64: 192, 192>}, {pipeline_mode = #tpu.pipeline_mode<synchronous>, transform_indices = @transform_21, window_bounds = array<i64: 1, 192>}, {pipeline_mode = #tpu.pipeline_mode<synchronous>, transform_indices = @transform_22, window_bounds = array<i64: 1, 192>}, {pipeline_mode = #tpu.pipeline_mode<synchronous>, transform_indices = @transform_23, window_bounds = array<i64: 1, 192>}, {pipeline_mode = #tpu.pipeline_mode<synchronous>, transform_indices = @transform_24, window_bounds = array<i64: 192, 6>}, {pipeline_mode = #tpu.pipeline_mode<synchronous>, transform_indices = @transform_25, window_bounds = array<i64: 1, 6>}, {pipeline_mode = #tpu.pipeline_mode<synchronous>, transform_indices = @transform_26, window_bounds = array<i64: 6, 192>}, {pipeline_mode = #tpu.pipeline_mode<synchronous>, transform_indices = @transform_27, window_bounds = array<i64: 192, 16>}, {transform_indices = @transform_28, window_bounds = array<i64: 16, 2>}, {transform_indices = @transform_29, window_bounds = array<i64: 1, 8, 16>}]} {
    %c0 = arith.constant 0 : index
    %c0_0 = arith.constant 0 : index
    %0 = vector.load %arg1[%c0, %c0_0] : memref<16x32xf32, #tpu.memory_space<vmem>>, vector<16x32xf32>
    %c0_1 = arith.constant 0 : index
    %c0_2 = arith.constant 0 : index
    %1 = vector.load %arg2[%c0_1, %c0_2] : memref<16x1xi32, #tpu.memory_space<vmem>>, vector<16x1xi32>
    %2 = tpu.iota {dimensions = array<i32: 1>} : vector<16x3xi32>
    %3 = vector.broadcast %1 : vector<16x1xi32> to vector<16x3xi32>
    %4 = arith.cmpi eq, %3, %2 : vector<16x3xi32>
    %5 = arith.extui %4 : vector<16x3xi1> to vector<16x3xi32>
    %6 = arith.sitofp %5 : vector<16x3xi32> to vector<16x3xf32>
    %c0_i32 = arith.constant 0 : i32
    %7 = vector.broadcast %c0_i32 : i32 to vector<16x1xi32>
    %8 = arith.cmpi sge, %1, %7 : vector<16x1xi32>
    %9 = arith.extui %8 : vector<16x1xi1> to vector<16x1xi32>
    %10 = arith.sitofp %9 : vector<16x1xi32> to vector<16x1xf32>
    %11 = arith.truncf %0 : vector<16x32xf32> to vector<16x32xbf16>
    %c0_3 = arith.constant 0 : index
    %c0_4 = arith.constant 0 : index
    %12 = vector.load %arg3[%c0_3, %c0_4] : memref<32x192xbf16, #tpu.memory_space<vmem>>, vector<32x192xbf16>
    %cst = arith.constant dense<0.000000e+00> : vector<16x192xf32>
    %13 = tpu.matmul %11, %12, %cst {dimension_numbers = #tpu.dot_dimension_numbers<[1], [0], [0], [1], [0, 0, 1, 1], [], []>} : vector<16x32xbf16>, vector<32x192xbf16>, vector<16x192xf32> -> vector<16x192xf32>
    %c0_5 = arith.constant 0 : index
    %c0_6 = arith.constant 0 : index
    %14 = vector.load %arg4[%c0_5, %c0_6] : memref<1x192xf32, #tpu.memory_space<vmem>>, vector<1x192xf32>
    %15 = vector.broadcast %14 : vector<1x192xf32> to vector<16x192xf32>
    %16 = arith.addf %13, %15 : vector<16x192xf32>
    %cst_7 = arith.constant 0.000000e+00 : f32
    %17 = vector.broadcast %cst_7 : f32 to vector<16x64xf32>
    %18 = vector.extract_strided_slice %6 {offsets = [0, 0], sizes = [16, 1], strides = [1, 1]} : vector<16x3xf32> to vector<16x1xf32>
    %19 = vector.extract_strided_slice %16 {offsets = [0, 0], sizes = [16, 64], strides = [1, 1]} : vector<16x192xf32> to vector<16x64xf32>
    %20 = vector.broadcast %18 : vector<16x1xf32> to vector<16x64xf32>
    %21 = arith.mulf %20, %19 : vector<16x64xf32>
    %22 = arith.addf %17, %21 : vector<16x64xf32>
    %23 = vector.extract_strided_slice %6 {offsets = [0, 1], sizes = [16, 1], strides = [1, 1]} : vector<16x3xf32> to vector<16x1xf32>
    %24 = vector.extract_strided_slice %16 {offsets = [0, 64], sizes = [16, 64], strides = [1, 1]} : vector<16x192xf32> to vector<16x64xf32>
    %25 = vector.broadcast %23 : vector<16x1xf32> to vector<16x64xf32>
    %26 = arith.mulf %25, %24 : vector<16x64xf32>
    %27 = arith.addf %22, %26 : vector<16x64xf32>
    %28 = vector.extract_strided_slice %6 {offsets = [0, 2], sizes = [16, 1], strides = [1, 1]} : vector<16x3xf32> to vector<16x1xf32>
    %29 = vector.extract_strided_slice %16 {offsets = [0, 128], sizes = [16, 64], strides = [1, 1]} : vector<16x192xf32> to vector<16x64xf32>
    %30 = vector.broadcast %28 : vector<16x1xf32> to vector<16x64xf32>
    %31 = arith.mulf %30, %29 : vector<16x64xf32>
    %32 = arith.addf %27, %31 : vector<16x64xf32>
    %c0_8 = arith.constant 0 : index
    %c0_9 = arith.constant 0 : index
    %33 = vector.load %arg5[%c0_8, %c0_9] : memref<32x64xbf16, #tpu.memory_space<vmem>>, vector<32x64xbf16>
    %cst_10 = arith.constant dense<0.000000e+00> : vector<16x64xf32>
    %34 = tpu.matmul %11, %33, %cst_10 {dimension_numbers = #tpu.dot_dimension_numbers<[1], [0], [0], [1], [0, 0, 1, 1], [], []>} : vector<16x32xbf16>, vector<32x64xbf16>, vector<16x64xf32> -> vector<16x64xf32>
    %c0_11 = arith.constant 0 : index
    %c0_12 = arith.constant 0 : index
    %35 = vector.load %arg6[%c0_11, %c0_12] : memref<1x64xf32, #tpu.memory_space<vmem>>, vector<1x64xf32>
    %36 = vector.broadcast %35 : vector<1x64xf32> to vector<16x64xf32>
    %37 = arith.addf %34, %36 : vector<16x64xf32>
    %c0_13 = arith.constant 0 : index
    %c0_14 = arith.constant 0 : index
    %38 = vector.load %arg7[%c0_13, %c0_14] : memref<1x64xf32, #tpu.memory_space<vmem>>, vector<1x64xf32>
    %c0_15 = arith.constant 0 : index
    %c0_16 = arith.constant 0 : index
    %39 = vector.load %arg8[%c0_15, %c0_16] : memref<1x64xf32, #tpu.memory_space<vmem>>, vector<1x64xf32>
    %cst_17 = arith.constant dense<0.000000e+00> : vector<16xf32>
    %40 = vector.multi_reduction <add>, %37, %cst_17 [1] : vector<16x64xf32> to vector<16xf32>
    %41 = vector.shape_cast %40 : vector<16xf32> to vector<16x1xf32>
    %cst_18 = arith.constant 6.400000e+01 : f32
    %42 = vector.broadcast %cst_18 : f32 to vector<16x1xf32>
    %43 = arith.divf %41, %42 : vector<16x1xf32>
    %44 = vector.broadcast %43 : vector<16x1xf32> to vector<16x64xf32>
    %45 = arith.subf %37, %44 : vector<16x64xf32>
    %46 = arith.mulf %45, %45 : vector<16x64xf32>
    %cst_19 = arith.constant dense<0.000000e+00> : vector<16xf32>
    %47 = vector.multi_reduction <add>, %46, %cst_19 [1] : vector<16x64xf32> to vector<16xf32>
    %48 = vector.shape_cast %47 : vector<16xf32> to vector<16x1xf32>
    %cst_20 = arith.constant 6.400000e+01 : f32
    %49 = vector.broadcast %cst_20 : f32 to vector<16x1xf32>
    %50 = arith.divf %48, %49 : vector<16x1xf32>
    %51 = vector.broadcast %43 : vector<16x1xf32> to vector<16x64xf32>
    %52 = arith.subf %37, %51 : vector<16x64xf32>
    %cst_21 = arith.constant 9.99999974E-6 : f32
    %53 = vector.broadcast %cst_21 : f32 to vector<16x1xf32>
    %54 = arith.addf %50, %53 : vector<16x1xf32>
    %55 = math.rsqrt %54 : vector<16x1xf32>
    %56 = vector.broadcast %55 : vector<16x1xf32> to vector<16x64xf32>
    %57 = arith.mulf %52, %56 : vector<16x64xf32>
    %58 = vector.broadcast %38 : vector<1x64xf32> to vector<16x64xf32>
    %59 = arith.mulf %57, %58 : vector<16x64xf32>
    %60 = vector.broadcast %39 : vector<1x64xf32> to vector<16x64xf32>
    %61 = arith.addf %59, %60 : vector<16x64xf32>
    %cst_22 = arith.constant 0.000000e+00 : f32
    %62 = vector.broadcast %cst_22 : f32 to vector<16x64xf32>
    %63 = arith.maximumf %61, %62 : vector<16x64xf32>
    %64 = arith.truncf %32 : vector<16x64xf32> to vector<16x64xbf16>
    %c0_23 = arith.constant 0 : index
    %c0_24 = arith.constant 0 : index
    %65 = vector.load %arg9[%c0_23, %c0_24] : memref<64x64xbf16, #tpu.memory_space<vmem>>, vector<64x64xbf16>
    %cst_25 = arith.constant dense<0.000000e+00> : vector<16x64xf32>
    %66 = tpu.matmul %64, %65, %cst_25 {dimension_numbers = #tpu.dot_dimension_numbers<[1], [0], [0], [1], [0, 0, 1, 1], [], []>} : vector<16x64xbf16>, vector<64x64xbf16>, vector<16x64xf32> -> vector<16x64xf32>
    %c0_26 = arith.constant 0 : index
    %c0_27 = arith.constant 0 : index
    %67 = vector.load %arg10[%c0_26, %c0_27] : memref<1x64xf32, #tpu.memory_space<vmem>>, vector<1x64xf32>
    %68 = vector.broadcast %67 : vector<1x64xf32> to vector<16x64xf32>
    %69 = arith.addf %66, %68 : vector<16x64xf32>
    %c0_28 = arith.constant 0 : index
    %c0_29 = arith.constant 0 : index
    %70 = vector.load %arg11[%c0_28, %c0_29] : memref<1x64xf32, #tpu.memory_space<vmem>>, vector<1x64xf32>
    %c0_30 = arith.constant 0 : index
    %c0_31 = arith.constant 0 : index
    %71 = vector.load %arg12[%c0_30, %c0_31] : memref<1x64xf32, #tpu.memory_space<vmem>>, vector<1x64xf32>
    %cst_32 = arith.constant dense<0.000000e+00> : vector<16xf32>
    %72 = vector.multi_reduction <add>, %69, %cst_32 [1] : vector<16x64xf32> to vector<16xf32>
    %73 = vector.shape_cast %72 : vector<16xf32> to vector<16x1xf32>
    %cst_33 = arith.constant 6.400000e+01 : f32
    %74 = vector.broadcast %cst_33 : f32 to vector<16x1xf32>
    %75 = arith.divf %73, %74 : vector<16x1xf32>
    %76 = vector.broadcast %75 : vector<16x1xf32> to vector<16x64xf32>
    %77 = arith.subf %69, %76 : vector<16x64xf32>
    %78 = arith.mulf %77, %77 : vector<16x64xf32>
    %cst_34 = arith.constant dense<0.000000e+00> : vector<16xf32>
    %79 = vector.multi_reduction <add>, %78, %cst_34 [1] : vector<16x64xf32> to vector<16xf32>
    %80 = vector.shape_cast %79 : vector<16xf32> to vector<16x1xf32>
    %cst_35 = arith.constant 6.400000e+01 : f32
    %81 = vector.broadcast %cst_35 : f32 to vector<16x1xf32>
    %82 = arith.divf %80, %81 : vector<16x1xf32>
    %83 = vector.broadcast %75 : vector<16x1xf32> to vector<16x64xf32>
    %84 = arith.subf %69, %83 : vector<16x64xf32>
    %cst_36 = arith.constant 9.99999974E-6 : f32
    %85 = vector.broadcast %cst_36 : f32 to vector<16x1xf32>
    %86 = arith.addf %82, %85 : vector<16x1xf32>
    %87 = math.rsqrt %86 : vector<16x1xf32>
    %88 = vector.broadcast %87 : vector<16x1xf32> to vector<16x64xf32>
    %89 = arith.mulf %84, %88 : vector<16x64xf32>
    %90 = vector.broadcast %70 : vector<1x64xf32> to vector<16x64xf32>
    %91 = arith.mulf %89, %90 : vector<16x64xf32>
    %92 = vector.broadcast %71 : vector<1x64xf32> to vector<16x64xf32>
    %93 = arith.addf %91, %92 : vector<16x64xf32>
    %cst_37 = arith.constant 0.000000e+00 : f32
    %94 = vector.broadcast %cst_37 : f32 to vector<16x64xf32>
    %95 = arith.maximumf %93, %94 : vector<16x64xf32>
    %96 = arith.addf %95, %63 : vector<16x64xf32>
    %97 = arith.truncf %96 : vector<16x64xf32> to vector<16x64xbf16>
    %c0_38 = arith.constant 0 : index
    %c0_39 = arith.constant 0 : index
    %98 = vector.load %arg13[%c0_38, %c0_39] : memref<64x640xbf16, #tpu.memory_space<vmem>>, vector<64x640xbf16>
    %cst_40 = arith.constant dense<0.000000e+00> : vector<16x640xf32>
    %99 = tpu.matmul %97, %98, %cst_40 {dimension_numbers = #tpu.dot_dimension_numbers<[1], [0], [0], [1], [0, 0, 1, 1], [], []>} : vector<16x64xbf16>, vector<64x640xbf16>, vector<16x640xf32> -> vector<16x640xf32>
    %c0_41 = arith.constant 0 : index
    %c0_42 = arith.constant 0 : index
    %100 = vector.load %arg14[%c0_41, %c0_42] : memref<1x640xf32, #tpu.memory_space<vmem>>, vector<1x640xf32>
    %101 = vector.broadcast %100 : vector<1x640xf32> to vector<16x640xf32>
    %102 = arith.addf %99, %101 : vector<16x640xf32>
    %103 = vector.extract_strided_slice %102 {offsets = [0, 0], sizes = [16, 224], strides = [1, 1]} : vector<16x640xf32> to vector<16x224xf32>
    %104 = vector.extract_strided_slice %102 {offsets = [0, 256], sizes = [16, 224], strides = [1, 1]} : vector<16x640xf32> to vector<16x224xf32>
    %105 = vector.extract_strided_slice %102 {offsets = [0, 512], sizes = [16, 2], strides = [1, 1]} : vector<16x640xf32> to vector<16x2xf32>
    %106 = arith.mulf %103, %103 : vector<16x224xf32>
    %107 = arith.mulf %104, %104 : vector<16x224xf32>
    %108 = tpu.concatenate %103, %104, %106, %107 in 0 : vector<16x224xf32>, vector<16x224xf32>, vector<16x224xf32>, vector<16x224xf32> -> vector<64x224xf32>
    %c0_43 = arith.constant 0 : index
    %c0_44 = arith.constant 0 : index
    %109 = vector.load %arg19[%c0_43, %c0_44] : memref<224x7xf32, #tpu.memory_space<vmem>>, vector<224x7xf32>
    %cst_45 = arith.constant dense<0.000000e+00> : vector<64x7xf32>
    %110 = tpu.matmul %108, %109, %cst_45 {dimension_numbers = #tpu.dot_dimension_numbers<[1], [0], [0], [1], [0, 0, 1, 1], [], []>} : vector<64x224xf32>, vector<224x7xf32>, vector<64x7xf32> -> vector<64x7xf32>
    %c0_46 = arith.constant 0 : index
    %c0_47 = arith.constant 0 : index
    %111 = vector.load %arg20[%c0_46, %c0_47] : memref<7x224xf32, #tpu.memory_space<vmem>>, vector<7x224xf32>
    %cst_48 = arith.constant dense<0.000000e+00> : vector<64x224xf32>
    %112 = tpu.matmul %110, %111, %cst_48 {dimension_numbers = #tpu.dot_dimension_numbers<[1], [0], [0], [1], [0, 0, 1, 1], [], []>} : vector<64x7xf32>, vector<7x224xf32>, vector<64x224xf32> -> vector<64x224xf32>
    %113 = vector.extract_strided_slice %112 {offsets = [0, 0], sizes = [16, 224], strides = [1, 1]} : vector<64x224xf32> to vector<16x224xf32>
    %114 = vector.extract_strided_slice %112 {offsets = [16, 0], sizes = [16, 224], strides = [1, 1]} : vector<64x224xf32> to vector<16x224xf32>
    %115 = vector.extract_strided_slice %112 {offsets = [32, 0], sizes = [16, 224], strides = [1, 1]} : vector<64x224xf32> to vector<16x224xf32>
    %116 = vector.extract_strided_slice %112 {offsets = [48, 0], sizes = [16, 224], strides = [1, 1]} : vector<64x224xf32> to vector<16x224xf32>
    %117 = arith.mulf %113, %113 : vector<16x224xf32>
    %118 = arith.subf %115, %117 : vector<16x224xf32>
    %cst_49 = arith.constant 0.000000e+00 : f32
    %119 = vector.broadcast %cst_49 : f32 to vector<16x224xf32>
    %120 = arith.maximumf %118, %119 : vector<16x224xf32>
    %121 = arith.mulf %114, %114 : vector<16x224xf32>
    %122 = arith.subf %116, %121 : vector<16x224xf32>
    %cst_50 = arith.constant 0.000000e+00 : f32
    %123 = vector.broadcast %cst_50 : f32 to vector<16x224xf32>
    %124 = arith.maximumf %122, %123 : vector<16x224xf32>
    %125 = arith.subf %103, %113 : vector<16x224xf32>
    %cst_51 = arith.constant 9.99999974E-6 : f32
    %126 = vector.broadcast %cst_51 : f32 to vector<16x224xf32>
    %127 = arith.addf %120, %126 : vector<16x224xf32>
    %128 = math.rsqrt %127 : vector<16x224xf32>
    %129 = arith.mulf %125, %128 : vector<16x224xf32>
    %c0_52 = arith.constant 0 : index
    %c0_53 = arith.constant 0 : index
    %130 = vector.load %arg15[%c0_52, %c0_53] : memref<1x224xf32, #tpu.memory_space<vmem>>, vector<1x224xf32>
    %131 = vector.broadcast %130 : vector<1x224xf32> to vector<16x224xf32>
    %132 = arith.mulf %129, %131 : vector<16x224xf32>
    %c0_54 = arith.constant 0 : index
    %c0_55 = arith.constant 0 : index
    %133 = vector.load %arg16[%c0_54, %c0_55] : memref<1x224xf32, #tpu.memory_space<vmem>>, vector<1x224xf32>
    %134 = vector.broadcast %133 : vector<1x224xf32> to vector<16x224xf32>
    %135 = arith.addf %132, %134 : vector<16x224xf32>
    %cst_56 = arith.constant 0.000000e+00 : f32
    %136 = vector.broadcast %cst_56 : f32 to vector<16x224xf32>
    %137 = arith.maximumf %135, %136 : vector<16x224xf32>
    %138 = arith.subf %104, %114 : vector<16x224xf32>
    %cst_57 = arith.constant 9.99999974E-6 : f32
    %139 = vector.broadcast %cst_57 : f32 to vector<16x224xf32>
    %140 = arith.addf %124, %139 : vector<16x224xf32>
    %141 = math.rsqrt %140 : vector<16x224xf32>
    %142 = arith.mulf %138, %141 : vector<16x224xf32>
    %c0_58 = arith.constant 0 : index
    %c0_59 = arith.constant 0 : index
    %143 = vector.load %arg17[%c0_58, %c0_59] : memref<1x224xf32, #tpu.memory_space<vmem>>, vector<1x224xf32>
    %144 = vector.broadcast %143 : vector<1x224xf32> to vector<16x224xf32>
    %145 = arith.mulf %142, %144 : vector<16x224xf32>
    %c0_60 = arith.constant 0 : index
    %c0_61 = arith.constant 0 : index
    %146 = vector.load %arg18[%c0_60, %c0_61] : memref<1x224xf32, #tpu.memory_space<vmem>>, vector<1x224xf32>
    %147 = vector.broadcast %146 : vector<1x224xf32> to vector<16x224xf32>
    %148 = arith.addf %145, %147 : vector<16x224xf32>
    %cst_62 = arith.constant 0.000000e+00 : f32
    %149 = vector.broadcast %cst_62 : f32 to vector<16x224xf32>
    %150 = arith.maximumf %148, %149 : vector<16x224xf32>
    %cst_63 = arith.constant dense<0xFF800000> : vector<16xf32>
    %151 = vector.multi_reduction <maximumf>, %105, %cst_63 [1] : vector<16x2xf32> to vector<16xf32>
    %152 = vector.shape_cast %151 : vector<16xf32> to vector<16x1xf32>
    %153 = vector.broadcast %152 : vector<16x1xf32> to vector<16x2xf32>
    %154 = arith.subf %105, %153 : vector<16x2xf32>
    %155 = math.exp %154 : vector<16x2xf32>
    %cst_64 = arith.constant dense<0.000000e+00> : vector<16xf32>
    %156 = vector.multi_reduction <add>, %155, %cst_64 [1] : vector<16x2xf32> to vector<16xf32>
    %157 = vector.shape_cast %156 : vector<16xf32> to vector<16x1xf32>
    %158 = vector.broadcast %157 : vector<16x1xf32> to vector<16x2xf32>
    %159 = arith.divf %155, %158 : vector<16x2xf32>
    %160 = vector.extract_strided_slice %159 {offsets = [0, 0], sizes = [16, 1], strides = [1, 1]} : vector<16x2xf32> to vector<16x1xf32>
    %161 = vector.extract_strided_slice %137 {offsets = [0, 0], sizes = [16, 32], strides = [1, 1]} : vector<16x224xf32> to vector<16x32xf32>
    %162 = vector.broadcast %160 : vector<16x1xf32> to vector<16x32xf32>
    %163 = arith.mulf %162, %161 : vector<16x32xf32>
    %164 = vector.extract_strided_slice %159 {offsets = [0, 1], sizes = [16, 1], strides = [1, 1]} : vector<16x2xf32> to vector<16x1xf32>
    %165 = vector.extract_strided_slice %137 {offsets = [0, 32], sizes = [16, 32], strides = [1, 1]} : vector<16x224xf32> to vector<16x32xf32>
    %166 = vector.broadcast %164 : vector<16x1xf32> to vector<16x32xf32>
    %167 = arith.mulf %166, %165 : vector<16x32xf32>
    %168 = arith.addf %163, %167 : vector<16x32xf32>
    %169 = vector.extract_strided_slice %159 {offsets = [0, 0], sizes = [16, 1], strides = [1, 1]} : vector<16x2xf32> to vector<16x1xf32>
    %170 = vector.extract_strided_slice %150 {offsets = [0, 0], sizes = [16, 32], strides = [1, 1]} : vector<16x224xf32> to vector<16x32xf32>
    %171 = vector.broadcast %169 : vector<16x1xf32> to vector<16x32xf32>
    %172 = arith.mulf %171, %170 : vector<16x32xf32>
    %173 = vector.extract_strided_slice %159 {offsets = [0, 1], sizes = [16, 1], strides = [1, 1]} : vector<16x2xf32> to vector<16x1xf32>
    %174 = vector.extract_strided_slice %150 {offsets = [0, 32], sizes = [16, 32], strides = [1, 1]} : vector<16x224xf32> to vector<16x32xf32>
    %175 = vector.broadcast %173 : vector<16x1xf32> to vector<16x32xf32>
    %176 = arith.mulf %175, %174 : vector<16x32xf32>
    %177 = arith.addf %172, %176 : vector<16x32xf32>
    %178 = vector.extract_strided_slice %137 {offsets = [0, 64], sizes = [16, 160], strides = [1, 1]} : vector<16x224xf32> to vector<16x160xf32>
    %179 = tpu.concatenate %168, %178 in 1 : vector<16x32xf32>, vector<16x160xf32> -> vector<16x192xf32>
    %180 = arith.truncf %179 : vector<16x192xf32> to vector<16x192xbf16>
    %c0_65 = arith.constant 0 : index
    %c0_66 = arith.constant 0 : index
    %181 = vector.load %arg21[%c0_65, %c0_66] : memref<192x192xbf16, #tpu.memory_space<vmem>>, vector<192x192xbf16>
    %cst_67 = arith.constant dense<0.000000e+00> : vector<16x192xf32>
    %182 = tpu.matmul %180, %181, %cst_67 {dimension_numbers = #tpu.dot_dimension_numbers<[1], [0], [0], [1], [0, 0, 1, 1], [], []>} : vector<16x192xbf16>, vector<192x192xbf16>, vector<16x192xf32> -> vector<16x192xf32>
    %c0_68 = arith.constant 0 : index
    %c0_69 = arith.constant 0 : index
    %183 = vector.load %arg22[%c0_68, %c0_69] : memref<1x192xf32, #tpu.memory_space<vmem>>, vector<1x192xf32>
    %184 = vector.broadcast %183 : vector<1x192xf32> to vector<16x192xf32>
    %185 = arith.addf %182, %184 : vector<16x192xf32>
    %c0_70 = arith.constant 0 : index
    %c0_71 = arith.constant 0 : index
    %186 = vector.load %arg23[%c0_70, %c0_71] : memref<1x192xf32, #tpu.memory_space<vmem>>, vector<1x192xf32>
    %187 = vector.broadcast %186 : vector<1x192xf32> to vector<16x192xf32>
    %188 = arith.mulf %185, %187 : vector<16x192xf32>
    %c0_72 = arith.constant 0 : index
    %c0_73 = arith.constant 0 : index
    %189 = vector.load %arg24[%c0_72, %c0_73] : memref<1x192xf32, #tpu.memory_space<vmem>>, vector<1x192xf32>
    %190 = vector.broadcast %189 : vector<1x192xf32> to vector<16x192xf32>
    %191 = arith.addf %188, %190 : vector<16x192xf32>
    %cst_74 = arith.constant 0.000000e+00 : f32
    %192 = vector.broadcast %cst_74 : f32 to vector<16x192xf32>
    %193 = arith.maximumf %191, %192 : vector<16x192xf32>
    %194 = arith.truncf %193 : vector<16x192xf32> to vector<16x192xbf16>
    %c0_75 = arith.constant 0 : index
    %c0_76 = arith.constant 0 : index
    %195 = vector.load %arg25[%c0_75, %c0_76] : memref<192x6xbf16, #tpu.memory_space<vmem>>, vector<192x6xbf16>
    %cst_77 = arith.constant dense<0.000000e+00> : vector<16x6xf32>
    %196 = tpu.matmul %194, %195, %cst_77 {dimension_numbers = #tpu.dot_dimension_numbers<[1], [0], [0], [1], [0, 0, 1, 1], [], []>} : vector<16x192xbf16>, vector<192x6xbf16>, vector<16x6xf32> -> vector<16x6xf32>
    %c0_78 = arith.constant 0 : index
    %c0_79 = arith.constant 0 : index
    %197 = vector.load %arg26[%c0_78, %c0_79] : memref<1x6xf32, #tpu.memory_space<vmem>>, vector<1x6xf32>
    %198 = vector.broadcast %197 : vector<1x6xf32> to vector<16x6xf32>
    %199 = arith.addf %196, %198 : vector<16x6xf32>
    %200 = arith.negf %199 : vector<16x6xf32>
    %201 = math.exp %200 : vector<16x6xf32>
    %cst_80 = arith.constant 1.000000e+00 : f32
    %202 = vector.broadcast %cst_80 : f32 to vector<16x6xf32>
    %203 = arith.addf %202, %201 : vector<16x6xf32>
    %204 = arith.divf %202, %203 : vector<16x6xf32>
    %205 = vector.extract_strided_slice %204 {offsets = [0, 0], sizes = [16, 3], strides = [1, 1]} : vector<16x6xf32> to vector<16x3xf32>
    %206 = arith.mulf %205, %6 : vector<16x3xf32>
    %cst_81 = arith.constant dense<0.000000e+00> : vector<16xf32>
    %207 = vector.multi_reduction <add>, %206, %cst_81 [1] : vector<16x3xf32> to vector<16xf32>
    %208 = vector.shape_cast %207 : vector<16xf32> to vector<16x1xf32>
    %209 = vector.extract_strided_slice %204 {offsets = [0, 3], sizes = [16, 3], strides = [1, 1]} : vector<16x6xf32> to vector<16x3xf32>
    %210 = arith.mulf %209, %6 : vector<16x3xf32>
    %cst_82 = arith.constant dense<0.000000e+00> : vector<16xf32>
    %211 = vector.multi_reduction <add>, %210, %cst_82 [1] : vector<16x3xf32> to vector<16xf32>
    %212 = vector.shape_cast %211 : vector<16xf32> to vector<16x1xf32>
    %213 = tpu.concatenate %208, %212 in 1 : vector<16x1xf32>, vector<16x1xf32> -> vector<16x2xf32>
    %c0_83 = arith.constant 0 : index
    %c0_84 = arith.constant 0 : index
    %214 = vector.load %arg29[%c0_83, %c0_84] : memref<16x2xf32, #tpu.memory_space<vmem>>, vector<16x2xf32>
    tpu.vector_store %arg29[%c0_83, %c0_84], %213 {strides = array<i32>} : memref<16x2xf32, #tpu.memory_space<vmem>>, vector<16x2xf32>,
    %215 = vector.extract_strided_slice %150 {offsets = [0, 64], sizes = [16, 160], strides = [1, 1]} : vector<16x224xf32> to vector<16x160xf32>
    %cst_85 = arith.constant 0.000000e+00 : f32
    %216 = vector.broadcast %cst_85 : f32 to vector<16x32xf32>
    %217 = arith.maximumf %177, %216 : vector<16x32xf32>
    %218 = math.absf %177 : vector<16x32xf32>
    %cst_86 = arith.constant 0.000000e+00 : f32
    %219 = vector.broadcast %cst_86 : f32 to vector<16x32xf32>
    %220 = arith.subf %219, %218 : vector<16x32xf32>
    %221 = math.exp %220 : vector<16x32xf32>
    %cst_87 = arith.constant 1.000000e+00 : f32
    %222 = vector.broadcast %cst_87 : f32 to vector<16x32xf32>
    %223 = arith.addf %222, %221 : vector<16x32xf32>
    %224 = math.log %223 : vector<16x32xf32>
    %225 = arith.addf %217, %224 : vector<16x32xf32>
    %cst_88 = arith.constant 0.899999976 : f32
    %226 = vector.broadcast %cst_88 : f32 to vector<16x32xf32>
    %227 = arith.mulf %226, %225 : vector<16x32xf32>
    %cst_89 = arith.constant 1.000000e-01 : f32
    %228 = vector.broadcast %cst_89 : f32 to vector<16x32xf32>
    %229 = arith.addf %228, %227 : vector<16x32xf32>
    %cst_90 = arith.constant 0.000000e+00 : f32
    %230 = vector.broadcast %cst_90 : f32 to vector<16x160xf32>
    %231 = arith.maximumf %215, %230 : vector<16x160xf32>
    %232 = math.absf %215 : vector<16x160xf32>
    %cst_91 = arith.constant 0.000000e+00 : f32
    %233 = vector.broadcast %cst_91 : f32 to vector<16x160xf32>
    %234 = arith.subf %233, %232 : vector<16x160xf32>
    %235 = math.exp %234 : vector<16x160xf32>
    %cst_92 = arith.constant 1.000000e+00 : f32
    %236 = vector.broadcast %cst_92 : f32 to vector<16x160xf32>
    %237 = arith.addf %236, %235 : vector<16x160xf32>
    %238 = math.log %237 : vector<16x160xf32>
    %239 = arith.addf %231, %238 : vector<16x160xf32>
    %cst_93 = arith.constant 0.899999976 : f32
    %240 = vector.broadcast %cst_93 : f32 to vector<16x160xf32>
    %241 = arith.mulf %240, %239 : vector<16x160xf32>
    %cst_94 = arith.constant 1.000000e-01 : f32
    %242 = vector.broadcast %cst_94 : f32 to vector<16x160xf32>
    %243 = arith.addf %242, %241 : vector<16x160xf32>
    %cst_95 = arith.constant 2.000000e+00 : f32
    %244 = vector.broadcast %cst_95 : f32 to vector<16x32xf32>
    %245 = arith.mulf %244, %229 : vector<16x32xf32>
    %246 = math.exp %245 : vector<16x32xf32>
    %cst_96 = arith.constant -2.000000e+00 : f32
    %247 = vector.broadcast %cst_96 : f32 to vector<16x160xf32>
    %248 = arith.mulf %247, %243 : vector<16x160xf32>
    %249 = math.exp %248 : vector<16x160xf32>
    %250 = vector.extract_strided_slice %243 {offsets = [0, 96], sizes = [16, 32], strides = [1, 1]} : vector<16x160xf32> to vector<16x32xf32>
    %cst_97 = arith.constant 2.000000e+00 : f32
    %251 = vector.broadcast %cst_97 : f32 to vector<16x32xf32>
    %252 = arith.mulf %251, %250 : vector<16x32xf32>
    %253 = math.exp %252 : vector<16x32xf32>
    %254 = vector.extract_strided_slice %178 {offsets = [0, 96], sizes = [16, 32], strides = [1, 1]} : vector<16x160xf32> to vector<16x32xf32>
    %255 = tpu.concatenate %168, %168, %168, %168, %168, %254 in 1 : vector<16x32xf32>, vector<16x32xf32>, vector<16x32xf32>, vector<16x32xf32>, vector<16x32xf32>, vector<16x32xf32> -> vector<16x192xf32>
    %256 = tpu.concatenate %229, %229, %229, %229, %229, %250 in 1 : vector<16x32xf32>, vector<16x32xf32>, vector<16x32xf32>, vector<16x32xf32>, vector<16x32xf32>, vector<16x32xf32> -> vector<16x192xf32>
    %257 = tpu.concatenate %246, %246, %246, %246, %246, %253 in 1 : vector<16x32xf32>, vector<16x32xf32>, vector<16x32xf32>, vector<16x32xf32>, vector<16x32xf32>, vector<16x32xf32> -> vector<16x192xf32>
    %258 = vector.extract_strided_slice %178 {offsets = [0, 128], sizes = [16, 32], strides = [1, 1]} : vector<16x160xf32> to vector<16x32xf32>
    %259 = tpu.concatenate %178, %258 in 1 : vector<16x160xf32>, vector<16x32xf32> -> vector<16x192xf32>
    %260 = vector.extract_strided_slice %243 {offsets = [0, 128], sizes = [16, 32], strides = [1, 1]} : vector<16x160xf32> to vector<16x32xf32>
    %261 = tpu.concatenate %243, %260 in 1 : vector<16x160xf32>, vector<16x32xf32> -> vector<16x192xf32>
    %262 = vector.extract_strided_slice %249 {offsets = [0, 128], sizes = [16, 32], strides = [1, 1]} : vector<16x160xf32> to vector<16x32xf32>
    %263 = tpu.concatenate %249, %262 in 1 : vector<16x160xf32>, vector<16x32xf32> -> vector<16x192xf32>
    %264 = arith.subf %261, %256 : vector<16x192xf32>
    %265 = arith.subf %255, %259 : vector<16x192xf32>
    %266 = arith.mulf %265, %265 : vector<16x192xf32>
    %267 = arith.addf %257, %266 : vector<16x192xf32>
    %cst_98 = arith.constant 5.000000e-01 : f32
    %268 = vector.broadcast %cst_98 : f32 to vector<16x192xf32>
    %269 = arith.mulf %268, %263 : vector<16x192xf32>
    %270 = arith.mulf %267, %269 : vector<16x192xf32>
    %271 = arith.addf %264, %270 : vector<16x192xf32>
    %cst_99 = arith.constant 5.000000e-01 : f32
    %272 = vector.broadcast %cst_99 : f32 to vector<16x192xf32>
    %273 = arith.subf %271, %272 : vector<16x192xf32>
    %274 = tpu.concatenate %6, %10, %10, %10 in 1 : vector<16x3xf32>, vector<16x1xf32>, vector<16x1xf32>, vector<16x1xf32> -> vector<16x6xf32>
    %275 = arith.truncf %274 : vector<16x6xf32> to vector<16x6xbf16>
    %c0_100 = arith.constant 0 : index
    %c0_101 = arith.constant 0 : index
    %276 = vector.load %arg27[%c0_100, %c0_101] : memref<6x192xbf16, #tpu.memory_space<vmem>>, vector<6x192xbf16>
    %cst_102 = arith.constant dense<0.000000e+00> : vector<16x192xf32>
    %277 = tpu.matmul %275, %276, %cst_102 {dimension_numbers = #tpu.dot_dimension_numbers<[1], [0], [0], [1], [0, 0, 1, 1], [], []>} : vector<16x6xbf16>, vector<6x192xbf16>, vector<16x192xf32> -> vector<16x192xf32>
    %278 = arith.mulf %273, %277 : vector<16x192xf32>
    %cst_103 = arith.constant dense<0.000000e+00> : vector<192xf32>
    %279 = vector.multi_reduction <add>, %278, %cst_103 [0] : vector<16x192xf32> to vector<192xf32>
    %280 = vector.shape_cast %279 : vector<192xf32> to vector<1x192xf32>
    %c0_104 = arith.constant 0 : index
    %c0_105 = arith.constant 0 : index
    %281 = vector.load %arg28[%c0_104, %c0_105] : memref<192x16xf32, #tpu.memory_space<vmem>>, vector<192x16xf32>
    %cst_106 = arith.constant dense<0.000000e+00> : vector<1x16xf32>
    %282 = tpu.matmul %280, %281, %cst_106 {dimension_numbers = #tpu.dot_dimension_numbers<[1], [0], [0], [1], [0, 0, 1, 1], [], []>} : vector<1x192xf32>, vector<192x16xf32>, vector<1x16xf32> -> vector<1x16xf32>
    %cst_107 = arith.constant dense<0.000000e+00> : vector<3xf32>
    %283 = vector.multi_reduction <add>, %6, %cst_107 [0] : vector<16x3xf32> to vector<3xf32>
    %284 = vector.shape_cast %283 : vector<3xf32> to vector<1x3xf32>
    %cst_108 = arith.constant 0.000000e+00 : f32
    %285 = vector.broadcast %cst_108 : f32 to vector<1x6xf32>
    %cst_109 = arith.constant 0.000000e+00 : f32
    %286 = vector.broadcast %cst_109 : f32 to vector<1x7xf32>
    %287 = tpu.concatenate %285, %284, %286 in 1 : vector<1x6xf32>, vector<1x3xf32>, vector<1x7xf32> -> vector<1x16xf32>
    %288 = arith.addf %282, %287 : vector<1x16xf32>
    %289 = vector.shape_cast %288 : vector<1x16xf32> to vector<1x1x16xf32>
    %290 = vector.shape_cast %289 : vector<1x1x16xf32> to vector<1x1x16xf32>
    %291 = vector.broadcast %290 : vector<1x1x16xf32> to vector<1x8x16xf32>
    %c0_110 = arith.constant 0 : index
    %c0_111 = arith.constant 0 : index
    %c0_112 = arith.constant 0 : index
    %292 = vector.load %arg30[%c0_110, %c0_111, %c0_112] : memref<1x8x16xf32, #tpu.memory_space<vmem>>, vector<1x8x16xf32>
    tpu.vector_store %arg30[%c0_110, %c0_111, %c0_112], %291 {strides = array<i32>} : memref<1x8x16xf32, #tpu.memory_space<vmem>>, vector<1x8x16xf32>,
    return
  }
  func.func @transform_0(%arg0: i32) -> (i32, i32) {
    %c0_i32 = arith.constant 0 : i32
    %c0_i32_0 = arith.constant 0 : i32
    return %arg0, %c0_i32 : i32, i32
  }
  func.func @transform_1(%arg0: i32) -> (i32, i32) {
    %c0_i32 = arith.constant 0 : i32
    %c0_i32_0 = arith.constant 0 : i32
    return %arg0, %c0_i32 : i32, i32
  }
  func.func @transform_2(%arg0: i32) -> (i32, i32) {
    %c0_i32 = arith.constant 0 : i32
    %c0_i32_0 = arith.constant 0 : i32
    %c0_i32_1 = arith.constant 0 : i32
    return %c0_i32, %c0_i32_0 : i32, i32
  }
  func.func @transform_3(%arg0: i32) -> (i32, i32) {
    %c0_i32 = arith.constant 0 : i32
    %c0_i32_0 = arith.constant 0 : i32
    %c0_i32_1 = arith.constant 0 : i32
    return %c0_i32, %c0_i32_0 : i32, i32
  }
  func.func @transform_4(%arg0: i32) -> (i32, i32) {
    %c0_i32 = arith.constant 0 : i32
    %c0_i32_0 = arith.constant 0 : i32
    %c0_i32_1 = arith.constant 0 : i32
    return %c0_i32, %c0_i32_0 : i32, i32
  }
  func.func @transform_5(%arg0: i32) -> (i32, i32) {
    %c0_i32 = arith.constant 0 : i32
    %c0_i32_0 = arith.constant 0 : i32
    %c0_i32_1 = arith.constant 0 : i32
    return %c0_i32, %c0_i32_0 : i32, i32
  }
  func.func @transform_6(%arg0: i32) -> (i32, i32) {
    %c0_i32 = arith.constant 0 : i32
    %c0_i32_0 = arith.constant 0 : i32
    %c0_i32_1 = arith.constant 0 : i32
    return %c0_i32, %c0_i32_0 : i32, i32
  }
  func.func @transform_7(%arg0: i32) -> (i32, i32) {
    %c0_i32 = arith.constant 0 : i32
    %c0_i32_0 = arith.constant 0 : i32
    %c0_i32_1 = arith.constant 0 : i32
    return %c0_i32, %c0_i32_0 : i32, i32
  }
  func.func @transform_8(%arg0: i32) -> (i32, i32) {
    %c0_i32 = arith.constant 0 : i32
    %c0_i32_0 = arith.constant 0 : i32
    %c0_i32_1 = arith.constant 0 : i32
    return %c0_i32, %c0_i32_0 : i32, i32
  }
  func.func @transform_9(%arg0: i32) -> (i32, i32) {
    %c0_i32 = arith.constant 0 : i32
    %c0_i32_0 = arith.constant 0 : i32
    %c0_i32_1 = arith.constant 0 : i32
    return %c0_i32, %c0_i32_0 : i32, i32
  }
  func.func @transform_10(%arg0: i32) -> (i32, i32) {
    %c0_i32 = arith.constant 0 : i32
    %c0_i32_0 = arith.constant 0 : i32
    %c0_i32_1 = arith.constant 0 : i32
    return %c0_i32, %c0_i32_0 : i32, i32
  }
  func.func @transform_11(%arg0: i32) -> (i32, i32) {
    %c0_i32 = arith.constant 0 : i32
    %c0_i32_0 = arith.constant 0 : i32
    %c0_i32_1 = arith.constant 0 : i32
    return %c0_i32, %c0_i32_0 : i32, i32
  }
  func.func @transform_12(%arg0: i32) -> (i32, i32) {
    %c0_i32 = arith.constant 0 : i32
    %c0_i32_0 = arith.constant 0 : i32
    %c0_i32_1 = arith.constant 0 : i32
    return %c0_i32, %c0_i32_0 : i32, i32
  }
  func.func @transform_13(%arg0: i32) -> (i32, i32) {
    %c0_i32 = arith.constant 0 : i32
    %c0_i32_0 = arith.constant 0 : i32
    %c0_i32_1 = arith.constant 0 : i32
    return %c0_i32, %c0_i32_0 : i32, i32
  }
  func.func @transform_14(%arg0: i32) -> (i32, i32) {
    %c0_i32 = arith.constant 0 : i32
    %c0_i32_0 = arith.constant 0 : i32
    %c0_i32_1 = arith.constant 0 : i32
    return %c0_i32, %c0_i32_0 : i32, i32
  }
  func.func @transform_15(%arg0: i32) -> (i32, i32) {
    %c0_i32 = arith.constant 0 : i32
    %c0_i32_0 = arith.constant 0 : i32
    %c0_i32_1 = arith.constant 0 : i32
    return %c0_i32, %c0_i32_0 : i32, i32
  }
  func.func @transform_16(%arg0: i32) -> (i32, i32) {
    %c0_i32 = arith.constant 0 : i32
    %c0_i32_0 = arith.constant 0 : i32
    %c0_i32_1 = arith.constant 0 : i32
    return %c0_i32, %c0_i32_0 : i32, i32
  }
  func.func @transform_17(%arg0: i32) -> (i32, i32) {
    %c0_i32 = arith.constant 0 : i32
    %c0_i32_0 = arith.constant 0 : i32
    %c0_i32_1 = arith.constant 0 : i32
    return %c0_i32, %c0_i32_0 : i32, i32
  }
  func.func @transform_18(%arg0: i32) -> (i32, i32) {
    %c0_i32 = arith.constant 0 : i32
    %c0_i32_0 = arith.constant 0 : i32
    %c0_i32_1 = arith.constant 0 : i32
    return %c0_i32, %c0_i32_0 : i32, i32
  }
  func.func @transform_19(%arg0: i32) -> (i32, i32) {
    %c0_i32 = arith.constant 0 : i32
    %c0_i32_0 = arith.constant 0 : i32
    %c0_i32_1 = arith.constant 0 : i32
    return %c0_i32, %c0_i32_0 : i32, i32
  }
  func.func @transform_20(%arg0: i32) -> (i32, i32) {
    %c0_i32 = arith.constant 0 : i32
    %c0_i32_0 = arith.constant 0 : i32
    %c0_i32_1 = arith.constant 0 : i32
    return %c0_i32, %c0_i32_0 : i32, i32
  }
  func.func @transform_21(%arg0: i32) -> (i32, i32) {
    %c0_i32 = arith.constant 0 : i32
    %c0_i32_0 = arith.constant 0 : i32
    %c0_i32_1 = arith.constant 0 : i32
    return %c0_i32, %c0_i32_0 : i32, i32
  }
  func.func @transform_22(%arg0: i32) -> (i32, i32) {
    %c0_i32 = arith.constant 0 : i32
    %c0_i32_0 = arith.constant 0 : i32
    %c0_i32_1 = arith.constant 0 : i32
    return %c0_i32, %c0_i32_0 : i32, i32
  }
  func.func @transform_23(%arg0: i32) -> (i32, i32) {
    %c0_i32 = arith.constant 0 : i32
    %c0_i32_0 = arith.constant 0 : i32
    %c0_i32_1 = arith.constant 0 : i32
    return %c0_i32, %c0_i32_0 : i32, i32
  }
  func.func @transform_24(%arg0: i32) -> (i32, i32) {
    %c0_i32 = arith.constant 0 : i32
    %c0_i32_0 = arith.constant 0 : i32
    %c0_i32_1 = arith.constant 0 : i32
    return %c0_i32, %c0_i32_0 : i32, i32
  }
  func.func @transform_25(%arg0: i32) -> (i32, i32) {
    %c0_i32 = arith.constant 0 : i32
    %c0_i32_0 = arith.constant 0 : i32
    %c0_i32_1 = arith.constant 0 : i32
    return %c0_i32, %c0_i32_0 : i32, i32
  }
  func.func @transform_26(%arg0: i32) -> (i32, i32) {
    %c0_i32 = arith.constant 0 : i32
    %c0_i32_0 = arith.constant 0 : i32
    %c0_i32_1 = arith.constant 0 : i32
    return %c0_i32, %c0_i32_0 : i32, i32
  }
  func.func @transform_27(%arg0: i32) -> (i32, i32) {
    %c0_i32 = arith.constant 0 : i32
    %c0_i32_0 = arith.constant 0 : i32
    %c0_i32_1 = arith.constant 0 : i32
    return %c0_i32, %c0_i32_0 : i32, i32
  }
  func.func @transform_28(%arg0: i32) -> (i32, i32) {
    %c0_i32 = arith.constant 0 : i32
    %c0_i32_0 = arith.constant 0 : i32
    return %arg0, %c0_i32 : i32, i32
  }
  func.func @transform_29(%arg0: i32) -> (i32, i32, i32) {
    %c0_i32 = arith.constant 0 : i32
    %c0_i32_0 = arith.constant 0 : i32
    %c0_i32_1 = arith.constant 0 : i32
    return %arg0, %c0_i32, %c0_i32_0 : i32, i32, i32
  }
}

</mosaic_0001>

<bundles_post_ra>
// kernel: forward.1
= control target key start
LH: loop header
LB: loop body
LE: loop exit
PB: predicated region body
PF: predicated region fallthrough
CT: control target
= control target key end

     0   :  { %s3666_s6 = smov 1   ;;  %s3667_s10 = smov 2   ;;  %s4664_s0 = inlined_call_operand.smem [shape: u32[30], index: -1, kind: input, shape index: {}] }
   0x1   :  { %s3716_s5 = sld [smem:[%s4664_s0]]   ;;  %s3668_s14 = smov 3  }
   0x2   :  { %s3721_s9 = sld [smem:[%s4664_s0 + %s3666_s6]]   ;;  %s3669_s18 = smov 4  }
   0x3   :  { %s3726_s13 = sld [smem:[%s4664_s0 + %s3667_s10]]   ;;  %s3670_s22 = smov 5  }
   0x4   :  { %s3731_s17 = sld [smem:[%s4664_s0 + %s3668_s14]]   ;;  %s3671_s26 = smov 6  }
   0x5   :  { %s3736_s21 = sld [smem:[%s4664_s0 + %s3669_s18]]   ;;  %s3672_s30 = smov 7  }
   0x6   :  { %s3741_s25 = sld [smem:[%s4664_s0 + %s3670_s22]]   ;;  %s3673_s4 = smov 8  }
   0x7   :  { %s3746_s29 = sld [smem:[%s4664_s0 + %s3671_s26]]   ;;  %s3674_s10 = smov 9  }
   0x8   :  { %s3751_s3 = sld [smem:[%s4664_s0 + %s3672_s30]]   ;;  %s3675_s15 = smov 10  }
   0x9   :  { %s3756_s8 = sld [smem:[%s4664_s0 + %s3673_s4]]   ;;  %s3676_s20 = smov 11  }
   0xa   :  { %s3761_s14 = sld [smem:[%s4664_s0 + %s3674_s10]]   ;;  %s3677_s26 = smov 12  }
   0xb   :  { %s3766_s19 = sld [smem:[%s4664_s0 + %s3675_s15]]   ;;  %s3678_s1 = smov 13  }
   0xc   :  { %s3771_s24 = sld [smem:[%s4664_s0 + %s3676_s20]]   ;;  %s3679_s7 = smov 14  }
   0xd   :  { %s3776_s30 = sld [smem:[%s4664_s0 + %s3677_s26]]   ;;  %s3680_s15 = smov 15  }
   0xe   :  { %s3781_s6 = sld [smem:[%s4664_s0 + %s3678_s1]]   ;;  %s3681_s22 = smov 16  }
   0xf   :  { %s3786_s12 = sld [smem:[%s4664_s0 + %s3679_s7]]   ;;  %s3682_s28 = smov 17  }
  0x10   :  { %s3791_s20 = sld [smem:[%s4664_s0 + %s3680_s15]]   ;;  %s3683_s7 = smov 18  }
  0x11   :  { %s3796_s27 = sld [smem:[%s4664_s0 + %s3681_s22]]   ;;  %s3684_s15 = smov 19  }
  0x12   :  { %s3801_s4 = sld [smem:[%s4664_s0 + %s3682_s28]]   ;;  %s3685_s22 = smov 20  }
  0x13   :  { %s3686_s28 = smov 21  }
  0x14   :  { %4668 = sst [smem:[#allocation2_spill]] %s3781_s6 }
  0x15   :  { %4669 = sst [smem:[#allocation3_spill]] %s3786_s12 }
  0x16   :  { %4670 = sst [smem:[#allocation4_spill]] %s3791_s20 }
  0x17   :  { %4671 = sst [smem:[#allocation5_spill]] %s3796_s27 }
  0x18   :  { %4672 = sst [smem:[#allocation6_spill]] %s3801_s4 }
  0x19   :  { %s3806_s12 = sld [smem:[%s4664_s0 + %s3683_s7]]   ;;  %s3687_s7 = smov 22  }
  0x1a   :  { %s3811_s20 = sld [smem:[%s4664_s0 + %s3684_s15]]   ;;  %s3688_s15 = smov 23  }
  0x1b   :  { %s3816_s27 = sld [smem:[%s4664_s0 + %s3685_s22]]   ;;  %s3689_s22 = smov 24  }
  0x1c   :  { %s3821_s4 = sld [smem:[%s4664_s0 + %s3686_s28]]   ;;  %s3690_s28 = smov 25  }
  0x1d   :  { %s3826_s6 = sld [smem:[%s4664_s0 + %s3687_s7]]   ;;  %s3691_s7 = smov 26  }
  0x20   :  { %4673 = sst [smem:[#allocation7_spill]] %s3811_s20 }
  0x21   :  { %4674 = sst [smem:[#allocation8_spill]] %s3816_s27 }
  0x22   :  { %4675 = sst [smem:[#allocation9_spill]] %s3821_s4 }
  0x23   :  { %4676 = sst [smem:[#allocation10_spill]] %s3826_s6 }
  0x24   :  { %s3831_s20 = sld [smem:[%s4664_s0 + %s3688_s15]]   ;;  %s3692_s15 = smov 27  }
  0x25   :  { %s3836_s27 = sld [smem:[%s4664_s0 + %s3689_s22]]   ;;  %s3693_s22 = smov 28  }
  0x26   :  { %s3841_s4 = sld [smem:[%s4664_s0 + %s3690_s28]]   ;;  %s3694_s28 = smov 29  }
  0x27   :  { %s3846_s6 = sld [smem:[%s4664_s0 + %s3691_s7]]   ;;  %s3863_s7 = smov 0  }
  0x2a   :  { %4677 = sst [smem:[#allocation11_spill]] %s3831_s20 }
  0x2b   :  { %4678 = sst [smem:[#allocation12_spill]] %s3836_s27 }
  0x2c   :  { %4679 = sst [smem:[#allocation13_spill]] %s3841_s4 }
  0x2d   :  { %s3851_s20 = sld [smem:[%s4664_s0 + %s3692_s15]]  }
  0x2e   :  { %s3856_s27 = sld [smem:[%s4664_s0 + %s3693_s22]]  }
  0x2f   :  { %s3861_s4 = sld [smem:[%s4664_s0 + %s3694_s28]]  }
  0x30 LB: > { %s3869_s10 = sadd.s32 4294967295, %s3664_s7   ;;  %p3079_p0 = scmp.ge.s32.totalorder %s3664_s7, 1  ;;  %s3664_s7 = sphi %s3863_s7, %s70_s7  }
  0x31   : > { %p832_p1 = scmp.lt.s32.totalorder %s3664_s7, 4 }
  0x33   : > { %p833_p2 = pnand %p3079_p0, %p832_p1 }
  0x34   : > { %s3080_s0 = sshll.u32 (!%p833_p2), %s3869_s10, 1  ;;  %s3699_s18 = smov (!%p833_p2), 64  }
  0x35   : > { %836 = sbr.rel (%p833_p2) target bundleno = 2020 (0x7e4), region = 132  ;;  %p918_p3 = scmp.lt.s32.totalorder (!%p833_p2), %s3080_s0, 5 }
  0x36   : > { %s4684_s22 = sld [smem:[#allocation2_spill]] (!%p833_p2)  ;;  %s3701_s26 = smov (!%p833_p2), 3  }
  0x37   : > { %s4685_s23 = sld [smem:[#allocation7_spill]] (!%p833_p2)  ;;  %p935_p4 = scmp.lt.s32.totalorder (!%p833_p2), %s3869_s10, 2 }
  0x38   : > { %s4686_s28 = sld [smem:[#allocation3_spill]] (!%p833_p2) }
  0x39   : > { %s4687_s1 = sld [smem:[#allocation4_spill]] (!%p833_p2) }
  0x3a   : > { %v3409_v0 = vld [vmem:[%s3736_s21 + $0x8] sm:$0xff]  ;;  %v3695_v1 = vmov 0   ;;  %v3408_v2 = vld [vmem:[%s3736_s21] sm:$0xff]  ;;  %v3101_v3 = vld [vmem:[%s3726_s13 + $0x10] sm:$0xf]  ;;  %s4697_s0 = smov (!%p918_p3, %s3080_s0), 5  ;;  %v944_v22 = vlaneseq }
  0x3b   : > { %3520 = vset.pattern.permute.xlu0 %v3695_v1  ;;  %v3407_v4 = vld [vmem:[%s3726_s13 + $0x14] sm:$0xf0]  ;;  %1099 = vmatpush.bf16.msra.mxu2 %v3409_v0  ;;  %v3406_v6 = vld [vmem:[%s3726_s13 + $0x14] sm:$0xf]  ;;  %v3103_v7 = vld [vmem:[%s3726_s13 + $0x18] sm:$0xf0] }
  0x3c   : > { %v3102_v5 = vor.u32 %v3407_v4, %v3101_v3  ;;  %v3093_v8 = vld [vmem:[%s3726_s13] sm:$0xf]  ;;  %v3106_v9 = vor.u32 %v3406_v6, %v3103_v7  ;;  %v3405_v10 = vld [vmem:[%s3726_s13 + $0x4] sm:$0xf0]  ;;  %v3404_v11 = vld [vmem:[%s3726_s13 + $0x4] sm:$0xf] }
  0x3d   : > { %v3094_v12 = vor.u32 %v3405_v10, %v3093_v8  ;;  %v3095_v13 = vld [vmem:[%s3726_s13 + $0x8] sm:$0xf0]  ;;  %s3885_s11 = sshll.u32 %s4697_s0, 3  ;;  %vm995_vm0 = vcmask 261120   ;;  %v3696_v20 = vmov 1   ;;  %v3697_v21 = vmov 2  }
  0x3e   : > { %1005 = vmatpush.bf16.msra.mxu0 %v3102_v5  ;;  %1019 = vmatpush.bf16.msra.mxu1 %v3106_v9  ;;  %v3098_v14 = vor.u32 %v3404_v11, %v3095_v13  ;;  %s927_s15 = scalar_lea.vmem %s3721_s9, %s3885_s11  ;;  %s921_s16 = scalar_lea.vmem %s3716_s5, %s3885_s11  ;;  %v945_v24 = vand.u32 127, %v944_v22  ;;  %v3698_v26 = vmov 0.0   ;;  %v3569_v30 = vld [vmem:[%s3741_s25] ss:$0 sm:$0xff]  ;;  %vm1109_vm3 = vcmask 523264   ;;  %v3413_v45 = vld [vmem:[%s3756_s8 + $0x18] sm:$0xff] }
  0x3f   : > { %1100 = vmatpush.bf16.msra.mxu2 %v3408_v2  ;;  %v3889_v15 = vld [vmem:[%s927_s15] sm:$0xff]  ;;  %v941_v17 = vld [vmem:[%s921_s16 + $0x8] sm:$0xff]  ;;  %3521 = vset.pattern.permute.xlu1 %v3696_v20  ;;  %v3700_v46 = vmov 64.0   ;;  %v3412_v57 = vld [vmem:[%s3756_s8 + $0x10] sm:$0xff]  ;;  %s4688_s2 = sld [smem:[#allocation5_spill]]  ;;  %s4699_s10 = smov (!%p935_p4, %s3869_s10), 2 }
  0x40   : > { %947 = vperm.xlu0 %3520, %v3889_v15   ;;  %v940_v16 = vld [vmem:[%s921_s16] sm:$0xff]  ;;  %v3897_v19 = vld [vmem:[%s927_s15 + $0x8] sm:$0xff]  ;;  %3540 = vset.pattern.permute.xlu2 %v3696_v20  ;;  %3576 = vrcp.f32 %v3700_v46  ;;  %s4689_s0 = sld [smem:[#allocation6_spill]]  ;;  %s3702_s15 = smov 96  }
  0x41   : > { %v964_v18 = vpack.c.bf16 %v941_v17, %v940_v16  ;;  %v969_v34 = vld [vmem:[%s3731_s17] sm:$0x3]  ;;  %1217 = vmatpush.bf16.msra.mxu3 %v3413_v45  ;;  %v3411_v60 = vld [vmem:[%s3756_s8 + $0x8] sm:$0xff]  ;;  %s3703_s16 = smov 4  }
  0x42   : > { %1006 = vmatpush.bf16.msra.mxu0 %v3094_v12  ;;  %1020 = vmatpush.bf16.msra.mxu1 %v3098_v14  ;;  %v971_v36 = vperm.slane %v969_v34, 0  ;;  %v3410_v61 = vld [vmem:[%s3756_s8] sm:$0xff]  ;;  %v972_v3 = vperm.slane %v969_v34, 1 }
  0x43   : > { %3117 = vmatmul.msk.bf16.vlgmr.msra.gmra.mxu2 %vm995_vm0, %v964_v18 }
  0x45   : > { %3107 = vmatmul.msk.bf16.vlgmr.msra.gmra.mxu0 %vm995_vm0, %v964_v18  ;;  %3108 = vmatmul.msk.bf16.vlgmr.msra.gmra.mxu1 %vm995_vm0, %v964_v18 }
  0x46   : > { %v3577_v47 = vpop.eup %3576  ;;  %1218 = vmatpush.bf16.msra.mxu3 %v3412_v57 }
  0x47   : > { %v1117_v48 = vmul.f32 64.0, %v3577_v47  ;;  %vm1121_vm4 = vweird.f32 %v3577_v47 }
  0x48   : > { %950 = vperm.xlu0 %3520, %v3897_v19  }
  0x49   : > { %v1118_v49 = vsub.f32 1.0, %v1117_v48 }
  0x4a   : > { %1219 = vmatpush.bf16.msra.mxu3 %v3411_v60  ;;  %v3197_v60 = vld [vmem:[%s3776_s30 + $0x78] sm:$0xf] }
  0x4b   : > { %v1119_v51 = vmul.f32 %v3577_v47, %v1118_v49 }
  0x4d   : > { %v1120_v52 = vadd.f32 %v3577_v47, %v1119_v51 }
  0x4e   : > { %1220 = vmatpush.bf16.msra.mxu3 %v3410_v61  ;;  %v3431_v61 = vld [vmem:[%s3776_s30 + $0x88] sm:$0xf0] }
  0x4f   : > { %v3924_v53 = vsel %vm1121_vm4, %v3577_v47, %v1120_v52  ;;  %vm1936_vm4 = vcmask 15360  }
  0x50   : > { %3533 = vset.pattern.permute.xlu0 %v3697_v21 }
  0xb2   : > { %v948_v23 = vpop.permute.xlu0 %947 }
  0xb3   : > { %vm952_vm1 = vcmp.eq.s32.totalorder %v948_v23, %v945_v24 }
  0xb4   : > { %v3903_v27 = vsel %vm952_vm1, 1.0, %v3698_v26 }
  0xba   : > { %v951_v25 = vpop.permute.xlu0 %950 }
  0xbb   : > { %vm953_vm2 = vcmp.eq.s32.totalorder %v951_v25, %v945_v24 }
  0xbc   : > { %v3906_v28 = vsel %vm953_vm2, 1.0, %v3698_v26  ;;  %vm1537_vm2 = vcmask 785408  }
  0xbd   : > { %v3910_v29 = vpack.i.bf16 %v3906_v28, %v3903_v27 }
  0xbf   : > { %3535 = vperm.xlu0 %3533, %v3910_v29   ;;  %3523 = vperm.xlu1 %3521, %v3910_v29  }
  0xc2   : > { %v1008_v35 = vpop.f32.mrf.mxu0  ;;  %v1022_v2 = vpop.f32.mrf.mxu1 }
  0xc3   : > { %v1009_v37 = vadd.f32 %v1008_v35, %v971_v36  ;;  %v1023_v6 = vadd.f32 %v1022_v2, %v972_v3  ;;  %v3205_v2 = vld [vmem:[%s3776_s30 + $0x80] sm:$0xf] }
  0xc6   : > { %v1102_v31 = vpop.f32.mrf.mxu2 }
  0xc7   : > { %3527 = vset.pattern.permute.xlu1 %v3695_v1  ;;  %3541 = vset.pattern.permute.xlu0 %v3695_v1  ;;  %v1103_v32 = vadd.f32 %v3569_v30, %v1102_v31 }
  0xc8   : > { %3529 = vperm.xlu1 %3527, %v3910_v29  }
  0xc9   : > { %v1110_v33 = vsel %vm1109_vm3, %v1103_v32, 0.0 }
  0xca   : > { %v1010_v41 = vpop.f32.mrf.mxu0  ;;  %v1024_v12 = vpop.f32.mrf.mxu1 }
  0xcb   : > { %v1011_v43 = vadd.f32 %v1010_v41, %v971_v36  ;;  %v1025_v17 = vadd.f32 %v1024_v12, %v972_v3  ;;  %v3432_v3 = vld [vmem:[%s3776_s30 + $0x90] sm:$0xf0] }
  0xce   : > { %v1104_v62 = vpop.f32.mrf.mxu2 }
  0xcf   : > { %v1105_v63 = vadd.f32 %v3569_v30, %v1104_v62  ;;  %v3572_v30 = vld [vmem:[%s3761_s14] ss:$0 sm:$0xff]  ;;  %v3429_v62 = vld [vmem:[%s3776_s30 + $0x7c] sm:$0xf] }
  0xd0   : > { %3539 = vset.pattern.permute.xlu1 %v3696_v20 }
  0xd1   : > { %v1113_v0 = vsel %vm1109_vm3, %v1105_v63, 0.0 }
  0xf2   : > { %1111 = vadd.xlane.f32.xlu1 %v1110_v33 }
 0x131   : > { %v3524_v38 = vpop.permute.xlu1 %3523  ;;  %v3536_v4 = vpop.permute.xlu0 %3535 }
 0x132   : > { %v3525_v39 = vunpack.i.l.bf16 %v3524_v38  ;;  %v3526_v42 = vunpack.i.h.bf16 %v3524_v38  ;;  %v3537_v7 = vunpack.i.l.bf16 %v3536_v4  ;;  %v3538_v16 = vunpack.i.h.bf16 %v3536_v4 }
 0x134   : > { %v1049_v40 = vmul.f32 %v3525_v39, %v1009_v37  ;;  %v1050_v44 = vmul.f32 %v3526_v42, %v1011_v43  ;;  %v1069_v10 = vmul.f32 %v3537_v7, %v1023_v6  ;;  %v1070_v22 = vmul.f32 %v3538_v16, %v1025_v17  ;;  %v3430_v6 = vld [vmem:[%s3776_s30 + $0x84] sm:$0xf]  ;;  %v3207_v7 = vld [vmem:[%s3776_s30 + $0x94] sm:$0xf0]  ;;  %v3427_v17 = vld [vmem:[%s3776_s30 + $0x68] sm:$0xf0] }
 0x135   : > { %v3185_v16 = vld [vmem:[%s3776_s30 + $0x58] sm:$0xf] }
 0x136   : > { %1053 = vrot.lane.b32.xlu2 %v1049_v40, %s3699_s18 }
 0x13a   : > { %v3530_v50 = vpop.permute.xlu1 %3529 }
 0x13b   : > { %v3531_v5 = vunpack.i.l.bf16 %v3530_v50  ;;  %v3532_v13 = vunpack.i.h.bf16 %v3530_v50 }
 0x13d   : > { %v1037_v8 = vmul.f32 %v3531_v5, %v1009_v37  ;;  %v1038_v18 = vmul.f32 %v3532_v13, %v1011_v43  ;;  %v3206_v5 = vor.u32 %v3432_v3, %v3205_v2  ;;  %v3415_v2 = vld [vmem:[%s3776_s30 + $0xc] sm:$0xf]  ;;  %v3147_v3 = vld [vmem:[%s3776_s30 + $0x1c] sm:$0xf0] }
 0x13e   : > { %1055 = vrot.lane.b32.xlu2 %v1050_v44, %s3699_s18 }
 0x13f   : > { %1463 = vmatpush.bf16.msrb.mxu2 %v3206_v5  ;;  %v3150_v5 = vor.u32 %v3415_v2, %v3147_v3  ;;  %v1535_v2 = vld [vmem:[%s3806_s12 + $0xd0] sm:$0xff] }
 0x165   : > { %v1112_v54 = vpop.xlane.xlu1 %1111 }
 0x166   : > { %v1123_v55 = vmul.f32 %v3924_v53, %v1112_v54 }
 0x167   : > { %1114 = vadd.xlane.f32.xlu2 %v1113_v0  ;;  %v3199_v0 = vld [vmem:[%s3776_s30 + $0x8c] sm:$0xf0] }
 0x168   : > { %v3927_v56 = vsub.f32 %v1103_v32, %v1123_v55  ;;  %v3202_v4 = vor.u32 %v3429_v62, %v3199_v0  ;;  %v3417_v62 = vld [vmem:[%s3776_s30 + $0x18] sm:$0xf0] }
 0x16a   : > { %v1127_v58 = vmul.f32 %v3927_v56, %v3927_v56  ;;  %1449 = vmatpush.bf16.msrb.mxu1 %v3202_v4 }
 0x16c   : > { %v1129_v59 = vsel %vm1109_vm3, %v1127_v58, 0.0 }
 0x16d   : > { %1130 = vadd.xlane.f32.xlu1 %v1129_v59 }
 0x190   : > { %v1054_v9 = vpop.permute.xlu2 %1053 }
 0x191   : > { %v1059_v11 = vadd.f32 %v1054_v9, %v1037_v8  ;;  %v3210_v8 = vor.u32 %v3430_v6, %v3207_v7  ;;  %v3177_v9 = vld [vmem:[%s3776_s30 + $0x50] sm:$0xf] }
 0x193   : > { %v1071_v14 = vadd.f32 %v1069_v10, %v1059_v11  ;;  %v3426_v10 = vld [vmem:[%s3776_s30 + $0x60] sm:$0xf0]  ;;  %v3424_v11 = vld [vmem:[%s3776_s30 + $0x54] sm:$0xf]  ;;  %1477 = vmatpush.bf16.msrb.mxu3 %v3210_v8 }
 0x194   : > { %v3178_v13 = vor.u32 %v3426_v10, %v3177_v9  ;;  %v3213_v9 = vld [vmem:[%s3776_s30 + $0x88] sm:$0xf]  ;;  %v3433_v10 = vld [vmem:[%s3776_s30 + $0x98] sm:$0xf0] }
 0x198   : > { %v1056_v21 = vpop.permute.xlu2 %1055 }
 0x199   : > { %v1060_v23 = vadd.f32 %v1056_v21, %v1038_v18 }
 0x19b   : > { %v1072_v24 = vadd.f32 %v1070_v22, %v1060_v23  ;;  %v3186_v22 = vor.u32 %v3427_v17, %v3185_v16  ;;  %v3425_v23 = vld [vmem:[%s3776_s30 + $0x5c] sm:$0xf]  ;;  %v3193_v17 = vld [vmem:[%s3776_s30 + $0x60] sm:$0xf] }
 0x19d   : > { %v1173_v25 = vpack.c.bf16 %v1072_v24, %v1071_v14  ;;  %v3179_v14 = vld [vmem:[%s3776_s30 + $0x64] sm:$0xf0]  ;;  %v3187_v24 = vld [vmem:[%s3776_s30 + $0x6c] sm:$0xf0]  ;;  %1464 = vmatpush.bf16.msrb.mxu2 %v3186_v22 }
 0x19e   : > { %v3182_v21 = vor.u32 %v3424_v11, %v3179_v14  ;;  %v3214_v14 = vor.u32 %v3433_v10, %v3213_v9 }
 0x19f   : > { %3134 = vmatmul.msk.bf16.vlgmr.msra.gmra.mxu3 %vm1109_vm3, %v1173_v25 }
 0x1a0   : > { %1450 = vmatpush.bf16.msrb.mxu1 %v3182_v21  ;;  %v3428_v21 = vld [vmem:[%s3776_s30 + $0x70] sm:$0xf0] }
 0x1a1   : > { %v3194_v22 = vor.u32 %v3428_v21, %v3193_v17  ;;  %v1519_v21 = vld [vmem:[%s3806_s12 + $0x50] sm:$0xff] }
 0x1da   : > { %v1115_v34 = vpop.xlane.xlu2 %1114 }
 0x1db   : > { %v1124_v35 = vmul.f32 %v3924_v53, %v1115_v34  ;;  %v3419_v34 = vld [vmem:[%s3776_s30 + $0x2c] sm:$0xf] }
 0x1dd   : > { %v3940_v38 = vsub.f32 %v1105_v63, %v1124_v35  ;;  %v3198_v63 = vor.u32 %v3431_v61, %v3197_v60  ;;  %v3139_v60 = vld [vmem:[%s3776_s30 + $0x14] sm:$0xf0]  ;;  %v3145_v61 = vld [vmem:[%s3776_s30 + $0x8] sm:$0xf] }
 0x1de   : > { %v3146_v0 = vor.u32 %v3417_v62, %v3145_v61  ;;  %v1523_v61 = vld [vmem:[%s3806_s12 + $0x70] sm:$0xff]  ;;  %v3571_v62 = vld [vmem:[%s3751_s3] ss:$0 sm:$0xff] }
 0x1df   : > { %v1128_v40 = vmul.f32 %v3940_v38, %v3940_v38  ;;  %1435 = vmatpush.bf16.msrb.mxu0 %v3198_v63 }
 0x1e0   : > { %v1131_v52 = vpop.xlane.xlu1 %1130 }
 0x1e1   : > { %v1132_v41 = vsel %vm1109_vm3, %v1128_v40, 0.0  ;;  %v1135_v55 = vmul.f32 %v1131_v52, %v3924_v53  ;;  %v3165_v40 = vld [vmem:[%s3776_s30 + $0x30] sm:$0xf]  ;;  %v3414_v52 = vld [vmem:[%s3776_s30 + $0x4] sm:$0xf] }
 0x1e2   : > { %v3142_v63 = vor.u32 %v3414_v52, %v3139_v60  ;;  %v3570_v52 = vld [vmem:[%s3746_s29] ss:$0 sm:$0xff]  ;;  %v1524_v60 = vld [vmem:[%s3806_s12 + $0x78] sm:$0xff] }
 0x1e3   : > { %v3960_v58 = vadd.f32 1e-05, %v1135_v55  ;;  %1436 = vmatpush.bf16.msrb.mxu0 %v3178_v13 }
 0x1e5   : > { %3578 = vrsqrt.f32 %v3960_v58  ;;  %vm1145_vm5 = vweird.f32 %v3960_v58 }
 0x1eb   : > { %v3977_v12 = vpop.eup %3578 }
 0x1ec   : > { %v1140_v35 = vmul.f32 %v3977_v12, %v3960_v58  ;;  %vm1146_vm6 = vweird.f32 %v3977_v12  ;;  %v1513_v58 = vld [vmem:[%s3806_s12 + $0x20] sm:$0xff] }
 0x1ed   : > { %vm4027_vm9 = vmor %vm1145_vm5, %vm1146_vm6  ;;  %vm1671_vm5 = vcmask 1046528   ;;  %vm1646_vm6 = vcmask 56320  }
 0x222   : > { %v1222_v31 = vpop.f32.mrf.mxu3 }
 0x223   : > { %v1223_v32 = vadd.f32 %v3572_v30, %v1222_v31 }
 0x225   : > { %v1229_v33 = vsel %vm1109_vm3, %v1223_v32, 0.0 }
 0x226   : > { %1230 = vadd.xlane.f32.xlu0 %v1229_v33  ;;  %v3421_v33 = vld [vmem:[%s3776_s30 + $0x38] sm:$0xf0] }
 0x22a   : > { %v1224_v36 = vpop.f32.mrf.mxu3 }
 0x22b   : > { %v1225_v37 = vadd.f32 %v3572_v30, %v1224_v36  ;;  %v3190_v30 = vor.u32 %v3425_v23, %v3187_v24 }
 0x22d   : > { %v1232_v39 = vsel %vm1109_vm3, %v1225_v37, 0.0  ;;  %1478 = vmatpush.bf16.msrb.mxu3 %v3190_v30  ;;  %v3423_v30 = vld [vmem:[%s3776_s30 + $0x48] sm:$0xf0] }
 0x22e   : > { %1233 = vadd.xlane.f32.xlu2 %v1232_v39  ;;  %v3159_v39 = vld [vmem:[%s3776_s30 + $0x3c] sm:$0xf0] }
 0x236   : > { %1133 = vadd.xlane.f32.xlu2 %v1132_v41  ;;  %v3422_v41 = vld [vmem:[%s3776_s30 + $0x40] sm:$0xf0] }
 0x299   : > { %v1231_v42 = vpop.xlane.xlu0 %1230 }
 0x29a   : > { %v1235_v43 = vmul.f32 %v1231_v42, %v3924_v53 }
 0x29c   : > { %v3947_v44 = vsub.f32 %v1223_v32, %v1235_v43  ;;  %v3157_v32 = vld [vmem:[%s3776_s30 + $0x28] sm:$0xf]  ;;  %v3162_v43 = vor.u32 %v3419_v34, %v3159_v39 }
 0x29e   : > { %v1239_v45 = vmul.f32 %v3947_v44, %v3947_v44  ;;  %1451 = vmatpush.bf16.msrb.mxu1 %v3162_v43 }
 0x2a0   : > { %v1241_v46 = vsel %vm1109_vm3, %v1239_v45, 0.0  ;;  %v3166_v45 = vor.u32 %v3422_v41, %v3165_v40  ;;  %v1527_v40 = vld [vmem:[%s3806_s12 + $0x90] sm:$0xff] }
 0x2a1   : > { %v1234_v47 = vpop.xlane.xlu2 %1233  ;;  %1242 = vadd.xlane.f32.xlu1 %v1241_v46  ;;  %v3420_v46 = vld [vmem:[%s3776_s30 + $0x34] sm:$0xf] }
 0x2a2   : > { %v1236_v48 = vmul.f32 %v1234_v47, %v3924_v53  ;;  %v3167_v47 = vld [vmem:[%s3776_s30 + $0x44] sm:$0xf0]  ;;  %1465 = vmatpush.bf16.msrb.mxu2 %v3166_v45  ;;  %1452 = vmatpush.bf16.msrb.mxu1 %v3142_v63  ;;  %v1536_v63 = vld [vmem:[%s3806_s12 + $0xd8] sm:$0xff] }
 0x2a4   : > { %v3953_v49 = vsub.f32 %v1225_v37, %v1236_v48  ;;  %v3158_v37 = vor.u32 %v3421_v33, %v3157_v32  ;;  %v3170_v48 = vor.u32 %v3420_v46, %v3167_v47 }
 0x2a6   : > { %v1240_v50 = vmul.f32 %v3953_v49, %v3953_v49  ;;  %1437 = vmatpush.bf16.msrb.mxu0 %v3158_v37  ;;  %1479 = vmatpush.bf16.msrb.mxu3 %v3170_v48  ;;  %v3418_v37 = vld [vmem:[%s3776_s30 + $0x20] sm:$0xf0] }
 0x2a7   : > { %1466 = vmatpush.bf16.msrb.mxu2 %v3146_v0  ;;  %1562 = vmatpush.msra.mxu1 %v1524_v60 }
 0x2a8   : > { %v1244_v51 = vsel %vm1109_vm3, %v1240_v50, 0.0  ;;  %v3137_v50 = vld [vmem:[%s3776_s30] sm:$0xf] }
 0x2a9   : > { %1245 = vadd.xlane.f32.xlu2 %v1244_v51  ;;  %v1134_v54 = vpop.xlane.xlu2 %1133  ;;  %v3416_v51 = vld [vmem:[%s3776_s30 + $0x10] sm:$0xf0]  ;;  %1563 = vmatpush.msra.mxu1 %v1523_v61 }
 0x2aa   : > { %v1136_v57 = vmul.f32 %v1134_v54, %v3924_v53  ;;  %v1141_v54 = vmul.f32 %v3977_v12, %v1140_v35  ;;  %1480 = vmatpush.bf16.msrb.mxu3 %v3150_v5 }
 0x2ab   : > { %1607 = vmatpush.msra.mxu2 %v1536_v63 }
 0x2ac   : > { %v3962_v59 = vadd.f32 1e-05, %v1136_v57  ;;  %v3138_v57 = vor.u32 %v3416_v51, %v3137_v50  ;;  %v1142_v7 = vmul.f32 0.5, %v1141_v54  ;;  %v3573_v50 = vld [vmem:[%s3766_s19] ss:$0 sm:$0xff] }
 0x2ad   : > { %1608 = vmatpush.msra.mxu2 %v1535_v2 }
 0x2ae   : > { %3580 = vrsqrt.f32 %v3962_v59  ;;  %1438 = vmatpush.bf16.msrb.mxu0 %v3138_v57  ;;  %vm1155_vm10 = vweird.f32 %v3962_v59  ;;  %v3574_v57 = vld [vmem:[%s3771_s24] ss:$0 sm:$0xff] }
 0x2b2   : > { %1491 = vmatpush.bf16.msra.mxu0 %v3214_v14  ;;  %v1532_v14 = vld [vmem:[%s3806_s12 + $0xb8] sm:$0xff] }
 0x2b4   : > { %v3982_v18 = vpop.eup %3580 }
 0x2b5   : > { %v1150_v36 = vmul.f32 %v3982_v18, %v3962_v59  ;;  %vm1156_vm7 = vweird.f32 %v3982_v18 }
 0x2b6   : > { %1492 = vmatpush.bf16.msra.mxu0 %v3194_v22  ;;  %vm4032_vm11 = vmor %vm1155_vm10, %vm1156_vm7 }
 0x2b7   : > { %v1151_v55 = vmul.f32 %v3982_v18, %v1150_v36  ;;  %v3153_v36 = vld [vmem:[%s3776_s30 + $0x10] sm:$0xf] }
 0x2b8   : > { %v3154_v45 = vor.u32 %v3418_v37, %v3153_v36  ;;  %v1515_v36 = vld [vmem:[%s3806_s12 + $0x30] sm:$0xff]  ;;  %v1528_v37 = vld [vmem:[%s3806_s12 + $0x98] sm:$0xff] }
 0x2b9   : > { %v1152_v8 = vmul.f32 0.5, %v1151_v55 }
 0x2bb   : > { %v1153_v23 = vsub.f32 1.5, %v1152_v8  ;;  %v1533_v8 = vld [vmem:[%s3806_s12 + $0xc0] sm:$0xff] }
 0x2bd   : > { %v1154_v34 = vmul.f32 %v3982_v18, %v1153_v23 }
 0x2bf   : > { %v1158_v59 = vsel %vm4032_vm11, %v3982_v18, %v1154_v34  ;;  %v1516_v34 = vld [vmem:[%s3806_s12 + $0x38] sm:$0xff]  ;;  %vm958_vm11 = vcmp.ge.s32.totalorder %v3889_v15, 0 }
 0x2c0   : > { %v1160_v55 = vmul.f32 %v1158_v59, %v3940_v38  ;;  %v1522_v38 = vld [vmem:[%s3806_s12 + $0x68] sm:$0xff]  ;;  %v1509_v59 = vld [vmem:[%s3806_s12] sm:$0xff] }
 0x2c1   : > { %1564 = vmatpush.msra.mxu1 %v1522_v38 }
 0x2c2   : > { %v1165_v0 = vmul.f32 %v3570_v52, %v1160_v55 }
 0x2c4   : > { %v1170_v10 = vadd.f32 %v3571_v62, %v1165_v0 }
 0x314   : > { %v1243_v25 = vpop.xlane.xlu1 %1242 }
 0x315   : > { %v1247_v31 = vmul.f32 %v1243_v25, %v3924_v53  ;;  %v3173_v25 = vld [vmem:[%s3776_s30 + $0x38] sm:$0xf] }
 0x316   : > { %v3174_v32 = vor.u32 %v3423_v30, %v3173_v25  ;;  %v1530_v25 = vld [vmem:[%s3806_s12 + $0xa8] sm:$0xff] }
 0x317   : > { %v3997_v42 = vadd.f32 1e-05, %v1247_v31 }
 0x318   : > { %1493 = vmatpush.bf16.msra.mxu0 %v3174_v32  ;;  %v1517_v32 = vld [vmem:[%s3806_s12 + $0x40] sm:$0xff] }
 0x319   : > { %3582 = vrsqrt.f32 %v3997_v42  ;;  %vm1257_vm12 = vweird.f32 %v3997_v42 }
 0x31c   : > { %v1246_v4 = vpop.xlane.xlu2 %1245  ;;  %1494 = vmatpush.bf16.msra.mxu0 %v3154_v45  ;;  %v1510_v45 = vld [vmem:[%s3806_s12 + $0x8] sm:$0xff] }
 0x31d   : > { %v1248_v6 = vmul.f32 %v1246_v4, %v3924_v53  ;;  %v1143_v53 = vsub.f32 1.5, %v1142_v7  ;;  %v1534_v4 = vld [vmem:[%s3806_s12 + $0xc8] sm:$0xff]  ;;  %v1521_v7 = vld [vmem:[%s3806_s12 + $0x60] sm:$0xff] }
 0x31e   : > { %1609 = vmatpush.msra.mxu2 %v1534_v4  ;;  %1565 = vmatpush.msra.mxu1 %v1521_v7 }
 0x31f   : > { %v3583_v11 = vpop.eup %3582  ;;  %v1250_v13 = vadd.f32 1e-05, %v1248_v6  ;;  %v1144_v33 = vmul.f32 %v3977_v12, %v1143_v53  ;;  %v1172_v53 = vmax.f32 %v1170_v10, 0.0 }
 0x320   : > { %v1252_v16 = vmul.f32 %v3583_v11, %v3997_v42  ;;  %vm1258_vm8 = vweird.f32 %v3583_v11  ;;  %1610 = vmatpush.msra.mxu2 %v1533_v8 }
 0x321   : > { %3584 = vrsqrt.f32 %v1250_v13  ;;  %vm1259_vm13 = vmor %vm1257_vm12, %vm1258_vm8  ;;  %v1148_v46 = vsel %vm4027_vm9, %v3977_v12, %v1144_v33  ;;  %vm1267_vm15 = vweird.f32 %v1250_v13  ;;  %vm959_vm12 = vcmp.ge.s32.totalorder %v3897_v19, 0 }
 0x322   : > { %v1253_v24 = vmul.f32 %v3583_v11, %v1252_v16  ;;  %v1159_v54 = vmul.f32 %v1148_v46, %v3927_v56  ;;  %1611 = vmatpush.msra.mxu2 %v1532_v14  ;;  %v1526_v46 = vld [vmem:[%s3806_s12 + $0x88] sm:$0xff] }
 0x324   : > { %v1254_v31 = vmul.f32 0.5, %v1253_v24  ;;  %v1164_v56 = vmul.f32 %v3570_v52, %v1159_v54  ;;  %v1518_v24 = vld [vmem:[%s3806_s12 + $0x48] sm:$0xff] }
 0x326   : > { %v1255_v35 = vsub.f32 1.5, %v1254_v31  ;;  %v1169_v9 = vadd.f32 %v3571_v62, %v1164_v56 }
 0x327   : > { %v3585_v39 = vpop.eup %3584 }
 0x328   : > { %v1256_v41 = vmul.f32 %v3583_v11, %v1255_v35  ;;  %v1262_v43 = vmul.f32 %v3585_v39, %v1250_v13  ;;  %vm1268_vm14 = vweird.f32 %v3585_v39  ;;  %v1520_v13 = vld [vmem:[%s3806_s12 + $0x58] sm:$0xff]  ;;  %v1171_v22 = vmax.f32 %v1169_v9, 0.0  ;;  %v1529_v35 = vld [vmem:[%s3806_s12 + $0xa0] sm:$0xff] }
 0x329   : > { %vm1269_vm1 = vmor %vm1267_vm15, %vm1268_vm14  ;;  %1566 = vmatpush.msra.mxu1 %v1520_v13 }
 0x32a   : > { %v1260_v47 = vsel %vm1259_vm13, %v3583_v11, %v1256_v41  ;;  %v1263_v48 = vmul.f32 %v3585_v39, %v1262_v43  ;;  %v1512_v41 = vld [vmem:[%s3806_s12 + $0x18] sm:$0xff]  ;;  %v1511_v43 = vld [vmem:[%s3806_s12 + $0x10] sm:$0xff] }
 0x32b   : > { %v1271_v42 = vmul.f32 %v1260_v47, %v3947_v44  ;;  %1567 = vmatpush.msra.mxu1 %v1519_v21  ;;  %v1525_v47 = vld [vmem:[%s3806_s12 + $0x80] sm:$0xff] }
 0x32c   : > { %v1264_v51 = vmul.f32 0.5, %v1263_v48  ;;  %v1312_v48 = vld [vmem:[%s4684_s22] sm:$0x1f]  ;;  %s4690_s22 = sld [smem:[#allocation8_spill]] }
 0x32d   : > { %v1276_v18 = vmul.f32 %v3573_v50, %v1271_v42  ;;  %1568 = vmatpush.msra.mxu1 %v1518_v24  ;;  %v1315_v42 = vperm.slane %v1312_v48, 1  ;;  %v1317_v63 = vperm.slane %v1312_v48, 3  ;;  %v1318_v56 = vperm.slane %v1312_v48, 4  ;;  %v1645_v24 = vld [vmem:[%s4685_s23 + $0x8] sm:$0x7f] }
 0x32e   : > { %v1265_v12 = vsub.f32 1.5, %v1264_v51 }
 0x32f   : > { %v1281_v5 = vadd.f32 %v3574_v57, %v1276_v18  ;;  %1569 = vmatpush.msra.mxu1 %v1517_v32 }
 0x330   : > { %v1266_v44 = vmul.f32 %v3585_v39, %v1265_v12 }
 0x331   : > { %v1283_v16 = vmax.f32 %v1281_v5, 0.0  ;;  %1570 = vmatpush.msra.mxu1 %v1516_v34 }
 0x332   : > { %v1270_v3 = vsel %vm1269_vm1, %v3585_v39, %v1266_v44  ;;  %v1514_v39 = vld [vmem:[%s3806_s12 + $0x28] sm:$0xff]  ;;  %v1316_v44 = vperm.slane %v1312_v48, 2 }
 0x333   : > { %v1272_v6 = vmul.f32 %v1270_v3, %v3953_v49  ;;  %v1531_v49 = vld [vmem:[%s3806_s12 + $0xb0] sm:$0xff]  ;;  %v1285_v30 = vadd.f32 %v1283_v16, %v1171_v22  ;;  %1571 = vmatpush.msra.mxu1 %v1515_v36 }
 0x334   : > { %1612 = vmatpush.msra.mxu2 %v1531_v49 }
 0x335   : > { %v1277_v11 = vmul.f32 %v3573_v50, %v1272_v6  ;;  %1572 = vmatpush.msra.mxu1 %v1514_v39  ;;  %v1314_v50 = vperm.slane %v1312_v48, 0 }
 0x336   : > { %1613 = vmatpush.msra.mxu2 %v1530_v25 }
 0x337   : > { %v1282_v17 = vadd.f32 %v3574_v57, %v1277_v11  ;;  %1573 = vmatpush.msra.mxu1 %v1513_v58 }
 0x338   : > { %1614 = vmatpush.msra.mxu2 %v1529_v35 }
 0x339   : > { %v1284_v23 = vmax.f32 %v1282_v17, 0.0  ;;  %1574 = vmatpush.msra.mxu1 %v1512_v41 }
 0x33a   : > { %1615 = vmatpush.msra.mxu2 %v1528_v37 }
 0x33b   : > { %v1286_v31 = vadd.f32 %v1284_v23, %v1172_v53  ;;  %1575 = vmatpush.msra.mxu1 %v1511_v43  ;;  %v1644_v23 = vld [vmem:[%s4685_s23] sm:$0x7f] }
 0x33c   : > { %1616 = vmatpush.msra.mxu2 %v1527_v40  ;;  %3228 = vmatpush.msk.msra.mxu3 %vm1671_vm5, %v1644_v23 }
 0x33d   : > { %v1287_v33 = vpack.c.bf16 %v1286_v31, %v1285_v30  ;;  %1576 = vmatpush.msra.mxu1 %v1510_v45 }
 0x33e   : > { %1617 = vmatpush.msra.mxu2 %v1526_v46 }
 0x33f   : > { %3215 = vmatmul.msk.bf16.vlgmr.msrb.gmra.mxu0 %vm1109_vm3, %v1287_v33  ;;  %3216 = vmatmul.msk.bf16.vlgmr.msrb.gmra.mxu1 %vm1109_vm3, %v1287_v33 }
 0x340   : > { %3217 = vmatmul.msk.bf16.vlgmr.msrb.gmra.mxu2 %vm1109_vm3, %v1287_v33  ;;  %3218 = vmatmul.msk.bf16.vlgmr.msrb.gmra.mxu3 %vm1109_vm3, %v1287_v33 }
 0x341   : > { %1577 = vmatpush.msra.mxu1 %v1509_v59  ;;  %1618 = vmatpush.msra.mxu2 %v1525_v47 }
 0x342   : > { %3237 = vmatpush.msk.msrb.mxu0 %vm1671_vm5, %v1645_v24 }
 0x34f   : > { %3219 = vmatmul.msk.bf16.vlgmr.msra.gmra.mxu0 %vm1109_vm3, %v1287_v33 }
 0x3bc   : > { %v1440_v51 = vpop.f32.mrf.mxu0  ;;  %v1454_v52 = vpop.f32.mrf.mxu1 }
 0x3bd   : > { %v4085_v54 = vadd.f32 %v1440_v51, %v1314_v50  ;;  %v4087_v55 = vadd.f32 %v1454_v52, %v1315_v42 }
 0x3bf   : > { %1578 = vmatmul.f32.vlgmr.msra.gmra.mxu1 %v4085_v54  ;;  %3220 = vmatmul.msk.f32.vlgmr.msra.gmra.mxu2 %vm1537_vm2, %v4087_v55  ;;  %v1501_v13 = vmul.f32 %v4085_v54, %v4085_v54  ;;  %v1502_v14 = vmul.f32 %v4087_v55, %v4087_v55 }
 0x3c3   : > { %v1468_v61 = vpop.f32.mrf.mxu2  ;;  %v1482_v62 = vpop.f32.mrf.mxu3 }
 0x3c4   : > { %v1442_v12 = vpop.f32.mrf.mxu0  ;;  %v1456_v57 = vpop.f32.mrf.mxu1  ;;  %v4099_v38 = vadd.f32 %v1468_v61, %v1316_v44  ;;  %v4101_v2 = vadd.f32 %v1482_v62, %v1317_v63 }
 0x3c5   : > { %v4092_v18 = vadd.f32 %v1442_v12, %v1314_v50  ;;  %v4094_v60 = vadd.f32 %v1456_v57, %v1315_v42 }
 0x3c6   : > { %v1505_v21 = vmul.f32 %v4099_v38, %v4099_v38  ;;  %v1506_v49 = vmul.f32 %v4101_v2, %v4101_v2 }
 0x3c7   : > { %1581 = vmatmul.f32.gmra.mxu1 %v4092_v18  ;;  %3221 = vmatmul.msk.f32.gmra.mxu2 %vm1537_vm2, %v4094_v60  ;;  %v1503_v16 = vmul.f32 %v4092_v18, %v4092_v18  ;;  %v1504_v17 = vmul.f32 %v4094_v60, %v4094_v60 }
 0x3cb   : > { %v1470_v5 = vpop.f32.mrf.mxu2  ;;  %v1484_v6 = vpop.f32.mrf.mxu3 }
 0x3cc   : > { %v1496_v0 = vpop.f32.mrf.mxu0  ;;  %v4107_v8 = vadd.f32 %v1470_v5, %v1316_v44  ;;  %v4109_v9 = vadd.f32 %v1484_v6, %v1317_v63 }
 0x3cd   : > { %v1497_v3 = vadd.f32 %v1496_v0, %v1318_v56 }
 0x3ce   : > { %v1507_v22 = vmul.f32 %v4107_v8, %v4107_v8  ;;  %v1508_v53 = vmul.f32 %v4109_v9, %v4109_v9 }
 0x3cf   : > { %1584 = vmatmul.f32.gmra.mxu1 %v4099_v38  ;;  %3222 = vmatmul.msk.f32.gmra.mxu2 %vm1537_vm2, %v4101_v2  ;;  %v1937_v4 = vsel %vm1936_vm4, %v1497_v3, -inf }
 0x3d0   : > { %1938 = vmax.xlane.f32.xlu0 %v1937_v4 }
 0x3d4   : > { %v1498_v7 = vpop.f32.mrf.mxu0 }
 0x3d5   : > { %v1499_v10 = vadd.f32 %v1498_v7, %v1318_v56 }
 0x3d7   : > { %1587 = vmatmul.f32.gmra.mxu1 %v4107_v8  ;;  %3223 = vmatmul.msk.f32.gmra.mxu2 %vm1537_vm2, %v4109_v9  ;;  %v1940_v11 = vsel %vm1936_vm4, %v1499_v10, -inf }
 0x3d8   : > { %1941 = vmax.xlane.f32.xlu1 %v1940_v11 }
 0x3df   : > { %1590 = vmatmul.f32.gmra.mxu1 %v1501_v13  ;;  %3224 = vmatmul.msk.f32.gmra.mxu2 %vm1537_vm2, %v1502_v14 }
 0x3e7   : > { %1593 = vmatmul.f32.gmra.mxu1 %v1503_v16  ;;  %3225 = vmatmul.msk.f32.gmra.mxu2 %vm1537_vm2, %v1504_v17 }
 0x3ef   : > { %1596 = vmatmul.f32.gmra.mxu1 %v1505_v21  ;;  %3226 = vmatmul.msk.f32.gmra.mxu2 %vm1537_vm2, %v1506_v49 }
 0x3f7   : > { %1599 = vmatmul.f32.gmra.mxu1 %v1507_v22  ;;  %3227 = vmatmul.msk.f32.gmra.mxu2 %vm1537_vm2, %v1508_v53 }
 0x43c   : > { %v1579_v25 = vpop.f32.mrf.mxu1 }
 0x442   : > { %v1620_v30 = vpop.f32.mrf.mxu2 }
 0x443   : > { %v1621_v31 = vadd.f32 %v1620_v30, %v1579_v25  ;;  %v1939_v32 = vpop.xlane.xlu0 %1938 }
 0x444   : > { %v1943_v33 = vsub.f32 %v1497_v3, %v1939_v32  ;;  %v1582_v34 = vpop.f32.mrf.mxu1 }
 0x445   : > { %3229 = vmatmul.msk.f32.vlgmr.msra.gmra.mxu3 %vm1646_vm6, %v1621_v31  ;;  %3238 = vmatmul.msk.f32.vlgmr.msrb.gmra.mxu0 %vm1646_vm6, %v1621_v31 }
 0x446   : > { %v1945_v35 = vmul.f32 1.442695, %v1943_v33 }
 0x448   : > { %3586 = vpow2.f32 %v1945_v35 }
 0x44a   : > { %v1623_v36 = vpop.f32.mrf.mxu2 }
 0x44b   : > { %v1624_v37 = vadd.f32 %v1623_v36, %v1582_v34  ;;  %v1942_v39 = vpop.xlane.xlu1 %1941 }
 0x44c   : > { %v1944_v40 = vsub.f32 %v1499_v10, %v1942_v39  ;;  %v1585_v58 = vpop.f32.mrf.mxu1 }
 0x44d   : > { %3230 = vmatmul.msk.f32.gmra.mxu3 %vm1646_vm6, %v1624_v37  ;;  %3239 = vmatmul.msk.f32.gmra.mxu0 %vm1646_vm6, %v1624_v37 }
 0x44e   : > { %v4141_v41 = vpop.eup %3586  ;;  %v1947_v43 = vmul.f32 1.442695, %v1944_v40  ;;  %v3089_v40 = vsel %vm958_vm11, 1.0, %v3698_v26 }
 0x44f   : > { %v1949_v45 = vsel %vm1936_vm4, %v4141_v41, 0.0 }
 0x450   : > { %3588 = vpow2.f32 %v1947_v43  ;;  %1950 = vadd.xlane.f32.xlu2 %v1949_v45 }
 0x452   : > { %v1626_v46 = vpop.f32.mrf.mxu2 }
 0x453   : > { %v1627_v59 = vadd.f32 %v1626_v46, %v1585_v58  ;;  %v3090_v58 = vsel %vm959_vm12, 1.0, %v3698_v26 }
 0x454   : > { %v1588_v47 = vpop.f32.mrf.mxu1  ;;  %v4180_v19 = vpack.i.bf16 %v3090_v58, %v3089_v40 }
 0x455   : > { %3231 = vmatmul.msk.f32.gmra.mxu3 %vm1646_vm6, %v1627_v59  ;;  %3240 = vmatmul.msk.f32.gmra.mxu0 %vm1646_vm6, %v1627_v59 }
 0x456   : > { %v4147_v48 = vpop.eup %3588 }
 0x457   : > { %v1952_v50 = vsel %vm1936_vm4, %v4147_v48, 0.0 }
 0x458   : > { %1953 = vadd.xlane.f32.xlu0 %v1952_v50 }
 0x45a   : > { %v1629_v42 = vpop.f32.mrf.mxu2 }
 0x45b   : > { %v1630_v51 = vadd.f32 %v1629_v42, %v1588_v47 }
 0x45c   : > { %v1591_v52 = vpop.f32.mrf.mxu1 }
 0x45d   : > { %3232 = vmatmul.msk.f32.gmra.mxu3 %vm1646_vm6, %v1630_v51  ;;  %3241 = vmatmul.msk.f32.gmra.mxu0 %vm1646_vm6, %v1630_v51 }
 0x462   : > { %v1632_v12 = vpop.f32.mrf.mxu2 }
 0x463   : > { %v1633_v57 = vadd.f32 %v1632_v12, %v1591_v52 }
 0x464   : > { %v1594_v61 = vpop.f32.mrf.mxu1 }
 0x465   : > { %3233 = vmatmul.msk.f32.gmra.mxu3 %vm1646_vm6, %v1633_v57  ;;  %3242 = vmatmul.msk.f32.gmra.mxu0 %vm1646_vm6, %v1633_v57 }
 0x46a   : > { %v1635_v62 = vpop.f32.mrf.mxu2 }
 0x46b   : > { %v1636_v44 = vadd.f32 %v1635_v62, %v1594_v61 }
 0x46c   : > { %v1597_v63 = vpop.f32.mrf.mxu1 }
 0x46d   : > { %3234 = vmatmul.msk.f32.gmra.mxu3 %vm1646_vm6, %v1636_v44  ;;  %3243 = vmatmul.msk.f32.gmra.mxu0 %vm1646_vm6, %v1636_v44 }
 0x472   : > { %v1638_v56 = vpop.f32.mrf.mxu2 }
 0x473   : > { %v1639_v0 = vadd.f32 %v1638_v56, %v1597_v63 }
 0x474   : > { %v1600_v3 = vpop.f32.mrf.mxu1 }
 0x475   : > { %3235 = vmatmul.msk.f32.gmra.mxu3 %vm1646_vm6, %v1639_v0  ;;  %3244 = vmatmul.msk.f32.gmra.mxu0 %vm1646_vm6, %v1639_v0 }
 0x47a   : > { %v1641_v4 = vpop.f32.mrf.mxu2 }
 0x47b   : > { %v1642_v5 = vadd.f32 %v1641_v4, %v1600_v3 }
 0x47d   : > { %3236 = vmatmul.msk.f32.gmra.mxu3 %vm1646_vm6, %v1642_v5  ;;  %3245 = vmatmul.msk.f32.gmra.mxu0 %vm1646_vm6, %v1642_v5 }
 0x4c2   : > { %v4161_v6 = vpop.f32.mrf.mxu0 }
 0x4c3   : > { %v1951_v7 = vpop.xlane.xlu2 %1950 }
 0x4c4   : > { %3590 = vrcp.f32 %v1951_v7  ;;  %v1966_v21 = vand.u32 2147483648, %v1951_v7  ;;  %v1964_v22 = vand.u32 2147483647, %v1951_v7  ;;  %vm1960_vm8 = vweird.f32 %v1951_v7 }
 0x4c6   : > { %v1967_v25 = vor.u32 1.1754944e-38, %v1966_v21  ;;  %vm1965_vm10 = vcmp.eq.f32.partialorder %v1964_v22, 8.507059e+37 }
 0x4c8   : > { %v4163_v10 = vpop.f32.mrf.mxu3 }
 0x4c9   : > { %v1760_v42 = vmul.f32 %v4163_v10, %v4163_v10 }
 0x4ca   : > { %v3591_v11 = vpop.eup %3590  ;;  %v4165_v13 = vpop.f32.mrf.mxu0 }
 0x4cb   : > { %v1956_v14 = vmul.f32 %v3591_v11, %v1951_v7  ;;  %v1954_v16 = vpop.xlane.xlu0 %1953  ;;  %vm1961_vm7 = vweird.f32 %v3591_v11 }
 0x4cc   : > { %3592 = vrcp.f32 %v1954_v16  ;;  %vm1962_vm9 = vmor %vm1960_vm8, %vm1961_vm7  ;;  %v1981_v36 = vand.u32 2147483648, %v1954_v16  ;;  %v1979_v39 = vand.u32 2147483647, %v1954_v16  ;;  %vm1975_vm14 = vweird.f32 %v1954_v16 }
 0x4cd   : > { %v1957_v17 = vsub.f32 1.0, %v1956_v14 }
 0x4ce   : > { %v1982_v15 = vor.u32 1.1754944e-38, %v1981_v36  ;;  %vm1980_vm1 = vcmp.eq.f32.partialorder %v1979_v39, 8.507059e+37 }
 0x4cf   : > { %v1958_v49 = vmul.f32 %v3591_v11, %v1957_v17 }
 0x4d0   : > { %v4167_v53 = vpop.f32.mrf.mxu3 }
 0x4d1   : > { %v1959_v23 = vadd.f32 %v3591_v11, %v1958_v49 }
 0x4d2   : > { %v3593_v24 = vpop.eup %3592  ;;  %v4169_v30 = vpop.f32.mrf.mxu0 }
 0x4d3   : > { %v1971_v31 = vmul.f32 %v3593_v24, %v1954_v16  ;;  %v1963_v32 = vsel %vm1962_vm9, %v3591_v11, %v1959_v23  ;;  %vm1976_vm13 = vweird.f32 %v3593_v24  ;;  %v1773_v62 = vmul.f32 %v4169_v30, %v4169_v30 }
 0x4d4   : > { %v1968_v33 = vsel %vm1965_vm10, %v1967_v25, %v1963_v32  ;;  %vm1977_vm15 = vmor %vm1975_vm14, %vm1976_vm13 }
 0x4d5   : > { %v1972_v34 = vsub.f32 1.0, %v1971_v31  ;;  %v1969_v35 = vmul.f32 %v4141_v41, %v1968_v33 }
 0x4d7   : > { %v1973_v37 = vmul.f32 %v3593_v24, %v1972_v34  ;;  %1987 = vperm.xlu0 %3541, %v1969_v35   ;;  %1998 = vperm.xlu1 %3539, %v1969_v35  }
 0x4d8   : > { %v4176_v43 = vpop.f32.mrf.mxu3 }
 0x4d9   : > { %v1974_v45 = vadd.f32 %v3593_v24, %v1973_v37  ;;  %v1772_v7 = vmul.f32 %v4176_v43, %v4176_v43 }
 0x4da   : > { %v4178_v46 = vpop.f32.mrf.mxu0 }
 0x4db   : > { %v1978_v41 = vsel %vm1977_vm15, %v3593_v24, %v1974_v45  ;;  %v1775_v17 = vmul.f32 %v4178_v46, %v4178_v46 }
 0x4dc   : > { %v1983_v59 = vsel %vm1980_vm1, %v1982_v15, %v1978_v41  ;;  %v1784_v15 = vsub.f32 %v4085_v54, %v4163_v10  ;;  %v1786_v54 = vsub.f32 %v4092_v18, %v4167_v53  ;;  %v1761_v18 = vmul.f32 %v4161_v6, %v4161_v6 }
 0x4dd   : > { %v1984_v47 = vmul.f32 %v4147_v48, %v1983_v59  ;;  %v4213_v59 = vld [vmem:[%s4686_s28] sm:$0x3]  ;;  %s3704_s28 = smov 5  }
 0x4df   : > { %3549 = vrot.lane.b32.xlu0 %v4180_v19, %s3701_s26  ;;  %3542 = vset.pattern.permute.xlu1 %v3695_v1  ;;  %v1762_v1 = vmul.f32 %v4167_v53, %v4167_v53 }
 0x4e0   : > { %2002 = vperm.xlu2 %3540, %v1984_v47   ;;  %1992 = vperm.xlu1 %3542, %v1984_v47   ;;  %v4186_v26 = vpop.f32.mrf.mxu3 }
 0x4e1   : > { %3568 = vset.pattern.permute.xlu0 %v3696_v20  ;;  %v1774_v37 = vmul.f32 %v4186_v26, %v4186_v26 }
 0x4e2   : > { %v4189_v50 = vpop.f32.mrf.mxu0 }
 0x4e8   : > { %v1707_v51 = vpop.f32.mrf.mxu3 }
 0x4e9   : > { %v1764_v52 = vsub.f32 %v1707_v51, %v1760_v42 }
 0x4ea   : > { %v4193_v48 = vpop.f32.mrf.mxu0 }
 0x4eb   : > { %v1768_v12 = vmax.f32 %v1764_v52, 0.0 }
 0x4ed   : > { %v1788_v57 = vadd.f32 1e-05, %v1768_v12  ;;  %v1838_v12 = vperm.slane %v4213_v59, 0 }
 0x4ef   : > { %3594 = vrsqrt.f32 %v1788_v57  ;;  %vm1798_vm6 = vweird.f32 %v1788_v57 }
 0x4f0   : > { %v1710_v61 = vpop.f32.mrf.mxu3 }
 0x4f1   : > { %v1766_v20 = vsub.f32 %v1710_v61, %v1762_v1 }
 0x4f2   : > { %v1754_v44 = vpop.f32.mrf.mxu0 }
 0x4f3   : > { %v1770_v63 = vmax.f32 %v1766_v20, 0.0  ;;  %v1777_v56 = vsub.f32 %v1754_v44, %v1773_v62  ;;  %v4222_v44 = vld [vmem:[%s4687_s1] sm:$0x3]  ;;  %s3705_s1 = smov 32  }
 0x4f5   : > { %v3595_v0 = vpop.eup %3594  ;;  %v1790_v3 = vadd.f32 1e-05, %v1770_v63  ;;  %v1781_v4 = vmax.f32 %v1777_v56, 0.0  ;;  %v4225_v56 = vld [vmem:[%s4688_s2] sm:$0x3]  ;;  %s4691_s2 = sld [smem:[#allocation12_spill]] }
 0x4f6   : > { %v1793_v5 = vmul.f32 %v3595_v0, %v1788_v57  ;;  %vm1799_vm5 = vweird.f32 %v3595_v0 }
 0x4f7   : > { %3596 = vrsqrt.f32 %v1790_v3  ;;  %v1865_v11 = vadd.f32 1e-05, %v1781_v4  ;;  %vm1800_vm7 = vmor %vm1798_vm6, %vm1799_vm5  ;;  %vm1818_vm9 = vweird.f32 %v1790_v3 }
 0x4f8   : > { %v1794_v14 = vmul.f32 %v3595_v0, %v1793_v5  ;;  %v1713_v16 = vpop.f32.mrf.mxu3  ;;  %v1848_v5 = vperm.slane %v4222_v44, 0 }
 0x4f9   : > { %3598 = vrsqrt.f32 %v1865_v11  ;;  %v1776_v21 = vsub.f32 %v1713_v16, %v1772_v7  ;;  %vm1884_vm12 = vweird.f32 %v1865_v11  ;;  %v1861_v7 = vsub.f32 %v4101_v2, %v4169_v30 }
 0x4fa   : > { %v1795_v49 = vmul.f32 0.5, %v1794_v14  ;;  %v1757_v22 = vpop.f32.mrf.mxu0  ;;  %v1765_v16 = vsub.f32 %v4189_v50, %v1761_v18 }
 0x4fb   : > { %v1780_v23 = vmax.f32 %v1776_v21, 0.0  ;;  %v1779_v24 = vsub.f32 %v1757_v22, %v1775_v17  ;;  %v1915_v21 = vperm.slane %v4225_v56, 1 }
 0x4fc   : > { %v1796_v25 = vsub.f32 1.5, %v1795_v49 }
 0x4fd   : > { %v3597_v31 = vpop.eup %3596  ;;  %v4203_v32 = vadd.f32 1e-05, %v1780_v23  ;;  %v1783_v33 = vmax.f32 %v1779_v24, 0.0 }
 0x4fe   : > { %v1797_v34 = vmul.f32 %v3595_v0, %v1796_v25  ;;  %v1813_v35 = vmul.f32 %v3597_v31, %v1790_v3  ;;  %vm1819_vm8 = vweird.f32 %v3597_v31 }
 0x4ff   : > { %v3599_v36 = vpop.eup %3598  ;;  %3600 = vrsqrt.f32 %v4203_v32  ;;  %v4210_v41 = vadd.f32 1e-05, %v1783_v33  ;;  %vm1820_vm11 = vmor %vm1818_vm9, %vm1819_vm8  ;;  %v1769_v33 = vmax.f32 %v1765_v16, 0.0  ;;  %vm1874_vm5 = vweird.f32 %v4203_v32 }
 0x500   : > { %v1801_v39 = vsel %vm1800_vm7, %v3595_v0, %v1797_v34  ;;  %v1814_v40 = vmul.f32 %v3597_v31, %v1813_v35  ;;  %v1879_v58 = vmul.f32 %v3599_v36, %v1865_v11  ;;  %v1716_v45 = vpop.f32.mrf.mxu3  ;;  %vm1885_vm10 = vweird.f32 %v3599_v36 }
 0x501   : > { %v1778_v51 = vsub.f32 %v1716_v45, %v1774_v37  ;;  %v1832_v52 = vmul.f32 %v1801_v39, %v1784_v15  ;;  %3602 = vrsqrt.f32 %v4210_v41  ;;  %vm1886_vm13 = vmor %vm1884_vm12, %vm1885_vm10  ;;  %v4254_v15 = vadd.f32 1e-05, %v1769_v33 }
 0x502   : > { %v1815_v47 = vmul.f32 0.5, %v1814_v40  ;;  %v1880_v42 = vmul.f32 %v3599_v36, %v1879_v58  ;;  %vm1904_vm9 = vweird.f32 %v4210_v41 }
 0x503   : > { %v1782_v61 = vmax.f32 %v1778_v51, 0.0  ;;  %v1842_v63 = vmul.f32 %v1838_v12, %v1832_v52  ;;  %v1763_v52 = vmul.f32 %v4165_v13, %v4165_v13  ;;  %vm1808_vm12 = vweird.f32 %v4254_v15 }
 0x504   : > { %v1816_v57 = vsub.f32 1.5, %v1815_v47  ;;  %v1881_v1 = vmul.f32 0.5, %v1880_v42 }
 0x505   : > { %v4216_v62 = vpop.eup %3600  ;;  %v1866_v4 = vadd.f32 1e-05, %v1782_v61  ;;  %v1852_v25 = vadd.f32 %v1848_v5, %v1842_v63 }
 0x506   : > { %v1817_v10 = vmul.f32 %v3597_v31, %v1816_v57  ;;  %v1882_v20 = vsub.f32 1.5, %v1881_v1  ;;  %v1869_v0 = vmul.f32 %v4216_v62, %v4203_v32  ;;  %vm1875_vm15 = vweird.f32 %v4216_v62 }
 0x507   : > { %3604 = vrsqrt.f32 %v1866_v4  ;;  %v4236_v49 = vpop.eup %3602  ;;  %vm1894_vm1 = vweird.f32 %v1866_v4  ;;  %vm1876_vm7 = vmor %vm1874_vm5, %vm1875_vm15  ;;  %vm2806_vm5 = vcmask 1042432  }
 0x508   : > { %v1821_v53 = vsel %vm1820_vm11, %v3597_v31, %v1817_v10  ;;  %v1883_v3 = vmul.f32 %v3599_v36, %v1882_v20  ;;  %v1870_v24 = vmul.f32 %v4216_v62, %v1869_v0  ;;  %v4240_v31 = vld [vmem:[%s4689_s0] sm:$0x3]  ;;  %v1899_v2 = vmul.f32 %v4236_v49, %v4210_v41  ;;  %s4693_s0 = sld [smem:[#allocation10_spill]] }
 0x509   : > { %v1834_v14 = vmul.f32 %v1821_v53, %v1786_v54  ;;  %v1925_v30 = vperm.slane %v4240_v31, 1  ;;  %3606 = vrsqrt.f32 %v4254_v15  ;;  %v1862_v10 = vsub.f32 %v4107_v8, %v4186_v26 }
 0x50a   : > { %v1887_v17 = vsel %vm1886_vm13, %v3599_v36, %v1883_v3  ;;  %v1871_v35 = vmul.f32 0.5, %v1870_v24  ;;  %v4247_v36 = vmax.f32 %v1852_v25, 0.0  ;;  %v1900_v58 = vmul.f32 %v4236_v49, %v1899_v2 }
 0x50b   : > { %v1844_v22 = vmul.f32 %v1838_v12, %v1834_v14  ;;  %v1909_v23 = vmul.f32 %v1887_v17, %v1861_v7  ;;  %v1767_v20 = vsub.f32 %v4193_v48, %v1763_v52  ;;  %v1914_v53 = vperm.slane %v4225_v56, 0 }
 0x50c   : > { %v1872_v47 = vsub.f32 1.5, %v1871_v35  ;;  %v1901_v12 = vmul.f32 0.5, %v1900_v58  ;;  %v1924_v48 = vperm.slane %v4240_v31, 0  ;;  %vm1905_vm8 = vweird.f32 %v4236_v49 }
 0x50d   : > { %v1854_v11 = vadd.f32 %v1848_v5, %v1844_v22  ;;  %v3605_v50 = vpop.eup %3604  ;;  %v1919_v34 = vmul.f32 %v1915_v21, %v1909_v23  ;;  %v1771_v26 = vmax.f32 %v1767_v20, 0.0  ;;  %vm1906_vm10 = vmor %vm1904_vm9, %vm1905_vm8  ;;  %v1863_v24 = vsub.f32 %v4109_v9, %v4178_v46 }
 0x50e   : > { %v1889_v39 = vmul.f32 %v3605_v50, %v1866_v4  ;;  %vm1895_vm14 = vweird.f32 %v3605_v50  ;;  %v1873_v1 = vmul.f32 %v4216_v62, %v1872_v47  ;;  %v1902_v63 = vsub.f32 1.5, %v1901_v12 }
 0x50f   : > { %v4249_v37 = vmax.f32 %v1854_v11, 0.0  ;;  %v4259_v42 = vadd.f32 %v1925_v30, %v1919_v34  ;;  %vm1896_vm6 = vmor %vm1894_vm1, %vm1895_vm14  ;;  %v1860_v4 = vsub.f32 %v4099_v38, %v4176_v43  ;;  %v3607_v8 = vpop.eup %3606  ;;  %v1791_v22 = vadd.f32 1e-05, %v1771_v26 }
 0x510   : > { %v1890_v45 = vmul.f32 %v3605_v50, %v1889_v39  ;;  %v1877_v5 = vsel %vm1876_vm7, %v4216_v62, %v1873_v1  ;;  %v1903_v14 = vmul.f32 %v4236_v49, %v1902_v63  ;;  %v1803_v17 = vmul.f32 %v3607_v8, %v4254_v15 }
 0x511   : > { %v3543_v40 = vpack.i.bf16 %v4249_v37, %v4247_v36  ;;  %v1933_v61 = vmax.f32 %v4259_v42, 0.0  ;;  %v1908_v7 = vmul.f32 %v1877_v5, %v1860_v4  ;;  %3608 = vrsqrt.f32 %v1791_v22 }
 0x512   : > { %v1891_v51 = vmul.f32 0.5, %v1890_v45  ;;  %v1907_v38 = vsel %vm1906_vm10, %v4236_v49, %v1903_v14  ;;  %v1804_v11 = vmul.f32 %v3607_v8, %v1803_v17  ;;  %vm1809_vm11 = vweird.f32 %v3607_v8 }
 0x513   : > { %3544 = vrot.lane.b32.xlu2 %v3543_v40, %s3702_s15  ;;  %v2520_v3 = vand.u32 2147483647, %v1933_v61  ;;  %v1918_v43 = vmul.f32 %v1914_v53, %v1908_v7  ;;  %v1911_v2 = vmul.f32 %v1907_v38, %v1863_v24  ;;  %vm1810_vm13 = vmor %vm1808_vm12, %vm1809_vm11  ;;  %v1785_v31 = vsub.f32 %v4087_v55, %v4161_v6 }
 0x514   : > { %v1892_v57 = vsub.f32 1.5, %v1891_v51  ;;  %v1805_v34 = vmul.f32 0.5, %v1804_v11  ;;  %v1839_v63 = vperm.slane %v4213_v59, 1  ;;  %v1849_v55 = vperm.slane %v4222_v44, 1 }
 0x515   : > { %v2524_v16 = vsub.f32 0.0, %v2520_v3  ;;  %v1921_v35 = vmul.f32 %v1915_v21, %v1911_v2  ;;  %v2516_v59 = vmax.f32 %v1933_v61, 0.0  ;;  %vm1828_vm15 = vweird.f32 %v1791_v22 }
 0x516   : > { %v1893_v54 = vmul.f32 %v3605_v50, %v1892_v57  ;;  %v1806_v40 = vsub.f32 1.5, %v1805_v34  ;;  %v1787_v44 = vsub.f32 %v4094_v60, %v4165_v13  ;;  %vm2789_vm7 = vcmask 31744  }
 0x517   : > { %v2529_v25 = vmul.f32 1.442695, %v2524_v16  ;;  %v3609_v49 = vpop.eup %3608  ;;  %v4294_v9 = vadd.f32 %v1925_v30, %v1921_v35  ;;  %vm2792_vm8 = vcmask 39936   ;;  %vm2802_vm9 = vcmask 48128  }
 0x518   : > { %v1897_v0 = vsel %vm1896_vm6, %v3605_v50, %v1893_v54  ;;  %v1928_v50 = vadd.f32 %v1924_v48, %v1918_v43  ;;  %v1823_v46 = vmul.f32 %v3609_v49, %v1791_v22  ;;  %v1807_v51 = vmul.f32 %v3607_v8, %v1806_v40 }
 0x519   : > { %v1910_v18 = vmul.f32 %v1897_v0, %v1862_v10  ;;  %3610 = vpow2.f32 %v2529_v25  ;;  %v1935_v56 = vmax.f32 %v4294_v9, 0.0  ;;  %vm1829_vm14 = vweird.f32 %v3609_v49  ;;  %v3296_v9 = vld [vmem:[%s4690_s22 + $0x60] sm:$0xf] }
 0x51a   : > { %v4290_v39 = vmax.f32 %v1928_v50, 0.0  ;;  %v1824_v21 = vmul.f32 %v3609_v49, %v1823_v46  ;;  %v1811_v57 = vsel %vm1810_vm13, %v3607_v8, %v1807_v51  ;;  %vm1830_vm1 = vmor %vm1828_vm15, %vm1829_vm14  ;;  %vm2459_vm6 = vcmask 23552  }
 0x51b   : > { %v1920_v32 = vmul.f32 %v1914_v53, %v1910_v18  ;;  %v2522_v30 = vand.u32 2147483647, %v1935_v56  ;;  %v1833_v20 = vmul.f32 %v1811_v57, %v1785_v31  ;;  %vm2899_vm15 = vcmask 72704  }
 0x51c   : > { %v2519_v47 = vand.u32 2147483647, %v4290_v39  ;;  %v1825_v54 = vmul.f32 0.5, %v1824_v21  ;;  %v2515_v46 = vmax.f32 %v4290_v39, 0.0  ;;  %v3304_v21 = vld [vmem:[%s4690_s22 + $0x70] sm:$0xf] }
 0x51d   : > { %v1930_v62 = vadd.f32 %v1924_v48, %v1920_v32  ;;  %v2526_v0 = vsub.f32 0.0, %v2522_v30  ;;  %v1843_v4 = vmul.f32 %v1839_v63, %v1833_v20 }
 0x51e   : > { %v2523_v12 = vsub.f32 0.0, %v2519_v47  ;;  %v1826_v18 = vsub.f32 1.5, %v1825_v54  ;;  %v2518_v54 = vmax.f32 %v1935_v56, 0.0  ;;  %v3447_v56 = vld [vmem:[%s4690_s22 + $0x64] sm:$0xf0] }
 0x51f   : > { %v4282_v23 = vmax.f32 %v1930_v62, 0.0  ;;  %v3611_v45 = vpop.eup %3610  ;;  %v2533_v6 = vmul.f32 1.442695, %v2526_v0  ;;  %v1853_v48 = vadd.f32 %v1849_v55, %v1843_v4  ;;  %v3306_v4 = vld [vmem:[%s4690_s22 + $0x78] sm:$0xf0] }
 0x520   : > { %v2536_v52 = vadd.f32 1.0, %v3611_v45  ;;  %v2527_v10 = vmul.f32 1.442695, %v2523_v12  ;;  %v1827_v26 = vmul.f32 %v3609_v49, %v1826_v18  ;;  %v3449_v12 = vld [vmem:[%s4690_s22 + $0x74] sm:$0xf0] }
 0x521   : > { %v2521_v33 = vand.u32 2147483647, %v4282_v23  ;;  %v4311_v16 = vmax.f32 %v1853_v48, 0.0  ;;  %v2517_v22 = vmax.f32 %v4282_v23, 0.0  ;;  %v3305_v57 = vor.u32 %v3449_v12, %v3304_v21  ;;  %v3456_v48 = vld [vmem:[%s4690_s22 + $0xb4] sm:$0xf] }
 0x522   : > { %v1831_v14 = vsel %vm1830_vm1, %v3609_v49, %v1827_v26  ;;  %v3452_v21 = vld [vmem:[%s4690_s22 + $0x94] sm:$0xf]  ;;  %v3322_v12 = vld [vmem:[%s4690_s22 + $0x98] sm:$0xf0]  ;;  %vm2945_vm1 = vcmask 130048  }
 0x523   : > { %v2525_v41 = vsub.f32 0.0, %v2521_v33  ;;  %v1835_v42 = vmul.f32 %v1831_v14, %v1787_v44  ;;  %2206 = vmatpush.bf16.msrb.mxu2 %v3305_v57  ;;  %v3288_v14 = vld [vmem:[%s4690_s22 + $0x50] sm:$0xf]  ;;  %v3446_v44 = vld [vmem:[%s4690_s22 + $0x64] sm:$0xf] }
 0x525   : > { %v2531_v58 = vmul.f32 1.442695, %v2525_v41  ;;  %v1845_v11 = vmul.f32 %v1839_v63, %v1835_v42  ;;  %v3328_v42 = vld [vmem:[%s4690_s22 + $0xa0] sm:$0xf] }
 0x527   : > { %3612 = vpow2.f32 %v2531_v58  ;;  %v1855_v41 = vadd.f32 %v1849_v55, %v1845_v11  ;;  %v3443_v11 = vld [vmem:[%s4690_s22 + $0x44] sm:$0xf0] }
 0x528   : > { %3614 = vlog2.f32 %v2536_v52 }
 0x529   : > { %3616 = vpow2.f32 %v2527_v10  ;;  %v4324_v58 = vmax.f32 %v1855_v41, 0.0 }
 0x52d   : > { %v3613_v1 = vpop.eup %3612 }
 0x52e   : > { %v2537_v5 = vadd.f32 1.0, %v3613_v1  ;;  %v3615_v15 = vpop.eup %3614 }
 0x52f   : > { %v2542_v8 = vmul.f32 0.6931472, %v3615_v15  ;;  %v3617_v32 = vpop.eup %3616  ;;  %v3457_v15 = vld [vmem:[%s4690_s22 + $0xb4] sm:$0xf0] }
 0x530   : > { %3618 = vlog2.f32 %v2537_v5  ;;  %v2535_v17 = vadd.f32 1.0, %v3617_v32  ;;  %v3336_v5 = vld [vmem:[%s4690_s22 + $0xb0] sm:$0xf]  ;;  %v3338_v32 = vld [vmem:[%s4690_s22 + $0xb8] sm:$0xf0] }
 0x531   : > { %3620 = vpow2.f32 %v2533_v6  ;;  %v2548_v7 = vadd.f32 %v2542_v8, %v2516_v59  ;;  %v3337_v18 = vor.u32 %v3457_v15, %v3336_v5 }
 0x532   : > { %3622 = vlog2.f32 %v2535_v17 }
 0x533   : > { %v2552_v38 = vmul.f32 0.9, %v2548_v7  ;;  %2224 = vmatpush.bf16.msrb.mxu3 %v3337_v18  ;;  %v3341_v7 = vor.u32 %v3456_v48, %v3338_v32  ;;  %v3248_v48 = vld [vmem:[%s4690_s22] sm:$0xf]  ;;  %v3435_v32 = vld [vmem:[%s4690_s22 + $0x4] sm:$0xf0] }
 0x535   : > { %v4316_v24 = vadd.f32 0.1, %v2552_v38  ;;  %v3298_v38 = vld [vmem:[%s4690_s22 + $0x68] sm:$0xf0]  ;;  %2252 = vmatpush.bf16.msrb.mxu1 %v3341_v7  ;;  %v3436_v7 = vld [vmem:[%s4690_s22 + $0x14] sm:$0xf] }
 0x536   : > { %v3619_v62 = vpop.eup %3618 }
 0x537   : > { %v2544_v61 = vmul.f32 0.6931472, %v3619_v62  ;;  %v3621_v43 = vpop.eup %3620  ;;  %v2566_v34 = vmul.f32 -2.0, %v4316_v24  ;;  %v3445_v62 = vld [vmem:[%s4690_s22 + $0x54] sm:$0xf0] }
 0x538   : > { %v2538_v33 = vadd.f32 1.0, %v3621_v43  ;;  %v3623_v50 = vpop.eup %3622  ;;  %v3289_v17 = vor.u32 %v3445_v62, %v3288_v14  ;;  %v3301_v43 = vor.u32 %v3446_v44, %v3298_v38  ;;  %v3249_v14 = vor.u32 %v3435_v32, %v3248_v48  ;;  %v3258_v62 = vld [vmem:[%s4690_s22 + $0x18] sm:$0xf0]  ;;  %v3450_v44 = vld [vmem:[%s4690_s22 + $0x84] sm:$0xf] }
 0x539   : > { %v2549_v2 = vadd.f32 %v2544_v61, %v2517_v22  ;;  %v2540_v49 = vmul.f32 0.6931472, %v3623_v50  ;;  %v2571_v40 = vmul.f32 1.442695, %v2566_v34  ;;  %v3455_v61 = vld [vmem:[%s4690_s22 + $0xa4] sm:$0xf0]  ;;  %v3261_v38 = vor.u32 %v3436_v7, %v3258_v62 }
 0x53a   : > { %v2003_v53 = vpop.permute.xlu2 %2002  ;;  %3624 = vlog2.f32 %v2538_v33  ;;  %v3329_v22 = vor.u32 %v3455_v61, %v3328_v42  ;;  %v3444_v33 = vld [vmem:[%s4690_s22 + $0x54] sm:$0xf]  ;;  %v3330_v50 = vld [vmem:[%s4690_s22 + $0xa8] sm:$0xf0]  ;;  %v3434_v61 = vld [vmem:[%s4690_s22 + $0x4] sm:$0xf] }
 0x53b   : > { %v2006_v3 = vmul.f32 %v2003_v53, %v4249_v37  ;;  %v2553_v35 = vmul.f32 0.9, %v2549_v2  ;;  %v2020_v47 = vmul.f32 %v2003_v53, %v4282_v23  ;;  %v2547_v52 = vadd.f32 %v2540_v49, %v2515_v46  ;;  %v3448_v53 = vld [vmem:[%s4690_s22 + $0x74] sm:$0xf]  ;;  %v3454_v2 = vld [vmem:[%s4690_s22 + $0xa4] sm:$0xf] }
 0x53c   : > { %3626 = vpow2.f32 %v2571_v40  ;;  %v3309_v55 = vor.u32 %v3448_v53, %v3306_v4  ;;  %2225 = vmatpush.bf16.msrb.mxu3 %v3329_v22  ;;  %v3333_v41 = vor.u32 %v3454_v2, %v3330_v50  ;;  %v3441_v49 = vld [vmem:[%s4690_s22 + $0x34] sm:$0xf0]  ;;  %v3442_v40 = vld [vmem:[%s4690_s22 + $0x44] sm:$0xf]  ;;  %v3320_v46 = vld [vmem:[%s4690_s22 + $0x90] sm:$0xf] }
 0x53d   : > { %2011 = vrot.lane.b32.xlu1 %v2006_v3, %s3702_s15  ;;  %v2557_v45 = vadd.f32 0.1, %v2553_v35  ;;  %v2551_v1 = vmul.f32 0.9, %v2547_v52  ;;  %v3297_v3 = vor.u32 %v3447_v56, %v3296_v9  ;;  %v3272_v35 = vld [vmem:[%s4690_s22 + $0x30] sm:$0xf] }
 0x53e   : > { %2234 = vmatpush.bf16.msra.mxu0 %v3309_v55  ;;  %2253 = vmatpush.bf16.msrb.mxu1 %v3333_v41  ;;  %v3273_v52 = vor.u32 %v3441_v49, %v3272_v35  ;;  %v3256_v56 = vld [vmem:[%s4690_s22 + $0x10] sm:$0xf]  ;;  %v3437_v53 = vld [vmem:[%s4690_s22 + $0x14] sm:$0xf0]  ;;  %v3312_v55 = vld [vmem:[%s4690_s22 + $0x80] sm:$0xf] }
 0x53f   : > { %v2567_v31 = vmul.f32 -2.0, %v2557_v45  ;;  %v2555_v0 = vadd.f32 0.1, %v2551_v1  ;;  %2207 = vmatpush.bf16.msrb.mxu2 %v3297_v3  ;;  %v3439_v1 = vld [vmem:[%s4690_s22 + $0x24] sm:$0xf0]  ;;  %v3257_v4 = vor.u32 %v3437_v53, %v3256_v56 }
 0x540   : > { %v3625_v51 = vpop.eup %3624  ;;  %v3438_v3 = vld [vmem:[%s4690_s22 + $0x24] sm:$0xf] }
 0x541   : > { %v2546_v30 = vmul.f32 0.6931472, %v3625_v51  ;;  %v2573_v10 = vmul.f32 1.442695, %v2567_v31  ;;  %v2565_v6 = vmul.f32 -2.0, %v2555_v0 }
 0x542   : > { %v4337_v20 = vpop.eup %3626  ;;  %2235 = vmatpush.bf16.msra.mxu0 %v3301_v43  ;;  %v3250_v43 = vld [vmem:[%s4690_s22 + $0x8] sm:$0xf0] }
 0x543   : > { %v2550_v63 = vadd.f32 %v2546_v30, %v2518_v54  ;;  %3628 = vpow2.f32 %v2573_v10  ;;  %v2569_v59 = vmul.f32 1.442695, %v2565_v6  ;;  %2208 = vmatpush.bf16.msrb.mxu2 %v3289_v17  ;;  %v3264_v30 = vld [vmem:[%s4690_s22 + $0x20] sm:$0xf]  ;;  %v3325_v54 = vor.u32 %v3452_v21, %v3322_v12  ;;  %v3440_v10 = vld [vmem:[%s4690_s22 + $0x34] sm:$0xf] }
 0x544   : > { %v3265_v5 = vor.u32 %v3439_v1, %v3264_v30  ;;  %v3451_v6 = vld [vmem:[%s4690_s22 + $0x84] sm:$0xf0]  ;;  %v3314_v17 = vld [vmem:[%s4690_s22 + $0x88] sm:$0xf0]  ;;  %v3253_v22 = vor.u32 %v3434_v61, %v3250_v43 }
 0x545   : > { %2037 = vrot.lane.b32.xlu1 %v4311_v16, %s3702_s15  ;;  %3630 = vpow2.f32 %v2569_v59  ;;  %2254 = vmatpush.bf16.msrb.mxu1 %v3325_v54  ;;  %v3313_v59 = vor.u32 %v3451_v6, %v3312_v55  ;;  %v3317_v42 = vor.u32 %v3450_v44, %v3314_v17 }
 0x549   : > { %v1999_v25 = vpop.permute.xlu1 %1998  ;;  %v3629_v26 = vpop.eup %3628  ;;  %2255 = vmatpush.bf16.msrb.mxu1 %v3317_v42 }
 0x54a   : > { %v2005_v60 = vmul.f32 %v1999_v25, %v4247_v36  ;;  %v2019_v13 = vmul.f32 %v1999_v25, %v4290_v39  ;;  %v3280_v25 = vld [vmem:[%s4690_s22 + $0x40] sm:$0xf] }
 0x54b   : > { %v3631_v18 = vpop.eup %3630 }
 0x54c   : > { %2009 = vrot.lane.b32.xlu2 %v2005_v60, %s3702_s15  ;;  %2023 = vrot.lane.b32.xlu0 %v2019_v13, %s3702_s15  ;;  %v3281_v60 = vor.u32 %v3443_v11, %v3280_v25  ;;  %v3290_v13 = vld [vmem:[%s4690_s22 + $0x58] sm:$0xf0]  ;;  %v1988_v11 = vpop.permute.xlu0 %1987 }
 0x54d   : > { %3554 = vrot.lane.b32.xlu1 %v4180_v19, %s3703_s16  ;;  %v3293_v34 = vor.u32 %v3444_v33, %v3290_v13  ;;  %v2796_v33 = vld [vmem:[%s3846_s6] sm:$0x77]  ;;  %v1995_v13 = vmul.f32 %v1988_v11, %v4247_v36  ;;  %s4695_s16 = sld [smem:[#allocation13_spill]] }
 0x54e   : > { %2209 = vmatpush.bf16.msrb.mxu2 %v3281_v60  ;;  %v2799_v60 = vunpack.c.h.b16 %v2796_v33  ;;  %v2798_v50 = vunpack.c.l.b16 %v2796_v33 }
 0x54f   : > { %2236 = vmatpush.bf16.msra.mxu0 %v3293_v34 }
 0x550   : > { %v2801_v2 = vpack.c.b16 %v2799_v60, %v2799_v60 }
 0x552   : > { %2210 = vmatpush.bf16.msrb.mxu2 %v3273_v52  ;;  %v1993_v41 = vpop.permute.xlu1 %1992  ;;  %v2811_v49 = vsel %vm2806_vm5, %v2801_v2, 0 }
 0x553   : > { %2834 = vmatpush.bf16.msra.mxu1 %v2811_v49  ;;  %v2018_v17 = vmul.f32 %v1993_v41, %v4282_v23 }
 0x554   : > { %2041 = vrot.lane.b32.xlu2 %v4324_v58, %s3702_s15  ;;  %2669 = vrot.lane.b32.xlu0 %v4311_v16, %s3699_s18  ;;  %v3550_v21 = vpop.permute.xlu0 %3549 }
 0x555   : > { %2025 = vrot.lane.b32.xlu1 %v2020_v47, %s3702_s15  ;;  %v3453_v47 = vld [vmem:[%s4690_s22 + $0x94] sm:$0xf0] }
 0x556   : > { %v3321_v51 = vor.u32 %v3453_v47, %v3320_v46  ;;  %2211 = vmatpush.bf16.msrb.mxu2 %v3265_v5  ;;  %v3552_v5 = vunpack.i.h.bf16 %v3550_v21 }
 0x558   : > { %2226 = vmatpush.bf16.msrb.mxu3 %v3321_v51 }
 0x55a   : > { %2212 = vmatpush.bf16.msrb.mxu2 %v3257_v4  ;;  %v2788_v4 = vsel %vm2459_vm6, %v3906_v28, %v3552_v5 }
 0x55c   : > { %3559 = vrot.lane.b32.xlu2 %v4180_v19, %s3704_s28  ;;  %2715 = vrot.lane.b32.xlu0 %v4337_v20, %s3699_s18  ;;  %v2554_v19 = vmul.f32 0.9, %v2550_v63  ;;  %v3274_v63 = vld [vmem:[%s4690_s22 + $0x38] sm:$0xf0]  ;;  %s3707_s28 = smov 125  }
 0x55d   : > { %2671 = vrot.lane.b32.xlu1 %v4249_v37, %s3699_s18  ;;  %2227 = vmatpush.bf16.msrb.mxu3 %v3313_v59 }
 0x55e   : > { %v4350_v8 = vadd.f32 0.1, %v2554_v19  ;;  %v3266_v19 = vld [vmem:[%s4690_s22 + $0x28] sm:$0xf0]  ;;  %2213 = vmatpush.bf16.msrb.mxu2 %v3249_v14 }
 0x560   : > { %v2568_v57 = vmul.f32 -2.0, %v4350_v8 }
 0x562   : > { %v2575_v15 = vmul.f32 1.442695, %v2568_v57 }
 0x564   : > { %2667 = vrot.lane.b32.xlu2 %v4247_v36, %s3699_s18  ;;  %2691 = vrot.lane.b32.xlu0 %v2557_v45, %s3699_s18  ;;  %v3282_v45 = vld [vmem:[%s4690_s22 + $0x48] sm:$0xf0]  ;;  %3632 = vpow2.f32 %v2575_v15  ;;  %v1996_v36 = vmul.f32 %v1993_v41, %v4249_v37  ;;  %v2017_v15 = vmul.f32 %v1988_v11, %v4290_v39 }
 0x565   : > { %2717 = vrot.lane.b32.xlu1 %v3629_v26, %s3699_s18  ;;  %v3285_v31 = vor.u32 %v3442_v40, %v3282_v45  ;;  %v3269_v26 = vor.u32 %v3438_v3, %v3266_v19  ;;  %v2800_v40 = vpack.c.b16 %v2798_v50, %v2798_v50 }
 0x567   : > { %2237 = vmatpush.bf16.msra.mxu0 %v3285_v31  ;;  %v2808_v45 = vsel %vm2806_vm5, %v2800_v40, 0  ;;  %vm2488_vm5 = vcmask 7168  }
 0x56a   : > { %v4387_v9 = vpop.eup %3632 }
 0x56c   : > { %2673 = vrot.lane.b32.xlu2 %v4324_v58, %s3699_s18 }
 0x56d   : > { %2687 = vrot.lane.b32.xlu1 %v2555_v0, %s3699_s18  ;;  %v3277_v0 = vor.u32 %v3440_v10, %v3274_v63  ;;  %v3545_v25 = vpop.permute.xlu2 %3544 }
 0x56e   : > { %v3547_v52 = vunpack.i.h.bf16 %v3545_v25  ;;  %v3546_v12 = vunpack.i.l.bf16 %v3545_v25 }
 0x56f   : > { %2238 = vmatpush.bf16.msra.mxu0 %v3277_v0  ;;  %v3551_v0 = vunpack.i.l.bf16 %v3550_v21 }
 0x571   : > { %v2787_v6 = vsel %vm2459_vm6, %v3903_v27, %v3551_v0 }
 0x573   : > { %2239 = vmatpush.bf16.msra.mxu0 %v3269_v26 }
 0x574   : > { %2713 = vrot.lane.b32.xlu2 %v3631_v18, %s3699_s18 }
 0x577   : > { %2240 = vmatpush.bf16.msra.mxu0 %v3261_v38 }
 0x57b   : > { %2241 = vmatpush.bf16.msra.mxu0 %v3253_v22 }
 0x57c   : > { %2719 = vrot.lane.b32.xlu2 %v4387_v9, %s3699_s18 }
 0x57f   : > { %2820 = vmatpush.bf16.msrb.mxu0 %v2808_v45 }
 0x584   : > { %2689 = vrot.lane.b32.xlu2 %v4316_v24, %s3699_s18 }
 0x5a6   : > { %v2010_v34 = vpop.permute.xlu2 %2009 }
 0x5a7   : > { %v4409_v35 = vadd.f32 %v2010_v34, %v1995_v13 }
 0x5a9   : > { %2585 = vrot.lane.b32.xlu2 %v4409_v35, %s3705_s1  ;;  %2597 = vrot.lane.b32.xlu0 %v4409_v35, %s3702_s15 }
 0x5aa   : > { %2591 = vrot.lane.b32.xlu1 %v4409_v35, %s3699_s18 }
 0x5ae   : > { %v2042_v46 = vpop.permute.xlu2 %2041 }
 0x5af   : > { %v2012_v47 = vpop.permute.xlu1 %2011  ;;  %v2044_v57 = vsel %vm1537_vm2, %v3547_v52, %v2042_v46 }
 0x5b0   : > { %v4418_v51 = vadd.f32 %v2012_v47, %v1996_v36 }
 0x5b2   : > { %2593 = vrot.lane.b32.xlu2 %v4418_v51, %s3699_s18  ;;  %2587 = vrot.lane.b32.xlu0 %v4418_v51, %s3705_s1  ;;  %v2050_v10 = vsel %vm995_vm0, %v4418_v51, %v2044_v57 }
 0x5b3   : > { %2599 = vrot.lane.b32.xlu1 %v4418_v51, %s3702_s15 }
 0x5b6   : > { %v3560_v31 = vpop.permute.xlu2 %3559 }
 0x5b7   : > { %v2038_v37 = vpop.permute.xlu1 %2037  ;;  %v3562_v26 = vunpack.i.h.bf16 %v3560_v31  ;;  %v3561_v59 = vunpack.i.l.bf16 %v3560_v31 }
 0x5b8   : > { %v2043_v30 = vsel %vm1537_vm2, %v3546_v12, %v2038_v37  ;;  %v2052_v1 = vpack.c.bf16 %v2042_v46, %v2038_v37 }
 0x5b9   : > { %v2049_v54 = vsel %vm995_vm0, %v4409_v35, %v2043_v30 }
 0x5ba   : > { %v2051_v63 = vpack.c.bf16 %v2050_v10, %v2049_v54  ;;  %3342 = vmatmul.msk.bf16.vlgmr.msrb.gmra.mxu3 %vm1109_vm3, %v2052_v1  ;;  %3343 = vmatmul.msk.bf16.vlgmr.msrb.gmra.mxu1 %vm1109_vm3, %v2052_v1 }
 0x5bc   : > { %2214 = vmatmul.bf16.vlgmr.msrb.gmra.mxu2 %v2051_v63  ;;  %2242 = vmatmul.bf16.vlgmr.msra.gmra.mxu0 %v2051_v63 }
 0x5be   : > { %v2668_v18 = vpop.permute.xlu2 %2667  ;;  %v2024_v56 = vpop.permute.xlu0 %2023 }
 0x5bf   : > { %v3555_v53 = vpop.permute.xlu1 %3554  ;;  %v2029_v3 = vadd.f32 %v2024_v56, %v2017_v15  ;;  %v2885_v56 = vsel %vm2459_vm6, %v3903_v27, 0.0 }
 0x5c0   : > { %v3557_v19 = vunpack.i.h.bf16 %v3555_v53  ;;  %v3556_v55 = vunpack.i.l.bf16 %v3555_v53 }
 0x5c1   : > { %v2495_v48 = vand.u32 2147483647, %v2029_v3  ;;  %v2493_v45 = vmax.f32 %v2029_v3, 0.0 }
 0x5c2   : > { %v2791_v39 = vsel %vm2789_vm7, %v2788_v4, %v3557_v19  ;;  %v2790_v32 = vsel %vm2789_vm7, %v2787_v6, %v3556_v55  ;;  %v3465_v4 = vld [vmem:[%s4691_s2 + $0x38] sm:$0xff] }
 0x5c3   : > { %v2497_v7 = vsub.f32 0.0, %v2495_v48  ;;  %v2794_v14 = vsel %vm2792_vm8, %v2791_v39, %v3562_v26  ;;  %v2793_v62 = vsel %vm2792_vm8, %v2790_v32, %v3561_v59  ;;  %2391 = vmatpush.bf16.msra.mxu2 %v3465_v4  ;;  %v3463_v59 = vld [vmem:[%s4691_s2 + $0x28] sm:$0xff]  ;;  %v3469_v48 = vld [vmem:[%s4691_s2 + $0x58] sm:$0xff]  ;;  %v3462_v39 = vld [vmem:[%s4691_s2 + $0x20] sm:$0xff] }
 0x5c4   : > { %v2795_v11 = vpack.c.bf16 %v2794_v14, %v2793_v62  ;;  %2409 = vmatpush.bf16.msra.mxu3 %v3469_v48  ;;  %v3468_v32 = vld [vmem:[%s4691_s2 + $0x50] sm:$0xff]  ;;  %v3467_v14 = vld [vmem:[%s4691_s2 + $0x48] sm:$0xff] }
 0x5c5   : > { %v2499_v44 = vmul.f32 1.442695, %v2497_v7  ;;  %v3461_v7 = vld [vmem:[%s4691_s2 + $0x18] sm:$0xff]  ;;  %v3460_v62 = vld [vmem:[%s4691_s2 + $0x10] sm:$0xff] }
 0x5c6   : > { %v2674_v38 = vpop.permute.xlu2 %2673  ;;  %v2670_v42 = vpop.permute.xlu0 %2669 }
 0x5c7   : > { %3634 = vpow2.f32 %v2499_v44  ;;  %v4441_v61 = vsel %vm995_vm0, %v2674_v38, %v2042_v46  ;;  %v4444_v43 = vsel %vm1109_vm3, %v2668_v18, %v2670_v42  ;;  %v4447_v22 = vsel %vm995_vm0, %v2670_v42, %v2038_v37  ;;  %v2026_v25 = vpop.permute.xlu1 %2025  ;;  %v3466_v44 = vld [vmem:[%s4691_s2 + $0x40] sm:$0xff] }
 0x5c8   : > { %v2030_v33 = vadd.f32 %v2026_v25, %v2018_v17  ;;  %v2886_v18 = vsel %vm2459_vm6, %v3906_v28, 0.0  ;;  %2410 = vmatpush.bf16.msra.mxu3 %v3468_v32 }
 0x5c9   : > { %v2887_v53 = vadd.f32 %v2886_v18, %v2885_v56 }
 0x5ca   : > { %v2496_v60 = vand.u32 2147483647, %v2030_v33  ;;  %3400 = vmatmul.msk.bf16.vlgmr.msra.gmra.mxu1 %vm2802_vm9, %v2795_v11  ;;  %v2494_v57 = vmax.f32 %v2030_v33, 0.0 }
 0x5cb   : > { %v2888_v3 = vrot.slane %v2887_v53, 4 }
 0x5cc   : > { %v2498_v23 = vsub.f32 0.0, %v2496_v60  ;;  %3399 = vmatmul.msk.bf16.vlgmr.msrb.gmra.mxu0 %vm2802_vm9, %v2795_v11  ;;  %2411 = vmatpush.bf16.msra.mxu3 %v3467_v14  ;;  %v3458_v11 = vld [vmem:[%s4691_s2] sm:$0xff] }
 0x5cd   : > { %v3635_v13 = vpop.eup %3634 }
 0x5ce   : > { %v2503_v2 = vadd.f32 1.0, %v3635_v13  ;;  %v2501_v50 = vmul.f32 1.442695, %v2498_v23  ;;  %v4516_v17 = vpop.permute.xlu0 %2715 }
 0x5cf   : > { %v2672_v34 = vpop.permute.xlu1 %2671 }
 0x5d0   : > { %3636 = vlog2.f32 %v2503_v2  ;;  %v4452_v41 = vsel %vm1109_vm3, %v2672_v34, %v2674_v38  ;;  %2412 = vmatpush.bf16.msra.mxu3 %v3466_v44  ;;  %v3459_v38 = vld [vmem:[%s4691_s2 + $0x8] sm:$0xff] }
 0x5d1   : > { %3638 = vpow2.f32 %v2501_v50 }
 0x5d6   : > { %v3637_v49 = vpop.eup %3636  ;;  %v4525_v60 = vpop.permute.xlu0 %2691 }
 0x5d7   : > { %v3639_v40 = vpop.eup %3638  ;;  %v2506_v36 = vmul.f32 0.6931472, %v3637_v49  ;;  %v4521_v25 = vpop.permute.xlu1 %2717 }
 0x5d8   : > { %v2504_v46 = vadd.f32 1.0, %v3639_v40  ;;  %v2262_v40 = vld [vmem:[%s4693_s0] sm:$0x3] }
 0x5d9   : > { %v2509_v47 = vadd.f32 %v2506_v36, %v2493_v45 }
 0x5da   : > { %3640 = vlog2.f32 %v2504_v46 }
 0x5db   : > { %v2511_v52 = vmul.f32 0.9, %v2509_v47  ;;  %v2265_v47 = vperm.slane %v2262_v40, 1 }
 0x5dd   : > { %v4454_v21 = vadd.f32 0.1, %v2511_v52 }
 0x5df   : > { %2625 = vrot.lane.b32.xlu2 %v4454_v21, %s3702_s15  ;;  %2619 = vrot.lane.b32.xlu0 %v4454_v21, %s3699_s18  ;;  %v2559_v37 = vmul.f32 2.0, %v4454_v21  ;;  %v4529_v34 = vpop.permute.xlu1 %2687 }
 0x5e0   : > { %v3641_v12 = vpop.eup %3640  ;;  %2613 = vrot.lane.b32.xlu1 %v4454_v21, %s3705_s1 }
 0x5e1   : > { %v2508_v31 = vmul.f32 0.6931472, %v3641_v12  ;;  %v2561_v54 = vmul.f32 1.442695, %v2559_v37 }
 0x5e3   : > { %v2510_v30 = vadd.f32 %v2508_v31, %v2494_v57  ;;  %3642 = vpow2.f32 %v2561_v54 }
 0x5e5   : > { %v2512_v1 = vmul.f32 0.9, %v2510_v30 }
 0x5e7   : > { %v4463_v10 = vadd.f32 0.1, %v2512_v1 }
 0x5e9   : > { %v2560_v63 = vmul.f32 2.0, %v4463_v10  ;;  %2627 = vrot.lane.b32.xlu0 %v4463_v10, %s3702_s15  ;;  %2621 = vrot.lane.b32.xlu1 %v4463_v10, %s3699_s18  ;;  %v4472_v15 = vpop.eup %3642 }
 0x5ea   : > { %2615 = vrot.lane.b32.xlu2 %v4463_v10, %s3705_s1 }
 0x5eb   : > { %v2563_v5 = vmul.f32 1.442695, %v2560_v63 }
 0x5ed   : > { %3644 = vpow2.f32 %v2563_v5 }
 0x5f1   : > { %2641 = vrot.lane.b32.xlu0 %v4472_v15, %s3705_s1 }
 0x5f2   : > { %2647 = vrot.lane.b32.xlu2 %v4472_v15, %s3699_s18 }
 0x5f3   : > { %v4478_v0 = vpop.eup %3644 }
 0x5f4   : > { %2643 = vrot.lane.b32.xlu1 %v4478_v0, %s3705_s1  ;;  %s3086_s1 = sshll.u32 %s4699_s10, 3  ;;  %s933_s10 = scalar_lea.vmem %s3856_s27, %s3885_s11 }
 0x5f9   : > { %2653 = vrot.lane.b32.xlu0 %v4472_v15, %s3702_s15 }
 0x5fa   : > { %2727 = vrot.lane.b32.xlu2 %v4337_v20, %s3702_s15  ;;  %v2889_v20 = vadd.f32 %v2888_v3, %v2887_v53  ;;  %v2264_v53 = vperm.slane %v2262_v40, 0  ;;  %v2875_v40 = vld [vmem:[%s3851_s20 + $0x70] sm:$0xff] }
 0x5fc   : > { %2655 = vrot.lane.b32.xlu1 %v4478_v0, %s3702_s15  ;;  %v2890_v19 = vrot.slane %v2889_v20, 2 }
 0x5fe   : > { %v2891_v55 = vadd.f32 %v2890_v19, %v2889_v20 }
 0x600   : > { %v2892_v6 = vrot.slane %v2891_v55, 1 }
 0x601   : > { %2649 = vrot.lane.b32.xlu0 %v4478_v0, %s3699_s18 }
 0x602   : > { %2703 = vrot.lane.b32.xlu2 %v4350_v8, %s3702_s15  ;;  %v2893_v26 = vadd.f32 %v2892_v6, %v2891_v55 }
 0x604   : > { %2693 = vrot.lane.b32.xlu1 %v4350_v8, %s3699_s18  ;;  %s3706_s18 = smov 6  }
 0x609   : > { %2729 = vrot.lane.b32.xlu0 %v4387_v9, %s3702_s15  ;;  %v3464_v9 = vld [vmem:[%s4691_s2 + $0x30] sm:$0xff] }
 0x60a   : > { %2392 = vmatpush.bf16.msra.mxu2 %v3464_v9 }
 0x60c   : > { %2701 = vrot.lane.b32.xlu1 %v4316_v24, %s3702_s15  ;;  %s4694_s15 = sld [smem:[#allocation11_spill]] }
 0x60e   : > { %2393 = vmatpush.bf16.msra.mxu2 %v3463_v59 }
 0x611   : > { %3564 = vrot.lane.b32.xlu0 %v3910_v29, %s3701_s26  ;;  %v4510_v29 = vpop.permute.xlu2 %2713  ;;  %s4692_s26 = sld [smem:[#allocation9_spill]] }
 0x612   : > { %2394 = vmatpush.bf16.msra.mxu2 %v3462_v39  ;;  %v2272_v52 = vld [vmem:[%s4694_s15] sm:$0x3] }
 0x613   : > { %v2275_v63 = vperm.slane %v2272_v52, 1  ;;  %v2274_v6 = vperm.slane %v2272_v52, 0 }
 0x616   : > { %2395 = vmatpush.bf16.msra.mxu2 %v3461_v7 }
 0x617   : > { %v2077_v33 = vld [vmem:[%s4692_s26] sm:$0x3] }
 0x618   : > { %v2080_v23 = vperm.slane %v2077_v33, 1  ;;  %v2079_v45 = vperm.slane %v2077_v33, 0 }
 0x619   : > { %2895 = vrot.lane.b32.xlu0 %v2893_v26, %s3706_s18  ;;  %v4519_v42 = vpop.permute.xlu2 %2719  ;;  %s938_s18 = scalar_lea.vmem %s3861_s4, %s3086_s1 }
 0x61a   : > { %2396 = vmatpush.bf16.msra.mxu2 %v3460_v62 }
 0x61b   : > { %v4532_v36 = vpop.permute.xlu0 %2597 }
 0x61c   : > { %v2592_v1 = vpop.permute.xlu1 %2591 }
 0x61e   : > { %2397 = vmatpush.bf16.msra.mxu2 %v3459_v38 }
 0x621   : > { %v4527_v13 = vpop.permute.xlu2 %2689 }
 0x622   : > { %2398 = vmatpush.bf16.msra.mxu2 %v3458_v11 }
 0x624   : > { %v2588_v59 = vpop.permute.xlu0 %2587 }
 0x625   : > { %v4535_v62 = vpop.permute.xlu1 %2599 }
 0x629   : > { %v2586_v37 = vpop.permute.xlu2 %2585 }
 0x631   : > { %v2594_v14 = vpop.permute.xlu2 %2593 }
 0x637   : > { %v2257_v2 = vpop.f32.mrf.mxu1 }
 0x639   : > { %v2243_v50 = vpop.f32.mrf.mxu0 }
 0x63a   : > { %v2244_v49 = vadd.f32 %v2243_v50, %v2080_v23 }
 0x63c   : > { %v2258_v46 = vadd.f32 %v2257_v2, %v2244_v49 }
 0x63d   : > { %v2229_v12 = vpop.f32.mrf.mxu3 }
 0x63e   : > { %v2269_v54 = vmul.f32 %v2265_v47, %v2258_v46  ;;  %v4542_v46 = vpop.permute.xlu2 %2625 }
 0x63f   : > { %v2215_v57 = vpop.f32.mrf.mxu2  ;;  %v2259_v18 = vpop.f32.mrf.mxu1 }
 0x640   : > { %v2216_v31 = vadd.f32 %v2215_v57, %v2079_v45  ;;  %v2279_v20 = vadd.f32 %v2275_v63, %v2269_v54  ;;  %v2872_v57 = vld [vmem:[%s3851_s20 + $0x58] sm:$0xff]  ;;  %v2870_v54 = vld [vmem:[%s3851_s20 + $0x48] sm:$0xff] }
 0x641   : > { %v2245_v30 = vpop.f32.mrf.mxu0 }
 0x642   : > { %v2246_v5 = vadd.f32 %v2245_v30, %v2080_v23  ;;  %v2230_v56 = vadd.f32 %v2229_v12, %v2216_v31  ;;  %v2283_v39 = vmax.f32 %v2279_v20, 0.0  ;;  %v2876_v23 = vld [vmem:[%s3851_s20 + $0x78] sm:$0xff]  ;;  %v2873_v12 = vld [vmem:[%s3851_s20 + $0x60] sm:$0xff]  ;;  %v2871_v31 = vld [vmem:[%s3851_s20 + $0x50] sm:$0xff] }
 0x643   : > { %2904 = vmatpush.msrb.mxu3 %v2876_v23  ;;  %v2862_v23 = vld [vmem:[%s3851_s20 + $0x8] sm:$0xff] }
 0x644   : > { %v2260_v3 = vadd.f32 %v2259_v18, %v2246_v5  ;;  %v2268_v55 = vmul.f32 %v2264_v53, %v2230_v56  ;;  %v2869_v5 = vld [vmem:[%s3851_s20 + $0x40] sm:$0xff]  ;;  %v2868_v56 = vld [vmem:[%s3851_s20 + $0x38] sm:$0xff] }
 0x645   : > { %v2231_v48 = vpop.f32.mrf.mxu3  ;;  %2905 = vmatpush.msrb.mxu3 %v2875_v40 }
 0x646   : > { %v2271_v4 = vmul.f32 %v2265_v47, %v2260_v3  ;;  %v2278_v44 = vadd.f32 %v2274_v6, %v2268_v55  ;;  %v2874_v47 = vld [vmem:[%s3851_s20 + $0x68] sm:$0xff]  ;;  %v2867_v3 = vld [vmem:[%s3851_s20 + $0x30] sm:$0xff] }
 0x647   : > { %v2217_v19 = vpop.f32.mrf.mxu2  ;;  %2906 = vmatpush.msrb.mxu3 %v2874_v47 }
 0x648   : > { %v2281_v26 = vadd.f32 %v2275_v63, %v2271_v4  ;;  %v2218_v9 = vadd.f32 %v2217_v19, %v2079_v45  ;;  %v2282_v2 = vmax.f32 %v2278_v44, 0.0  ;;  %v4551_v63 = vpop.permute.xlu2 %2615  ;;  %v2866_v19 = vld [vmem:[%s3851_s20 + $0x28] sm:$0xff] }
 0x649   : > { %2907 = vmatpush.msrb.mxu3 %v2873_v12 }
 0x64a   : > { %v2285_v32 = vmax.f32 %v2281_v26, 0.0  ;;  %v2232_v7 = vadd.f32 %v2231_v48, %v2218_v9  ;;  %v2604_v9 = vsel %vm995_vm0, %v4418_v51, %v2588_v59  ;;  %v2864_v48 = vld [vmem:[%s3851_s20 + $0x18] sm:$0xff]  ;;  %v2883_v59 = vld [vmem:[%s3851_s20 + $0xb0] sm:$0xff] }
 0x64b   : > { %2908 = vmatpush.msrb.mxu3 %v2872_v57  ;;  %v2606_v44 = vsel %vm1109_vm3, %v2604_v9, %v2594_v14  ;;  %v2882_v14 = vld [vmem:[%s3851_s20 + $0xa8] sm:$0xff] }
 0x64c   : > { %v2287_v38 = vpack.c.bf16 %v2285_v32, %v2283_v39  ;;  %v2270_v11 = vmul.f32 %v2264_v53, %v2232_v7  ;;  %v2603_v53 = vsel %vm995_vm0, %v4409_v35, %v2586_v37  ;;  %v2884_v32 = vld [vmem:[%s3851_s20 + $0xb8] sm:$0xff]  ;;  %v2863_v7 = vld [vmem:[%s3851_s20 + $0x10] sm:$0xff]  ;;  %v2608_v47 = vsel %vm1537_vm2, %v2606_v44, %v4535_v62 }
 0x64d   : > { %2909 = vmatpush.msrb.mxu3 %v2871_v31  ;;  %v2605_v20 = vsel %vm1109_vm3, %v2603_v53, %v2592_v1  ;;  %2932 = vmatpush.msra.mxu0 %v2884_v32 }
 0x64e   : > { %v2280_v33 = vadd.f32 %v2274_v6, %v2270_v11  ;;  %3392 = vmatmul.msk.bf16.vlgmr.msra.gmra.mxu3 %vm1109_vm3, %v2287_v38  ;;  %v2607_v55 = vsel %vm1537_vm2, %v2605_v20, %v4532_v36  ;;  %v2865_v6 = vld [vmem:[%s3851_s20 + $0x20] sm:$0xff]  ;;  %v2577_v36 = vmul.f32 2.0, %v4316_v24  ;;  %v2578_v38 = vmul.f32 2.0, %v4350_v8 }
 0x64f   : > { %2910 = vmatpush.msrb.mxu3 %v2870_v54  ;;  %v2739_v1 = vsub.f32 %v2607_v55, %v4444_v43  ;;  %2933 = vmatpush.msra.mxu0 %v2883_v59  ;;  %v2695_v55 = vsel %vm1109_vm3, %v4529_v34, %v4527_v13  ;;  %v2609_v34 = vsel %vm995_vm0, %v4409_v35, %v4311_v16 }
 0x650   : > { %v2284_v50 = vmax.f32 %v2280_v33, 0.0  ;;  %v2648_v37 = vpop.permute.xlu2 %2647  ;;  %v2579_v40 = vmul.f32 1.442695, %v2577_v36  ;;  %v2581_v54 = vmul.f32 1.442695, %v2578_v38  ;;  %v2740_v59 = vsub.f32 %v2609_v34, %v4447_v22 }
 0x651   : > { %v4539_v49 = vpop.permute.xlu0 %2619  ;;  %2911 = vmatpush.msrb.mxu3 %v2869_v5  ;;  %2934 = vmatpush.msra.mxu0 %v2882_v14  ;;  %v2881_v5 = vld [vmem:[%s3851_s20 + $0xa0] sm:$0xff] }
 0x652   : > { %v2286_v45 = vpack.c.bf16 %v2284_v50, %v2282_v2  ;;  %v2614_v52 = vpop.permute.xlu1 %2613  ;;  %v2743_v2 = vmul.f32 %v2739_v1, %v2739_v1  ;;  %3646 = vpow2.f32 %v2579_v40 }
 0x653   : > { %2912 = vmatpush.msrb.mxu3 %v2868_v56  ;;  %v2631_v43 = vsel %vm995_vm0, %v4454_v21, %v2614_v52  ;;  %v2861_v52 = vld [vmem:[%s3851_s20] sm:$0xff]  ;;  %2935 = vmatpush.msra.mxu0 %v2881_v5  ;;  %v2880_v56 = vld [vmem:[%s3851_s20 + $0x98] sm:$0xff]  ;;  %3648 = vpow2.f32 %v2581_v54 }
 0x654   : > { %2399 = vmatmul.bf16.vlgmr.msra.gmra.mxu2 %v2286_v45  ;;  %v2721_v45 = vsel %vm1109_vm3, %v4510_v29, %v4516_v17  ;;  %v2633_v12 = vsel %vm1109_vm3, %v2631_v43, %v4539_v49  ;;  %v2879_v29 = vld [vmem:[%s3851_s20 + $0x90] sm:$0xff] }
 0x655   : > { %2913 = vmatpush.msrb.mxu3 %v2867_v3  ;;  %v2751_v53 = vmul.f32 0.5, %v2721_v45  ;;  %v2741_v3 = vsub.f32 %v2608_v47, %v4452_v41  ;;  %v2635_v62 = vsel %vm1537_vm2, %v2633_v12, %v4542_v46  ;;  %2936 = vmatpush.msra.mxu0 %v2880_v56  ;;  %v2632_v41 = vsel %vm995_vm0, %v4463_v10, %v4551_v63 }
 0x657   : > { %2914 = vmatpush.msrb.mxu3 %v2866_v19  ;;  %v2722_v19 = vsel %vm1109_vm3, %v4521_v25, %v4519_v42  ;;  %2937 = vmatpush.msra.mxu0 %v2879_v29 }
 0x658   : > { %v2728_v20 = vpop.permute.xlu2 %2727  ;;  %v2753_v32 = vmul.f32 0.5, %v2722_v19  ;;  %v3647_v38 = vpop.eup %3646 }
 0x659   : > { %2915 = vmatpush.msrb.mxu3 %v2865_v6  ;;  %v2822_v6 = vpop.f32.mrf.mxu0  ;;  %v3649_v35 = vpop.eup %3648 }
 0x65b   : > { %v4548_v30 = vpop.permute.xlu0 %2627  ;;  %v4554_v18 = vpop.permute.xlu1 %2621  ;;  %2916 = vmatpush.msrb.mxu3 %v2864_v48  ;;  %v2735_v48 = vsub.f32 %v2695_v55, %v2635_v62 }
 0x65c   : > { %v2634_v1 = vsel %vm1109_vm3, %v2632_v41, %v4554_v18 }
 0x65d   : > { %2917 = vmatpush.msrb.mxu3 %v2863_v7  ;;  %v2636_v43 = vsel %vm1537_vm2, %v2634_v1, %v4548_v30  ;;  %v2665_v30 = vsel %vm995_vm0, %v4472_v15, %v3647_v38 }
 0x65f   : > { %2918 = vmatpush.msrb.mxu3 %v2862_v23 }
 0x660   : > { %v2704_v14 = vpop.permute.xlu2 %2703 }
 0x661   : > { %2919 = vmatpush.msrb.mxu3 %v2861_v52  ;;  %v2824_v52 = vpop.f32.mrf.mxu0 }
 0x663   : > { %v2642_v4 = vpop.permute.xlu0 %2641 }
 0x664   : > { %v2659_v39 = vsel %vm995_vm0, %v4472_v15, %v2642_v4  ;;  %v2878_v4 = vld [vmem:[%s3851_s20 + $0x88] sm:$0xff] }
 0x665   : > { %v2661_v33 = vsel %vm1109_vm3, %v2659_v39, %v2648_v37  ;;  %v2745_v37 = vmul.f32 %v2741_v3, %v2741_v3  ;;  %v2877_v39 = vld [vmem:[%s3851_s20 + $0x80] sm:$0xff]  ;;  %2938 = vmatpush.msra.mxu0 %v2878_v4  ;;  %v2637_v3 = vsel %vm995_vm0, %v4454_v21, %v4316_v24 }
 0x666   : > { %v2644_v26 = vpop.permute.xlu1 %2643 }
 0x667   : > { %v2660_v46 = vsel %vm995_vm0, %v4478_v0, %v2644_v26  ;;  %v2610_v26 = vsel %vm995_vm0, %v4418_v51, %v4324_v58  ;;  %2939 = vmatpush.msra.mxu0 %v2877_v39  ;;  %v2733_v58 = vsel %vm995_vm0, %v4516_v17, %v2728_v20  ;;  %v2836_v51 = vpop.f32.mrf.mxu1 }
 0x668   : > { %v2742_v18 = vsub.f32 %v2610_v26, %v4441_v61  ;;  %v2666_v61 = vsel %vm995_vm0, %v4478_v0, %v3649_v35  ;;  %v2752_v40 = vmul.f32 0.5, %v2733_v58  ;;  %v2638_v0 = vsel %vm995_vm0, %v4463_v10, %v4350_v8 }
 0x66a   : > { %v2746_v22 = vmul.f32 %v2742_v18, %v2742_v18 }
 0x66b   : > { %v2654_v11 = vpop.permute.xlu0 %2653 }
 0x66c   : > { %v2663_v50 = vsel %vm1537_vm2, %v2661_v33, %v2654_v11  ;;  %v2750_v12 = vadd.f32 %v2746_v22, %v2666_v61 }
 0x66d   : > { %v2747_v57 = vadd.f32 %v2743_v2, %v2663_v50  ;;  %v2744_v50 = vmul.f32 %v2740_v59, %v2740_v59 }
 0x66e   : > { %v2656_v31 = vpop.permute.xlu1 %2655 }
 0x66f   : > { %v2755_v49 = vmul.f32 %v2751_v53, %v2747_v57  ;;  %v2838_v41 = vpop.f32.mrf.mxu1 }
 0x671   : > { %v2759_v36 = vadd.f32 %v2755_v49, %v2735_v48 }
 0x673   : > { %v2650_v9 = vpop.permute.xlu0 %2649  ;;  %v3395_v23 = vadd.f32 -0.5, %v2759_v36  ;;  %v3575_v36 = vld [vmem:[%s4695_s16] ss:$0 sm:$0xff] }
 0x674   : > { %v2662_v25 = vsel %vm1109_vm3, %v2660_v46, %v2650_v9 }
 0x675   : > { %v2664_v63 = vsel %vm1537_vm2, %v2662_v25, %v2656_v31  ;;  %v2748_v31 = vadd.f32 %v2744_v50, %v2665_v30  ;;  %v2841_v54 = vmul.f32 %v3395_v23, %v2822_v6 }
 0x676   : > { %v2749_v7 = vadd.f32 %v2745_v37, %v2664_v63  ;;  %v2694_v44 = vpop.permute.xlu1 %2693 }
 0x677   : > { %v2696_v16 = vsel %vm1109_vm3, %v4525_v60, %v2694_v44  ;;  %v2708_v45 = vsel %vm995_vm0, %v2694_v44, %v2704_v14  ;;  %v2756_v29 = vmul.f32 %v2752_v40, %v2748_v31 }
 0x678   : > { %v2757_v11 = vmul.f32 %v2753_v32, %v2749_v7  ;;  %v2737_v33 = vsub.f32 %v2696_v16, %v2636_v43  ;;  %v2738_v56 = vsub.f32 %v2708_v45, %v2638_v0 }
 0x67a   : > { %v2761_v2 = vadd.f32 %v2757_v11, %v2737_v33 }
 0x67b   : > { %v2730_v60 = vpop.permute.xlu0 %2729 }
 0x67c   : > { %v3397_v47 = vadd.f32 -0.5, %v2761_v2  ;;  %v2734_v17 = vsel %vm995_vm0, %v4519_v42, %v2730_v60 }
 0x67d   : > { %v2754_v57 = vmul.f32 0.5, %v2734_v17 }
 0x67e   : > { %v2843_v15 = vmul.f32 %v3397_v47, %v2824_v52  ;;  %v2702_v5 = vpop.permute.xlu1 %2701 }
 0x67f   : > { %v2758_v53 = vmul.f32 %v2754_v57, %v2750_v12  ;;  %v2707_v42 = vsel %vm995_vm0, %v4527_v13, %v2702_v5 }
 0x680   : > { %v2845_v62 = vadd.f32 %v2843_v15, %v2841_v54  ;;  %v2736_v20 = vsub.f32 %v2707_v42, %v2637_v3 }
 0x681   : > { %v2762_v49 = vadd.f32 %v2758_v53, %v2738_v56 }
 0x682   : > { %v2846_v4 = vrot.slane %v2845_v62, 4  ;;  %v2760_v19 = vadd.f32 %v2756_v29, %v2736_v20 }
 0x683   : > { %v3398_v55 = vadd.f32 -0.5, %v2762_v49  ;;  %v3565_v40 = vpop.permute.xlu0 %3564 }
 0x684   : > { %v2847_v8 = vadd.f32 %v2846_v4, %v2845_v62  ;;  %v3396_v10 = vadd.f32 -0.5, %v2760_v19  ;;  %v3566_v52 = vunpack.i.l.bf16 %v3565_v40  ;;  %v3567_v42 = vunpack.i.h.bf16 %v3565_v40 }
 0x685   : > { %v2844_v6 = vmul.f32 %v3398_v55, %v2838_v41 }
 0x686   : > { %v2842_v46 = vmul.f32 %v3396_v10, %v2836_v51  ;;  %v2848_v9 = vrot.slane %v2847_v8, 2 }
 0x687   : > { %v2853_v37 = vsel %vm1109_vm3, %v2844_v6, 0.0 }
 0x688   : > { %v2852_v24 = vsel %vm1109_vm3, %v2842_v46, 0.0  ;;  %v2849_v21 = vadd.f32 %v2848_v9, %v2847_v8 }
 0x689   : > { %v2854_v13 = vadd.f32 %v2853_v37, %v2852_v24 }
 0x68a   : > { %v2850_v48 = vrot.slane %v2849_v21, 1 }
 0x68b   : > { %v2855_v1 = vrot.slane %v2854_v13, 4  ;;  %v2896_v49 = vpop.permute.xlu0 %2895 }
 0x68c   : > { %v2851_v25 = vadd.f32 %v2850_v48, %v2849_v21  ;;  %v2898_v4 = vsel %vm2802_vm9, 0.0, %v2896_v49 }
 0x68d   : > { %v2856_v39 = vadd.f32 %v2855_v1, %v2854_v13  ;;  %v2900_v19 = vsel %vm2899_vm15, %v2898_v4, 0.0 }
 0x68e   : > { %2920 = vmatmul.f32.vlgmr.msrb.gmra.mxu3 %v2851_v25 }
 0x68f   : > { %v2857_v34 = vrot.slane %v2856_v39, 2 }
 0x691   : > { %v2858_v63 = vadd.f32 %v2857_v34, %v2856_v39 }
 0x693   : > { %v2859_v26 = vrot.slane %v2858_v63, 1 }
 0x695   : > { %v2860_v32 = vadd.f32 %v2859_v26, %v2858_v63 }
 0x697   : > { %3401 = vmatmul.msk.f32.vlgmr.msra.gmra.mxu0 %vm1109_vm3, %v2860_v32 }
 0x6d1   : > { %v2414_v7 = vpop.f32.mrf.mxu3 }
 0x6d7   : > { %v2400_v44 = vpop.f32.mrf.mxu2 }
 0x6d8   : > { %v2401_v38 = vadd.f32 %v3575_v36, %v2400_v44 }
 0x6d9   : > { %v2416_v35 = vpop.f32.mrf.mxu3 }
 0x6da   : > { %v2415_v18 = vadd.f32 %v2414_v7, %v2401_v38 }
 0x6dc   : > { %v3393_v59 = vmul.f32 -1.442695, %v2415_v18 }
 0x6de   : > { %3650 = vpow2.f32 %v3393_v59 }
 0x6df   : > { %v2402_v43 = vpop.f32.mrf.mxu2 }
 0x6e0   : > { %v2403_v16 = vadd.f32 %v3575_v36, %v2402_v43 }
 0x6e2   : > { %v2417_v11 = vadd.f32 %v2416_v35, %v2403_v16 }
 0x6e4   : > { %v3651_v33 = vpop.eup %3650  ;;  %v3394_v58 = vmul.f32 -1.442695, %v2417_v11 }
 0x6e5   : > { %v2425_v51 = vadd.f32 1.0, %v3651_v33 }
 0x6e6   : > { %3652 = vpow2.f32 %v3394_v58 }
 0x6e7   : > { %3654 = vrcp.f32 %v2425_v51  ;;  %v2438_v50 = vand.u32 2147483648, %v2425_v51  ;;  %v2436_v60 = vand.u32 2147483647, %v2425_v51  ;;  %vm2432_vm3 = vweird.f32 %v2425_v51 }
 0x6e9   : > { %v2439_v17 = vor.u32 1.1754944e-38, %v2438_v50  ;;  %vm2437_vm10 = vcmp.eq.f32.partialorder %v2436_v60, 8.507059e+37 }
 0x6ec   : > { %v3653_v23 = vpop.eup %3652 }
 0x6ed   : > { %v3655_v2 = vpop.eup %3654  ;;  %v2426_v61 = vadd.f32 1.0, %v3653_v23 }
 0x6ee   : > { %v2428_v22 = vmul.f32 %v3655_v2, %v2425_v51  ;;  %vm2433_vm0 = vweird.f32 %v3655_v2 }
 0x6ef   : > { %3656 = vrcp.f32 %v2426_v61  ;;  %vm2434_vm2 = vmor %vm2432_vm3, %vm2433_vm0  ;;  %v2453_v15 = vand.u32 2147483648, %v2426_v61  ;;  %v2451_v56 = vand.u32 2147483647, %v2426_v61  ;;  %vm2447_vm12 = vweird.f32 %v2426_v61 }
 0x6f0   : > { %v2429_v30 = vsub.f32 1.0, %v2428_v22 }
 0x6f1   : > { %v2454_v3 = vor.u32 1.1754944e-38, %v2453_v15  ;;  %vm2452_vm14 = vcmp.eq.f32.partialorder %v2451_v56, 8.507059e+37 }
 0x6f2   : > { %v2430_v14 = vmul.f32 %v3655_v2, %v2429_v30 }
 0x6f4   : > { %v2431_v45 = vadd.f32 %v3655_v2, %v2430_v14 }
 0x6f5   : > { %v3657_v47 = vpop.eup %3656 }
 0x6f6   : > { %v2435_v12 = vsel %vm2434_vm2, %v3655_v2, %v2431_v45  ;;  %v2443_v57 = vmul.f32 %v3657_v47, %v2426_v61  ;;  %vm2448_vm11 = vweird.f32 %v3657_v47 }
 0x6f7   : > { %v2440_v31 = vsel %vm2437_vm10, %v2439_v17, %v2435_v12  ;;  %vm2449_vm13 = vmor %vm2447_vm12, %vm2448_vm11 }
 0x6f8   : > { %v2472_v54 = vmul.f32 %v3566_v52, %v2440_v31  ;;  %v2444_v0 = vsub.f32 1.0, %v2443_v57  ;;  %v2457_v46 = vmul.f32 %v3903_v27, %v2440_v31 }
 0x6fa   : > { %2476 = vrot.lane.b32.xlu1 %v2472_v54, %s3707_s28  ;;  %v2445_v5 = vmul.f32 %v3657_v47, %v2444_v0  ;;  %v2460_v9 = vsel %vm2459_vm6, %v2457_v46, 0.0 }
 0x6fc   : > { %v2446_v53 = vadd.f32 %v3657_v47, %v2445_v5 }
 0x6fe   : > { %v2450_v29 = vsel %vm2449_vm13, %v3657_v47, %v2446_v53 }
 0x6ff   : > { %v2455_v62 = vsel %vm2452_vm14, %v2454_v3, %v2450_v29 }
 0x700   : > { %v2473_v20 = vmul.f32 %v3567_v42, %v2455_v62  ;;  %v2458_v37 = vmul.f32 %v3906_v28, %v2455_v62 }
 0x702   : > { %2478 = vrot.lane.b32.xlu2 %v2473_v20, %s3707_s28  ;;  %v2463_v24 = vsel %vm2459_vm6, %v2458_v37, 0.0 }
 0x711   : > { %v2921_v55 = vpop.f32.mrf.mxu3 }
 0x712   : > { %v2922_v41 = vadd.f32 %v2921_v55, %v2900_v19 }
 0x714   : > { %v2941_v8 = vpop.f32.mrf.mxu0 }
 0x715   : > { %v2942_v10 = vadd.f32 %v2941_v8, %v2922_v41 }
 0x717   : > { %v2944_v6 = vperm.slane %v2942_v10, 0 }
 0x719   : > { %2946 = vst.msk [vmem:[%s938_s18] sm:$0xff] %vm2945_vm1, %v2944_v6 }
 0x724   : > { %2461 = vadd.xlane.f32.xlu1 %v2460_v9 }
 0x72b   : > { %2464 = vadd.xlane.f32.xlu2 %v2463_v24 }
 0x75c   : > { %v2479_v21 = vpop.permute.xlu2 %2478 }
 0x75d   : > { %v2485_v13 = vsel %vm2459_vm6, %v2479_v21, 0.0 }
 0x75e   : > { %2486 = vadd.xlane.f32.xlu1 %v2485_v13 }
 0x76c   : > { %v2477_v48 = vpop.permute.xlu1 %2476 }
 0x76d   : > { %v2482_v1 = vsel %vm2459_vm6, %v2477_v48, 0.0 }
 0x76e   : > { %2483 = vadd.xlane.f32.xlu0 %v2482_v1 }
 0x797   : > { %v2462_v25 = vpop.xlane.xlu1 %2461 }
 0x79e   : > { %v2465_v27 = vpop.xlane.xlu2 %2464 }
 0x7d1   : > { %v2487_v39 = vpop.xlane.xlu1 %2486 }
 0x7d2   : > { %v2490_v34 = vsel %vm2488_vm5, %v2465_v27, %v2487_v39 }
 0x7d3   : > { %2492 = vst.msk [vmem:[%s933_s10 + $0x8] sm:$0xff] %vm1936_vm4, %v2490_v34 }
 0x7e1   : > { %v2484_v28 = vpop.xlane.xlu0 %2483 }
 0x7e2   : > { %v2489_v63 = vsel %vm2488_vm5, %v2462_v25, %v2484_v28 }
 0x7e3   : > { %2491 = vst.msk [vmem:[%s933_s10] sm:$0xff] %vm1936_vm4, %v2489_v63 }
 0x7e4 PF: > { %s70_s7 = sadd.s32 1, %s3664_s7  }
 0x7e5   : > { %p67_p5 = scmp.ge.s32.totalorder %s70_s7, 5  }
 0x7e7   :  { %69 = sbr.rel (!%p67_p5) target bundleno = 48 (0x30), region = 206 }

</bundles_post_ra>
